<compile_context>
chip_gen: v7x
topology: tpu7x:2x2x1
jax: 0.10.0
libtpu: 0.0.40
codegen_flags: <defaults>
</compile_context>

<pallas_src>
import functools
import math

import jax
import jax.numpy as jnp
from jax import lax
from jax.experimental import pallas as pl
from jax.experimental.pallas import tpu as pltpu


def _fused_classifier_kernel(*refs, num_layers):
    """All TransformerConv layers fused; weights prefetched HBM->VMEM inside the kernel."""
    x_ref, adj_ref = refs[0], refs[1]
    b_refs = refs[2:2 + num_layers]                     # [1, 4*C] f32 biases (VMEM)
    w_hbm = refs[2 + num_layers:2 + 2 * num_layers]     # [Din, 4*C] bf16 weights (HBM)
    out_ref = refs[2 + 2 * num_layers]
    wbufs = refs[3 + 2 * num_layers:3 + 3 * num_layers]  # VMEM scratch, one per layer
    sem = refs[3 + 3 * num_layers]                      # DMA semaphores, one per layer

    # Queue every layer's weight DMA immediately so HBM->VMEM copies overlap compute.
    copies = [pltpu.make_async_copy(w_hbm[l], wbufs[l], sem.at[l])
              for l in range(num_layers)]
    for cp in copies:
        cp.start()

    adj = adj_ref[...]                                  # [N, N] f32, adj[i, j] = 1 iff edge j -> i
    act = x_ref[...].astype(jnp.bfloat16)               # [N, D0] bf16 activations
    big_neg = jnp.float32(-1e30)

    h = None
    for l in range(num_layers):
        copies[l].wait()                                # block only on this layer's weights
        w = wbufs[l][...]                               # [Din, 4*C] bf16 (Wq|Wk|Wv|Wskip fused)
        b = b_refs[l][...]                              # [1,   4*C] f32
        c = w.shape[1] // 4                             # multiple of 128 -> aligned slices

        # Single lane-dense MXU matmul producing q|k|v|skip side by side (f32 acc).
        proj = jnp.dot(act, w, preferred_element_type=jnp.float32) + b
        q = proj[:, 0 * c:1 * c]                        # 1/sqrt(C) already folded into Wq/bq
        k = proj[:, 1 * c:2 * c]
        v = proj[:, 2 * c:3 * c]
        skip = proj[:, 3 * c:4 * c]

        # Attention scores over the graph: scores[i, j] = (q_i . k_j) (pre-scaled).
        scores = lax.dot_general(
            q.astype(jnp.bfloat16), k.astype(jnp.bfloat16),
            (((1,), (1,)), ((), ())),
            preferred_element_type=jnp.float32)

        # Masked softmax per target node: row max taken over *edge* entries only.
        masked = jnp.where(adj > 0.0, scores, big_neg)
        row_max = jnp.max(masked, axis=-1, keepdims=True)
        e = jnp.exp(masked - row_max) * adj             # exact zeros on non-edges
        denom = jnp.sum(e, axis=-1, keepdims=True)
        attn = e * pl.reciprocal(jnp.maximum(denom, jnp.float32(1e-20)), approx=True)

        # Aggregate messages + root/skip connection, then ReLU (dropout = identity).
        agg = jnp.dot(attn.astype(jnp.bfloat16), v.astype(jnp.bfloat16),
                      preferred_element_type=jnp.float32)
        h = jnp.maximum(agg + skip, 0.0)                # f32
        act = h.astype(jnp.bfloat16)                    # single cast for the next layer's MXU

    out_ref[...] = h.astype(out_ref.dtype)


def base_classifier_forward(x, adj, fused_params, out_dim):
    """Single fused pallas_call over the whole layer stack; slices the padded head."""
    n = x.shape[0]
    num_layers = len(fused_params)
    c_last = fused_params[-1][0].shape[1] // 4           # padded width of the final head

    weights = [w for w, _ in fused_params]
    biases = [b for _, b in fused_params]

    # Advisory cost estimate for the XLA scheduler.
    flops, trans, bytes_acc = 0, 0, x.size * 4 + adj.size * 4 + n * c_last * 4
    for w, b in fused_params:
        din, c4 = w.shape
        c = c4 // 4
        flops += 2 * n * din * c4                        # fused projection
        flops += 2 * 2 * n * n * c                       # scores + aggregation matmuls
        flops += 10 * n * n                              # mask / softmax / relu elementwise
        trans += n * n + n                               # exp + reciprocal
        bytes_acc += w.size * 2 + b.size * 4
    cost = pl.CostEstimate(flops=int(flops), transcendentals=int(trans),
                           bytes_accessed=int(bytes_acc))

    kernel = functools.partial(_fused_classifier_kernel, num_layers=num_layers)

    vmem = pl.BlockSpec(memory_space=pltpu.MemorySpace.VMEM)
    hbm = pl.BlockSpec(memory_space=pl.ANY)              # weights stay in HBM; kernel DMAs them

    out_padded = pl.pallas_call(
        kernel,
        out_shape=jax.ShapeDtypeStruct((n, c_last), jnp.float32),
        in_specs=[vmem, vmem] + [vmem] * num_layers + [hbm] * num_layers,
        out_specs=vmem,
        scratch_shapes=[pltpu.VMEM(w.shape, w.dtype) for w in weights]
                      + [pltpu.SemaphoreType.DMA((num_layers,))],
        cost_estimate=cost,
    )(x, adj, *biases, *weights)

    return out_padded[:, :out_dim]


def init_layer_params(key, in_dim, out_dim):
    """Deterministic synthetic parameters for one TransformerConv layer."""
    ks = jax.random.split(key, 8)
    s = 1.0 / math.sqrt(in_dim)
    u = lambda k, shape: jax.random.uniform(k, shape, jnp.float32, -s, s)
    return {
        "wq": u(ks[0], (in_dim, out_dim)), "bq": u(ks[1], (1, out_dim)),
        "wk": u(ks[2], (in_dim, out_dim)), "bk": u(ks[3], (1, out_dim)),
        "wv": u(ks[4], (in_dim, out_dim)), "bv": u(ks[5], (1, out_dim)),
        "ws": u(ks[6], (in_dim, out_dim)), "bs": u(ks[7], (1, out_dim)),
    }


def fuse_layer_params(params, scale, in_pad, out_pad):
    """Fold attention scale into Wq/bq, zero-pad in/out dims, concat Wq|Wk|Wv|Wskip."""
    ws = [params["wq"] * scale, params["wk"], params["wv"], params["ws"]]
    bs = [params["bq"] * scale, params["bk"], params["bv"], params["bs"]]
    din, c = ws[0].shape
    ws = [jnp.pad(w, ((0, in_pad - din), (0, out_pad - c))) for w in ws]
    bs = [jnp.pad(b, ((0, 0), (0, out_pad - c))) for b in bs]
    w_fused = jnp.concatenate(ws, axis=1).astype(jnp.bfloat16)
    b_fused = jnp.concatenate(bs, axis=1).astype(jnp.float32)
    return w_fused, b_fused


def edge_index_to_adj(edge_index, num_nodes):
    """edge_index: [2, E] with row 0 = source j, row 1 = target i -> adj[i, j]."""
    src, dst = edge_index
    adj = jnp.zeros((num_nodes, num_nodes), jnp.float32)
    return adj.at[dst, src].set(1.0)


def reference_forward(x, adj, layer_params, scales):
    """Pure-JAX f32 reference with the original (unfused, unpadded) parameters."""
    act = x
    for p, sc in zip(layer_params, scales):
        q = act @ p["wq"] + p["bq"]
        k = act @ p["wk"] + p["bk"]
        v = act @ p["wv"] + p["bv"]
        skip = act @ p["ws"] + p["bs"]
        scores = (q @ k.T) * sc
        masked = jnp.where(adj > 0.0, scores, -jnp.inf)
        row_max = jnp.max(masked, axis=-1, keepdims=True)
        row_max = jnp.where(jnp.isfinite(row_max), row_max, 0.0)
        e = jnp.where(adj > 0.0, jnp.exp(scores - row_max), 0.0)
        denom = jnp.maximum(jnp.sum(e, axis=-1, keepdims=True), 1e-20)
        attn = e / denom
        act = jnp.maximum(attn @ v + skip, 0.0)
    return act


if __name__ == "__main__":
    key = jax.random.PRNGKey(0)

    # Small graph: 16 nodes, 64-d input features (matches num_hiddens[0] = 64).
    num_nodes = 16
    num_hiddens = [64, 32, 512, 512]
    out_dim = 2

    k_x, k_p = jax.random.split(key)
    x = jax.random.normal(k_x, (num_nodes, num_hiddens[0]), jnp.float32)

    # Directed ring + self-loops so every node has incoming edges.
    nodes = jnp.arange(num_nodes, dtype=jnp.int32)
    src = jnp.concatenate([nodes, nodes])
    dst = jnp.concatenate([(nodes + 1) % num_nodes, nodes])
    edge_index = jnp.stack([src, dst], axis=0)          # [2, E], E = 32
    adj = edge_index_to_adj(edge_index, num_nodes)      # [N_dst, N_src]

    # Layer dims: 64->32, 32->512, 512->512, 512->2 (same as Base_classfier).
    in_dims = num_hiddens
    out_dims = num_hiddens[1:] + [out_dim]

    # Pad every head width up to a multiple of 128 lanes; each layer's input dim is the
    # previous layer's padded output (padded columns are exactly zero through the stack).
    pad128 = lambda d: ((d + 127) // 128) * 128
    out_pads = [pad128(d) for d in out_dims]            # [128, 512, 512, 128]
    in_pads = [in_dims[0]] + out_pads[:-1]              # [64, 128, 512, 512]

    layer_keys = jax.random.split(k_p, len(in_dims))
    layer_params, fused_params, scales = [], [], []
    for lk, di, do, ip, op in zip(layer_keys, in_dims, out_dims, in_pads, out_pads):
        p = init_layer_params(lk, di, do)
        sc = 1.0 / math.sqrt(do)                        # PyG scale uses the true head dim
        layer_params.append(p)
        scales.append(sc)
        fused_params.append(fuse_layer_params(p, sc, in_pad=ip, out_pad=op))

    out = base_classifier_forward(x, adj, fused_params, out_dim)
    out = jax.block_until_ready(out)

    assert out.shape == (num_nodes, out_dim), out.shape
    assert bool(jnp.all(jnp.isfinite(out)))

    # Validate the fused bf16 kernel against the f32 reference (loose tolerance for
    # bf16 matmuls + approx reciprocal accumulated over 4 layers).
    ref = reference_forward(x, adj, layer_params, scales)
    max_err = float(jnp.max(jnp.abs(out - ref)))
    ref_scale = float(jnp.max(jnp.abs(ref)))
    assert max_err <= 0.05 * ref_scale + 0.02, (max_err, ref_scale)

    print("KERNEL_OK")
</pallas_src>

<mosaic_0001>
module attributes {stable_mosaic.version = 11 : i64} {
  func.func @_fused_classifier_kernel(%arg0: memref<16x64xf32, #tpu.memory_space<vmem>>, %arg1: memref<16x16xf32, #tpu.memory_space<vmem>>, %arg2: memref<1x512xf32, #tpu.memory_space<vmem>>, %arg3: memref<1x2048xf32, #tpu.memory_space<vmem>>, %arg4: memref<1x2048xf32, #tpu.memory_space<vmem>>, %arg5: memref<1x512xf32, #tpu.memory_space<vmem>>, %arg6: memref<64x512xbf16, #tpu.memory_space<any>>, %arg7: memref<128x2048xbf16, #tpu.memory_space<any>>, %arg8: memref<512x2048xbf16, #tpu.memory_space<any>>, %arg9: memref<512x512xbf16, #tpu.memory_space<any>>, %arg10: memref<16x128xf32, #tpu.memory_space<vmem>>, %arg11: memref<64x512xbf16, #tpu.memory_space<vmem>>, %arg12: memref<128x2048xbf16, #tpu.memory_space<vmem>>, %arg13: memref<512x2048xbf16, #tpu.memory_space<vmem>>, %arg14: memref<512x512xbf16, #tpu.memory_space<vmem>>, %arg15: memref<4x!tpu.dma_semaphore, #tpu.memory_space<semaphore_mem>>) attributes {dimension_semantics = [], scalar_prefetch = 0 : i64, scratch_operands = 5 : i64, tpu.core_type = #tpu.core_type<tc>} {
    %c0_i32 = arith.constant 0 : i32
    %0 = tpu.memref_slice %arg15[%c0_i32] : memref<4x!tpu.dma_semaphore, #tpu.memory_space<semaphore_mem>> -> memref<1x!tpu.dma_semaphore, #tpu.memory_space<semaphore_mem>>
    %1 = tpu.memref_squeeze %0 : memref<1x!tpu.dma_semaphore, #tpu.memory_space<semaphore_mem>> -> memref<!tpu.dma_semaphore, #tpu.memory_space<semaphore_mem>>
    tpu.enqueue_dma source(%arg6 : memref<64x512xbf16, #tpu.memory_space<any>>) target(%arg11 : memref<64x512xbf16, #tpu.memory_space<vmem>>) target_semaphore(%1 : memref<!tpu.dma_semaphore, #tpu.memory_space<semaphore_mem>>)
    %c1_i32 = arith.constant 1 : i32
    %2 = tpu.memref_slice %arg15[%c1_i32] : memref<4x!tpu.dma_semaphore, #tpu.memory_space<semaphore_mem>> -> memref<1x!tpu.dma_semaphore, #tpu.memory_space<semaphore_mem>>
    %3 = tpu.memref_squeeze %2 : memref<1x!tpu.dma_semaphore, #tpu.memory_space<semaphore_mem>> -> memref<!tpu.dma_semaphore, #tpu.memory_space<semaphore_mem>>
    tpu.enqueue_dma source(%arg7 : memref<128x2048xbf16, #tpu.memory_space<any>>) target(%arg12 : memref<128x2048xbf16, #tpu.memory_space<vmem>>) target_semaphore(%3 : memref<!tpu.dma_semaphore, #tpu.memory_space<semaphore_mem>>)
    %c2_i32 = arith.constant 2 : i32
    %4 = tpu.memref_slice %arg15[%c2_i32] : memref<4x!tpu.dma_semaphore, #tpu.memory_space<semaphore_mem>> -> memref<1x!tpu.dma_semaphore, #tpu.memory_space<semaphore_mem>>
    %5 = tpu.memref_squeeze %4 : memref<1x!tpu.dma_semaphore, #tpu.memory_space<semaphore_mem>> -> memref<!tpu.dma_semaphore, #tpu.memory_space<semaphore_mem>>
    tpu.enqueue_dma source(%arg8 : memref<512x2048xbf16, #tpu.memory_space<any>>) target(%arg13 : memref<512x2048xbf16, #tpu.memory_space<vmem>>) target_semaphore(%5 : memref<!tpu.dma_semaphore, #tpu.memory_space<semaphore_mem>>)
    %c3_i32 = arith.constant 3 : i32
    %6 = tpu.memref_slice %arg15[%c3_i32] : memref<4x!tpu.dma_semaphore, #tpu.memory_space<semaphore_mem>> -> memref<1x!tpu.dma_semaphore, #tpu.memory_space<semaphore_mem>>
    %7 = tpu.memref_squeeze %6 : memref<1x!tpu.dma_semaphore, #tpu.memory_space<semaphore_mem>> -> memref<!tpu.dma_semaphore, #tpu.memory_space<semaphore_mem>>
    tpu.enqueue_dma source(%arg9 : memref<512x512xbf16, #tpu.memory_space<any>>) target(%arg14 : memref<512x512xbf16, #tpu.memory_space<vmem>>) target_semaphore(%7 : memref<!tpu.dma_semaphore, #tpu.memory_space<semaphore_mem>>)
    %c0 = arith.constant 0 : index
    %c0_0 = arith.constant 0 : index
    %8 = vector.load %arg1[%c0, %c0_0] : memref<16x16xf32, #tpu.memory_space<vmem>>, vector<16x16xf32>
    %c0_1 = arith.constant 0 : index
    %c0_2 = arith.constant 0 : index
    %9 = vector.load %arg0[%c0_1, %c0_2] : memref<16x64xf32, #tpu.memory_space<vmem>>, vector<16x64xf32>
    %10 = arith.truncf %9 : vector<16x64xf32> to vector<16x64xbf16>
    %c0_i32_3 = arith.constant 0 : i32
    %11 = tpu.memref_slice %arg15[%c0_i32_3] : memref<4x!tpu.dma_semaphore, #tpu.memory_space<semaphore_mem>> -> memref<1x!tpu.dma_semaphore, #tpu.memory_space<semaphore_mem>>
    %12 = tpu.memref_squeeze %11 : memref<1x!tpu.dma_semaphore, #tpu.memory_space<semaphore_mem>> -> memref<!tpu.dma_semaphore, #tpu.memory_space<semaphore_mem>>
    tpu.wait_dma2 semaphore(%12 : memref<!tpu.dma_semaphore, #tpu.memory_space<semaphore_mem>>) src(%arg6 : memref<64x512xbf16, #tpu.memory_space<any>>) dst(%arg11 : memref<64x512xbf16, #tpu.memory_space<vmem>>)
    %c0_4 = arith.constant 0 : index
    %c0_5 = arith.constant 0 : index
    %13 = vector.load %arg11[%c0_4, %c0_5] : memref<64x512xbf16, #tpu.memory_space<vmem>>, vector<64x512xbf16>
    %c0_6 = arith.constant 0 : index
    %c0_7 = arith.constant 0 : index
    %14 = vector.load %arg2[%c0_6, %c0_7] : memref<1x512xf32, #tpu.memory_space<vmem>>, vector<1x512xf32>
    %cst = arith.constant dense<0.000000e+00> : vector<16x512xf32>
    %15 = tpu.matmul %10, %13, %cst {dimension_numbers = #tpu.dot_dimension_numbers<[1], [0], [0], [1], [0, 0, 1, 1], [], []>} : vector<16x64xbf16>, vector<64x512xbf16>, vector<16x512xf32> -> vector<16x512xf32>
    %16 = vector.broadcast %14 : vector<1x512xf32> to vector<16x512xf32>
    %17 = arith.addf %15, %16 : vector<16x512xf32>
    %18 = vector.extract_strided_slice %17 {offsets = [0, 0], sizes = [16, 128], strides = [1, 1]} : vector<16x512xf32> to vector<16x128xf32>
    %19 = vector.extract_strided_slice %17 {offsets = [0, 128], sizes = [16, 128], strides = [1, 1]} : vector<16x512xf32> to vector<16x128xf32>
    %20 = vector.extract_strided_slice %17 {offsets = [0, 256], sizes = [16, 128], strides = [1, 1]} : vector<16x512xf32> to vector<16x128xf32>
    %21 = vector.extract_strided_slice %17 {offsets = [0, 384], sizes = [16, 128], strides = [1, 1]} : vector<16x512xf32> to vector<16x128xf32>
    %22 = arith.truncf %18 : vector<16x128xf32> to vector<16x128xbf16>
    %23 = arith.truncf %19 : vector<16x128xf32> to vector<16x128xbf16>
    %cst_8 = arith.constant dense<0.000000e+00> : vector<16x16xf32>
    %24 = tpu.matmul %22, %23, %cst_8 {dimension_numbers = #tpu.dot_dimension_numbers<[1], [1], [0], [0], [0, 0, 1, 0], [], []>} : vector<16x128xbf16>, vector<16x128xbf16>, vector<16x16xf32> -> vector<16x16xf32>
    %cst_9 = arith.constant 0.000000e+00 : f32
    %25 = vector.broadcast %cst_9 : f32 to vector<16x16xf32>
    %26 = arith.cmpf ogt, %8, %25 : vector<16x16xf32>
    %cst_10 = arith.constant -1.000000e+30 : f32
    %27 = vector.broadcast %cst_10 : f32 to vector<16x16xf32>
    %28 = arith.select %26, %24, %27 : vector<16x16xi1>, vector<16x16xf32>
    %cst_11 = arith.constant dense<0xFF800000> : vector<16xf32>
    %29 = vector.multi_reduction <maximumf>, %28, %cst_11 [1] : vector<16x16xf32> to vector<16xf32>
    %30 = vector.shape_cast %29 : vector<16xf32> to vector<16x1xf32>
    %31 = vector.broadcast %30 : vector<16x1xf32> to vector<16x16xf32>
    %32 = arith.subf %28, %31 : vector<16x16xf32>
    %33 = math.exp %32 : vector<16x16xf32>
    %34 = arith.mulf %33, %8 : vector<16x16xf32>
    %cst_12 = arith.constant dense<0.000000e+00> : vector<16xf32>
    %35 = vector.multi_reduction <add>, %34, %cst_12 [1] : vector<16x16xf32> to vector<16xf32>
    %36 = vector.shape_cast %35 : vector<16xf32> to vector<16x1xf32>
    %cst_13 = arith.constant 9.99999968E-21 : f32
    %37 = vector.broadcast %cst_13 : f32 to vector<16x1xf32>
    %38 = arith.maximumf %36, %37 : vector<16x1xf32>
    %39 = tpu.reciprocal %38 {approx = true} : vector<16x1xf32> -> vector<16x1xf32>
    %40 = vector.broadcast %39 : vector<16x1xf32> to vector<16x16xf32>
    %41 = arith.mulf %34, %40 : vector<16x16xf32>
    %42 = arith.truncf %41 : vector<16x16xf32> to vector<16x16xbf16>
    %43 = arith.truncf %20 : vector<16x128xf32> to vector<16x128xbf16>
    %cst_14 = arith.constant dense<0.000000e+00> : vector<16x128xf32>
    %44 = tpu.matmul %42, %43, %cst_14 {dimension_numbers = #tpu.dot_dimension_numbers<[1], [0], [0], [1], [0, 0, 1, 1], [], []>} : vector<16x16xbf16>, vector<16x128xbf16>, vector<16x128xf32> -> vector<16x128xf32>
    %45 = arith.addf %44, %21 : vector<16x128xf32>
    %cst_15 = arith.constant 0.000000e+00 : f32
    %46 = vector.broadcast %cst_15 : f32 to vector<16x128xf32>
    %47 = arith.maximumf %45, %46 : vector<16x128xf32>
    %48 = arith.truncf %47 : vector<16x128xf32> to vector<16x128xbf16>
    %c1_i32_16 = arith.constant 1 : i32
    %49 = tpu.memref_slice %arg15[%c1_i32_16] : memref<4x!tpu.dma_semaphore, #tpu.memory_space<semaphore_mem>> -> memref<1x!tpu.dma_semaphore, #tpu.memory_space<semaphore_mem>>
    %50 = tpu.memref_squeeze %49 : memref<1x!tpu.dma_semaphore, #tpu.memory_space<semaphore_mem>> -> memref<!tpu.dma_semaphore, #tpu.memory_space<semaphore_mem>>
    tpu.wait_dma2 semaphore(%50 : memref<!tpu.dma_semaphore, #tpu.memory_space<semaphore_mem>>) src(%arg7 : memref<128x2048xbf16, #tpu.memory_space<any>>) dst(%arg12 : memref<128x2048xbf16, #tpu.memory_space<vmem>>)
    %c0_17 = arith.constant 0 : index
    %c0_18 = arith.constant 0 : index
    %51 = vector.load %arg12[%c0_17, %c0_18] : memref<128x2048xbf16, #tpu.memory_space<vmem>>, vector<128x2048xbf16>
    %c0_19 = arith.constant 0 : index
    %c0_20 = arith.constant 0 : index
    %52 = vector.load %arg3[%c0_19, %c0_20] : memref<1x2048xf32, #tpu.memory_space<vmem>>, vector<1x2048xf32>
    %cst_21 = arith.constant dense<0.000000e+00> : vector<16x2048xf32>
    %53 = tpu.matmul %48, %51, %cst_21 {dimension_numbers = #tpu.dot_dimension_numbers<[1], [0], [0], [1], [0, 0, 1, 1], [], []>} : vector<16x128xbf16>, vector<128x2048xbf16>, vector<16x2048xf32> -> vector<16x2048xf32>
    %54 = vector.broadcast %52 : vector<1x2048xf32> to vector<16x2048xf32>
    %55 = arith.addf %53, %54 : vector<16x2048xf32>
    %56 = vector.extract_strided_slice %55 {offsets = [0, 0], sizes = [16, 512], strides = [1, 1]} : vector<16x2048xf32> to vector<16x512xf32>
    %57 = vector.extract_strided_slice %55 {offsets = [0, 512], sizes = [16, 512], strides = [1, 1]} : vector<16x2048xf32> to vector<16x512xf32>
    %58 = vector.extract_strided_slice %55 {offsets = [0, 1024], sizes = [16, 512], strides = [1, 1]} : vector<16x2048xf32> to vector<16x512xf32>
    %59 = vector.extract_strided_slice %55 {offsets = [0, 1536], sizes = [16, 512], strides = [1, 1]} : vector<16x2048xf32> to vector<16x512xf32>
    %60 = arith.truncf %56 : vector<16x512xf32> to vector<16x512xbf16>
    %61 = arith.truncf %57 : vector<16x512xf32> to vector<16x512xbf16>
    %cst_22 = arith.constant dense<0.000000e+00> : vector<16x16xf32>
    %62 = tpu.matmul %60, %61, %cst_22 {dimension_numbers = #tpu.dot_dimension_numbers<[1], [1], [0], [0], [0, 0, 1, 0], [], []>} : vector<16x512xbf16>, vector<16x512xbf16>, vector<16x16xf32> -> vector<16x16xf32>
    %cst_23 = arith.constant 0.000000e+00 : f32
    %63 = vector.broadcast %cst_23 : f32 to vector<16x16xf32>
    %64 = arith.cmpf ogt, %8, %63 : vector<16x16xf32>
    %cst_24 = arith.constant -1.000000e+30 : f32
    %65 = vector.broadcast %cst_24 : f32 to vector<16x16xf32>
    %66 = arith.select %64, %62, %65 : vector<16x16xi1>, vector<16x16xf32>
    %cst_25 = arith.constant dense<0xFF800000> : vector<16xf32>
    %67 = vector.multi_reduction <maximumf>, %66, %cst_25 [1] : vector<16x16xf32> to vector<16xf32>
    %68 = vector.shape_cast %67 : vector<16xf32> to vector<16x1xf32>
    %69 = vector.broadcast %68 : vector<16x1xf32> to vector<16x16xf32>
    %70 = arith.subf %66, %69 : vector<16x16xf32>
    %71 = math.exp %70 : vector<16x16xf32>
    %72 = arith.mulf %71, %8 : vector<16x16xf32>
    %cst_26 = arith.constant dense<0.000000e+00> : vector<16xf32>
    %73 = vector.multi_reduction <add>, %72, %cst_26 [1] : vector<16x16xf32> to vector<16xf32>
    %74 = vector.shape_cast %73 : vector<16xf32> to vector<16x1xf32>
    %cst_27 = arith.constant 9.99999968E-21 : f32
    %75 = vector.broadcast %cst_27 : f32 to vector<16x1xf32>
    %76 = arith.maximumf %74, %75 : vector<16x1xf32>
    %77 = tpu.reciprocal %76 {approx = true} : vector<16x1xf32> -> vector<16x1xf32>
    %78 = vector.broadcast %77 : vector<16x1xf32> to vector<16x16xf32>
    %79 = arith.mulf %72, %78 : vector<16x16xf32>
    %80 = arith.truncf %79 : vector<16x16xf32> to vector<16x16xbf16>
    %81 = arith.truncf %58 : vector<16x512xf32> to vector<16x512xbf16>
    %cst_28 = arith.constant dense<0.000000e+00> : vector<16x512xf32>
    %82 = tpu.matmul %80, %81, %cst_28 {dimension_numbers = #tpu.dot_dimension_numbers<[1], [0], [0], [1], [0, 0, 1, 1], [], []>} : vector<16x16xbf16>, vector<16x512xbf16>, vector<16x512xf32> -> vector<16x512xf32>
    %83 = arith.addf %82, %59 : vector<16x512xf32>
    %cst_29 = arith.constant 0.000000e+00 : f32
    %84 = vector.broadcast %cst_29 : f32 to vector<16x512xf32>
    %85 = arith.maximumf %83, %84 : vector<16x512xf32>
    %86 = arith.truncf %85 : vector<16x512xf32> to vector<16x512xbf16>
    %c2_i32_30 = arith.constant 2 : i32
    %87 = tpu.memref_slice %arg15[%c2_i32_30] : memref<4x!tpu.dma_semaphore, #tpu.memory_space<semaphore_mem>> -> memref<1x!tpu.dma_semaphore, #tpu.memory_space<semaphore_mem>>
    %88 = tpu.memref_squeeze %87 : memref<1x!tpu.dma_semaphore, #tpu.memory_space<semaphore_mem>> -> memref<!tpu.dma_semaphore, #tpu.memory_space<semaphore_mem>>
    tpu.wait_dma2 semaphore(%88 : memref<!tpu.dma_semaphore, #tpu.memory_space<semaphore_mem>>) src(%arg8 : memref<512x2048xbf16, #tpu.memory_space<any>>) dst(%arg13 : memref<512x2048xbf16, #tpu.memory_space<vmem>>)
    %c0_31 = arith.constant 0 : index
    %c0_32 = arith.constant 0 : index
    %89 = vector.load %arg13[%c0_31, %c0_32] : memref<512x2048xbf16, #tpu.memory_space<vmem>>, vector<512x2048xbf16>
    %c0_33 = arith.constant 0 : index
    %c0_34 = arith.constant 0 : index
    %90 = vector.load %arg4[%c0_33, %c0_34] : memref<1x2048xf32, #tpu.memory_space<vmem>>, vector<1x2048xf32>
    %cst_35 = arith.constant dense<0.000000e+00> : vector<16x2048xf32>
    %91 = tpu.matmul %86, %89, %cst_35 {dimension_numbers = #tpu.dot_dimension_numbers<[1], [0], [0], [1], [0, 0, 1, 1], [], []>} : vector<16x512xbf16>, vector<512x2048xbf16>, vector<16x2048xf32> -> vector<16x2048xf32>
    %92 = vector.broadcast %90 : vector<1x2048xf32> to vector<16x2048xf32>
    %93 = arith.addf %91, %92 : vector<16x2048xf32>
    %94 = vector.extract_strided_slice %93 {offsets = [0, 0], sizes = [16, 512], strides = [1, 1]} : vector<16x2048xf32> to vector<16x512xf32>
    %95 = vector.extract_strided_slice %93 {offsets = [0, 512], sizes = [16, 512], strides = [1, 1]} : vector<16x2048xf32> to vector<16x512xf32>
    %96 = vector.extract_strided_slice %93 {offsets = [0, 1024], sizes = [16, 512], strides = [1, 1]} : vector<16x2048xf32> to vector<16x512xf32>
    %97 = vector.extract_strided_slice %93 {offsets = [0, 1536], sizes = [16, 512], strides = [1, 1]} : vector<16x2048xf32> to vector<16x512xf32>
    %98 = arith.truncf %94 : vector<16x512xf32> to vector<16x512xbf16>
    %99 = arith.truncf %95 : vector<16x512xf32> to vector<16x512xbf16>
    %cst_36 = arith.constant dense<0.000000e+00> : vector<16x16xf32>
    %100 = tpu.matmul %98, %99, %cst_36 {dimension_numbers = #tpu.dot_dimension_numbers<[1], [1], [0], [0], [0, 0, 1, 0], [], []>} : vector<16x512xbf16>, vector<16x512xbf16>, vector<16x16xf32> -> vector<16x16xf32>
    %cst_37 = arith.constant 0.000000e+00 : f32
    %101 = vector.broadcast %cst_37 : f32 to vector<16x16xf32>
    %102 = arith.cmpf ogt, %8, %101 : vector<16x16xf32>
    %cst_38 = arith.constant -1.000000e+30 : f32
    %103 = vector.broadcast %cst_38 : f32 to vector<16x16xf32>
    %104 = arith.select %102, %100, %103 : vector<16x16xi1>, vector<16x16xf32>
    %cst_39 = arith.constant dense<0xFF800000> : vector<16xf32>
    %105 = vector.multi_reduction <maximumf>, %104, %cst_39 [1] : vector<16x16xf32> to vector<16xf32>
    %106 = vector.shape_cast %105 : vector<16xf32> to vector<16x1xf32>
    %107 = vector.broadcast %106 : vector<16x1xf32> to vector<16x16xf32>
    %108 = arith.subf %104, %107 : vector<16x16xf32>
    %109 = math.exp %108 : vector<16x16xf32>
    %110 = arith.mulf %109, %8 : vector<16x16xf32>
    %cst_40 = arith.constant dense<0.000000e+00> : vector<16xf32>
    %111 = vector.multi_reduction <add>, %110, %cst_40 [1] : vector<16x16xf32> to vector<16xf32>
    %112 = vector.shape_cast %111 : vector<16xf32> to vector<16x1xf32>
    %cst_41 = arith.constant 9.99999968E-21 : f32
    %113 = vector.broadcast %cst_41 : f32 to vector<16x1xf32>
    %114 = arith.maximumf %112, %113 : vector<16x1xf32>
    %115 = tpu.reciprocal %114 {approx = true} : vector<16x1xf32> -> vector<16x1xf32>
    %116 = vector.broadcast %115 : vector<16x1xf32> to vector<16x16xf32>
    %117 = arith.mulf %110, %116 : vector<16x16xf32>
    %118 = arith.truncf %117 : vector<16x16xf32> to vector<16x16xbf16>
    %119 = arith.truncf %96 : vector<16x512xf32> to vector<16x512xbf16>
    %cst_42 = arith.constant dense<0.000000e+00> : vector<16x512xf32>
    %120 = tpu.matmul %118, %119, %cst_42 {dimension_numbers = #tpu.dot_dimension_numbers<[1], [0], [0], [1], [0, 0, 1, 1], [], []>} : vector<16x16xbf16>, vector<16x512xbf16>, vector<16x512xf32> -> vector<16x512xf32>
    %121 = arith.addf %120, %97 : vector<16x512xf32>
    %cst_43 = arith.constant 0.000000e+00 : f32
    %122 = vector.broadcast %cst_43 : f32 to vector<16x512xf32>
    %123 = arith.maximumf %121, %122 : vector<16x512xf32>
    %124 = arith.truncf %123 : vector<16x512xf32> to vector<16x512xbf16>
    %c3_i32_44 = arith.constant 3 : i32
    %125 = tpu.memref_slice %arg15[%c3_i32_44] : memref<4x!tpu.dma_semaphore, #tpu.memory_space<semaphore_mem>> -> memref<1x!tpu.dma_semaphore, #tpu.memory_space<semaphore_mem>>
    %126 = tpu.memref_squeeze %125 : memref<1x!tpu.dma_semaphore, #tpu.memory_space<semaphore_mem>> -> memref<!tpu.dma_semaphore, #tpu.memory_space<semaphore_mem>>
    tpu.wait_dma2 semaphore(%126 : memref<!tpu.dma_semaphore, #tpu.memory_space<semaphore_mem>>) src(%arg9 : memref<512x512xbf16, #tpu.memory_space<any>>) dst(%arg14 : memref<512x512xbf16, #tpu.memory_space<vmem>>)
    %c0_45 = arith.constant 0 : index
    %c0_46 = arith.constant 0 : index
    %127 = vector.load %arg14[%c0_45, %c0_46] : memref<512x512xbf16, #tpu.memory_space<vmem>>, vector<512x512xbf16>
    %c0_47 = arith.constant 0 : index
    %c0_48 = arith.constant 0 : index
    %128 = vector.load %arg5[%c0_47, %c0_48] : memref<1x512xf32, #tpu.memory_space<vmem>>, vector<1x512xf32>
    %cst_49 = arith.constant dense<0.000000e+00> : vector<16x512xf32>
    %129 = tpu.matmul %124, %127, %cst_49 {dimension_numbers = #tpu.dot_dimension_numbers<[1], [0], [0], [1], [0, 0, 1, 1], [], []>} : vector<16x512xbf16>, vector<512x512xbf16>, vector<16x512xf32> -> vector<16x512xf32>
    %130 = vector.broadcast %128 : vector<1x512xf32> to vector<16x512xf32>
    %131 = arith.addf %129, %130 : vector<16x512xf32>
    %132 = vector.extract_strided_slice %131 {offsets = [0, 0], sizes = [16, 128], strides = [1, 1]} : vector<16x512xf32> to vector<16x128xf32>
    %133 = vector.extract_strided_slice %131 {offsets = [0, 128], sizes = [16, 128], strides = [1, 1]} : vector<16x512xf32> to vector<16x128xf32>
    %134 = vector.extract_strided_slice %131 {offsets = [0, 256], sizes = [16, 128], strides = [1, 1]} : vector<16x512xf32> to vector<16x128xf32>
    %135 = vector.extract_strided_slice %131 {offsets = [0, 384], sizes = [16, 128], strides = [1, 1]} : vector<16x512xf32> to vector<16x128xf32>
    %136 = arith.truncf %132 : vector<16x128xf32> to vector<16x128xbf16>
    %137 = arith.truncf %133 : vector<16x128xf32> to vector<16x128xbf16>
    %cst_50 = arith.constant dense<0.000000e+00> : vector<16x16xf32>
    %138 = tpu.matmul %136, %137, %cst_50 {dimension_numbers = #tpu.dot_dimension_numbers<[1], [1], [0], [0], [0, 0, 1, 0], [], []>} : vector<16x128xbf16>, vector<16x128xbf16>, vector<16x16xf32> -> vector<16x16xf32>
    %cst_51 = arith.constant 0.000000e+00 : f32
    %139 = vector.broadcast %cst_51 : f32 to vector<16x16xf32>
    %140 = arith.cmpf ogt, %8, %139 : vector<16x16xf32>
    %cst_52 = arith.constant -1.000000e+30 : f32
    %141 = vector.broadcast %cst_52 : f32 to vector<16x16xf32>
    %142 = arith.select %140, %138, %141 : vector<16x16xi1>, vector<16x16xf32>
    %cst_53 = arith.constant dense<0xFF800000> : vector<16xf32>
    %143 = vector.multi_reduction <maximumf>, %142, %cst_53 [1] : vector<16x16xf32> to vector<16xf32>
    %144 = vector.shape_cast %143 : vector<16xf32> to vector<16x1xf32>
    %145 = vector.broadcast %144 : vector<16x1xf32> to vector<16x16xf32>
    %146 = arith.subf %142, %145 : vector<16x16xf32>
    %147 = math.exp %146 : vector<16x16xf32>
    %148 = arith.mulf %147, %8 : vector<16x16xf32>
    %cst_54 = arith.constant dense<0.000000e+00> : vector<16xf32>
    %149 = vector.multi_reduction <add>, %148, %cst_54 [1] : vector<16x16xf32> to vector<16xf32>
    %150 = vector.shape_cast %149 : vector<16xf32> to vector<16x1xf32>
    %cst_55 = arith.constant 9.99999968E-21 : f32
    %151 = vector.broadcast %cst_55 : f32 to vector<16x1xf32>
    %152 = arith.maximumf %150, %151 : vector<16x1xf32>
    %153 = tpu.reciprocal %152 {approx = true} : vector<16x1xf32> -> vector<16x1xf32>
    %154 = vector.broadcast %153 : vector<16x1xf32> to vector<16x16xf32>
    %155 = arith.mulf %148, %154 : vector<16x16xf32>
    %156 = arith.truncf %155 : vector<16x16xf32> to vector<16x16xbf16>
    %157 = arith.truncf %134 : vector<16x128xf32> to vector<16x128xbf16>
    %cst_56 = arith.constant dense<0.000000e+00> : vector<16x128xf32>
    %158 = tpu.matmul %156, %157, %cst_56 {dimension_numbers = #tpu.dot_dimension_numbers<[1], [0], [0], [1], [0, 0, 1, 1], [], []>} : vector<16x16xbf16>, vector<16x128xbf16>, vector<16x128xf32> -> vector<16x128xf32>
    %159 = arith.addf %158, %135 : vector<16x128xf32>
    %cst_57 = arith.constant 0.000000e+00 : f32
    %160 = vector.broadcast %cst_57 : f32 to vector<16x128xf32>
    %161 = arith.maximumf %159, %160 : vector<16x128xf32>
    %c0_58 = arith.constant 0 : index
    %c0_59 = arith.constant 0 : index
    %162 = vector.load %arg10[%c0_58, %c0_59] : memref<16x128xf32, #tpu.memory_space<vmem>>, vector<16x128xf32>
    tpu.vector_store %arg10[%c0_58, %c0_59], %161 {strides = array<i32>} : memref<16x128xf32, #tpu.memory_space<vmem>>, vector<16x128xf32>,
    return
  }
}

</mosaic_0001>

<bundles_post_ra>
// kernel: tpu_custom_call.1
= control target key start
LH: loop header
LB: loop body
LE: loop exit
PB: predicated region body
PF: predicated region fallthrough
CT: control target
= control target key end

     0   :  { %15 = vsyncpa [#allocation8], 0  ;;  %s4252_s0 = inlined_call_operand.hbm [shape: f32[16,64], index: 0, kind: input, shape index: {}]   ;;  %s4253_s1 = inlined_call_operand.hbm [shape: f32[16,16], index: 1, kind: input, shape index: {}]   ;;  %s4254_s2 = inlined_call_operand.hbm [shape: f32[1,512], index: 2, kind: input, shape index: {}]   ;;  %s4255_s3 = inlined_call_operand.hbm [shape: f32[1,2048], index: 3, kind: input, shape index: {}]   ;;  %s4256_s4 = inlined_call_operand.hbm [shape: f32[1,2048], index: 4, kind: input, shape index: {}]   ;;  %s4257_s5 = inlined_call_operand.hbm [shape: f32[1,512], index: 5, kind: input, shape index: {}]   ;;  %s4258_s6 = inlined_call_operand.hbm [shape: bf16[64,512], index: 6, kind: input, shape index: {}]   ;;  %s4259_s7 = inlined_call_operand.hbm [shape: bf16[128,2048], index: 7, kind: input, shape index: {}]   ;;  %s4260_s8 = inlined_call_operand.hbm [shape: bf16[512,2048], index: 8, kind: input, shape index: {}]   ;;  %s4261_s9 = inlined_call_operand.hbm [shape: bf16[512,512], index: 9, kind: input, shape index: {}]   ;;  %s4262_s10 = inlined_call_operand.hbm [shape: f32[16,128], index: 10, kind: output, shape index: {}]  }
   0x1   :  { %16 = vsyncpa [#allocation11], 0 }
   0x2   :  { %17 = vsyncpa [#allocation14], 0 }
   0x3   :  { %18 = vsyncpa [#allocation17], 0 }
   0x4   :  { %19 = vsyncpa [#allocation9], 0  ;;  %s3692_s13 = smov [#allocation10]   ;;  %s3693_s15 = smov [#allocation13]  }
   0x5   :  { %s37_s14 = sshll.u32 %s3692_s13, 4  ;;  %s60_s16 = sshll.u32 %s3693_s15, 4  ;;  %s38_s14 = int_to_ptr.vmem [resolvable:$true] %s37_s14  ;;  %s61_s16 = int_to_ptr.vmem [resolvable:$true] %s60_s16 }
   0x6   :  { %s3520_s19 = scalar_lea.hbm %s4253_s1, 256 }
   0x7   :  { %p3521_p0 = scmp.ne.s32.totalorder %s4253_s1, %s3520_s19  ;;  %p3524_p1 = scmp.lt.u32.totalorder %s3520_s19, %s4253_s1 }
   0x9   :  { %p3526_p2 = pnand %p3524_p1, %p3521_p0 }
   0xb   :  { %3529 = shalt.err (!%p3526_p2)
}
   0xc   :  { %s3530_s24 = scalar_lea.vmem %s38_s14, 256  ;;  %p3535_p4 = scmp.lt.s32.totalorder %s38_s14, %s38_s14 }
   0xd   :  { %p3531_p3 = scmp.ne.s32.totalorder %s38_s14, %s3530_s24  ;;  %p3536_p5 = scmp.lt.s32.totalorder %s3530_s24, %s3530_s24 }
   0xf   :  { %p3537_p6 = por %p3536_p5, %p3535_p4 }
  0x11   :  { %p3538_p7 = pnand %p3537_p6, %p3531_p3 }
  0x13   :  { %3541 = shalt.err (!%p3538_p7)
}
  0x14   :  { %s3694_s25 = smov 128   ;;  %s3695_s26 = smov 8  }
  0x15   :  { %43 = dma.hbm_to_vmem [thread:$0]  %s4253_s1, 256, %s38_s14, [#allocation11], %s3694_s25, %s3694_s25, %s3695_s26  }
  0x16   :  { %s3542_s11 = scalar_lea.hbm %s4255_s3, 256 }
  0x17   :  { %p3543_p8 = scmp.ne.s32.totalorder %s4255_s3, %s3542_s11  ;;  %p3546_p9 = scmp.lt.u32.totalorder %s3542_s11, %s4255_s3 }
  0x19   :  { %p3548_p10 = pnand %p3546_p9, %p3543_p8 }
  0x1b   :  { %3551 = shalt.err (!%p3548_p10)
}
  0x1c   :  { %s3552_s18 = scalar_lea.vmem %s61_s16, 256  ;;  %p3557_p12 = scmp.lt.s32.totalorder %s61_s16, %s61_s16 }
  0x1d   :  { %p3553_p11 = scmp.ne.s32.totalorder %s61_s16, %s3552_s18  ;;  %p3558_p13 = scmp.lt.s32.totalorder %s3552_s18, %s3552_s18 }
  0x1f   :  { %p3559_p0 = por %p3558_p13, %p3557_p12 }
  0x21   :  { %p3560_p1 = pnand %p3559_p0, %p3553_p11 }
  0x23   :  { %3563 = shalt.err (!%p3560_p1)
}
  0x24   :  { %63 = dma.hbm_to_vmem [thread:$0]  %s4255_s3, 256, %s61_s16, [#allocation14]  }
  0x25   :  { %s3696_s19 = smov [#allocation7]   ;;  %s3697_s21 = smov [#allocation12]  }
  0x26   :  { %s25_s20 = sshll.u32 %s3696_s19, 4  ;;  %s50_s22 = sshll.u32 %s3697_s21, 4  ;;  %s26_s20 = int_to_ptr.vmem [resolvable:$true] %s25_s20  ;;  %s51_s22 = int_to_ptr.vmem [resolvable:$true] %s50_s22 }
  0x27   :  { %s3564_s27 = scalar_lea.hbm %s4252_s0, 256 }
  0x28   :  { %p3565_p2 = scmp.ne.s32.totalorder %s4252_s0, %s3564_s27  ;;  %p3568_p3 = scmp.lt.u32.totalorder %s3564_s27, %s4252_s0 }
  0x2a   :  { %p3570_p4 = pnand %p3568_p3, %p3565_p2 }
  0x2c   :  { %3573 = shalt.err (!%p3570_p4)
}
  0x2d   :  { %s3574_s3 = scalar_lea.vmem %s26_s20, 256  ;;  %p3579_p6 = scmp.lt.s32.totalorder %s26_s20, %s26_s20 }
  0x2e   :  { %p3575_p5 = scmp.ne.s32.totalorder %s26_s20, %s3574_s3  ;;  %p3580_p7 = scmp.lt.s32.totalorder %s3574_s3, %s3574_s3 }
  0x30   :  { %p3581_p8 = por %p3580_p7, %p3579_p6 }
  0x32   :  { %p3582_p9 = pnand %p3581_p8, %p3575_p5 }
  0x34   :  { %3585 = shalt.err (!%p3582_p9)
}
  0x35   :  { %31 = dma.hbm_to_vmem [thread:$0]  %s4252_s0, 256, %s26_s20, [#allocation8], %s3694_s25, %s3694_s25, %s3695_s26  }
  0x36   :  { %s3586_s17 = scalar_lea.hbm %s4254_s2, 64 }
  0x37   :  { %p3587_p10 = scmp.ne.s32.totalorder %s4254_s2, %s3586_s17  ;;  %p3590_p11 = scmp.lt.u32.totalorder %s3586_s17, %s4254_s2 }
  0x39   :  { %p3592_p12 = pnand %p3590_p11, %p3587_p10 }
  0x3b   :  { %3595 = shalt.err (!%p3592_p12)
}
  0x3c   :  { %s3596_s21 = scalar_lea.vmem %s51_s22, 64  ;;  %p3601_p0 = scmp.lt.s32.totalorder %s51_s22, %s51_s22 }
  0x3d   :  { %p3597_p13 = scmp.ne.s32.totalorder %s51_s22, %s3596_s21  ;;  %p3602_p1 = scmp.lt.s32.totalorder %s3596_s21, %s3596_s21 }
  0x3f   :  { %p3603_p2 = por %p3602_p1, %p3601_p0 }
  0x41   :  { %p3604_p3 = pnand %p3603_p2, %p3597_p13 }
  0x43   :  { %3607 = shalt.err (!%p3604_p3)
}
  0x44   :  { %53 = dma.hbm_to_vmem [thread:$0]  %s4254_s2, 64, %s51_s22, [#allocation11]  }
  0x45   :  { %s3698_s23 = smov [#allocation15]   ;;  %s3699_s27 = smov [#allocation16]  }
  0x46   :  { %s70_s24 = sshll.u32 %s3698_s23, 4  ;;  %s80_s28 = sshll.u32 %s3699_s27, 4  ;;  %s71_s24 = int_to_ptr.vmem [resolvable:$true] %s70_s24  ;;  %s81_s28 = int_to_ptr.vmem [resolvable:$true] %s80_s28 }
  0x47   :  { %s3608_s11 = scalar_lea.hbm %s4256_s4, 256 }
  0x48   :  { %p3609_p4 = scmp.ne.s32.totalorder %s4256_s4, %s3608_s11  ;;  %p3612_p5 = scmp.lt.u32.totalorder %s3608_s11, %s4256_s4 }
  0x4a   :  { %p3614_p6 = pnand %p3612_p5, %p3609_p4 }
  0x4c   :  { %3617 = shalt.err (!%p3614_p6)
}
  0x4d   :  { %s3618_s2 = scalar_lea.vmem %s71_s24, 256  ;;  %p3623_p8 = scmp.lt.s32.totalorder %s71_s24, %s71_s24 }
  0x4e   :  { %p3619_p7 = scmp.ne.s32.totalorder %s71_s24, %s3618_s2  ;;  %p3624_p9 = scmp.lt.s32.totalorder %s3618_s2, %s3618_s2 }
  0x50   :  { %p3625_p10 = por %p3624_p9, %p3623_p8 }
  0x52   :  { %p3626_p11 = pnand %p3625_p10, %p3619_p7 }
  0x54   :  { %3629 = shalt.err (!%p3626_p11)
}
  0x55   :  { %73 = dma.hbm_to_vmem [thread:$0]  %s4256_s4, 256, %s71_s24, [#allocation14]  }
  0x56   :  { %s3630_s1 = scalar_lea.hbm %s4257_s5, 64 }
  0x57   :  { %p3631_p12 = scmp.ne.s32.totalorder %s4257_s5, %s3630_s1  ;;  %p3634_p13 = scmp.lt.u32.totalorder %s3630_s1, %s4257_s5 }
  0x59   :  { %p3636_p0 = pnand %p3634_p13, %p3631_p12 }
  0x5b   :  { %3639 = shalt.err (!%p3636_p0)
}
  0x5c   :  { %s3640_s20 = scalar_lea.vmem %s81_s28, 64  ;;  %p3645_p2 = scmp.lt.s32.totalorder %s81_s28, %s81_s28 }
  0x5d   :  { %p3641_p1 = scmp.ne.s32.totalorder %s81_s28, %s3640_s20  ;;  %p3646_p3 = scmp.lt.s32.totalorder %s3640_s20, %s3640_s20 }
  0x5f   :  { %p3647_p4 = por %p3646_p3, %p3645_p2 }
  0x61   :  { %p3648_p5 = pnand %p3647_p4, %p3641_p1 }
  0x63   :  { %3651 = shalt.err (!%p3648_p5)
}
  0x64   :  { %83 = dma.hbm_to_vmem [thread:$0]  %s4257_s5, 64, %s81_s28, [#allocation17]  }
  0x65   :  { %3674 = dma.done.wait [#allocation8], 256  }
  0x66   :  { %3675 = vsyncadd [#allocation8], 4294967040 }
  0x67   :  { %3676 = dma.done.wait [#allocation11], 320  }
  0x68   :  { %3677 = vsyncadd [#allocation11], 4294966976 }
  0x69   :  { %3678 = dma.done.wait [#allocation14], 512  }
  0x6a   :  { %3679 = vsyncadd [#allocation14], 4294966784 }
  0x6b   :  { %3680 = dma.done.wait [#allocation17], 64  }
  0x6c   :  { %3681 = vsyncadd [#allocation17], 4294967232  ;;  %s107_s24 = sld [smem:[#allocation0]]   ;;  %s3700_s27 = smov 512  }
  0x6d   :  { %119 = sst [smem:[#allocation20]] %s3700_s27  ;;  %s3701_s29 = smov 4  }
  0x6e   :  { %121 = sst [smem:[#allocation20 + $0x1]] %s3700_s27  ;;  %s3702_s30 = smov 64  }
  0x6f   :  { %123 = sst [smem:[#allocation20 + $0x2]] %s3701_s29  ;;  %s3703_s5 = smov [#allocation2]  }
  0x70   :  { %125 = sst [smem:[#allocation20 + $0x3]] %s3702_s30  ;;  %s115_s28 = sshll.u32 %s3703_s5, 4  ;;  %s116_s28 = int_to_ptr.vmem [resolvable:$true] %s115_s28 }
  0x71   :  { %127 = sst [smem:[#allocation20 + $0x4]] %s3694_s25  ;;  %s3704_s11 = smov 256  }
  0x72   :  { %131 = sst [smem:[#allocation20 + $0x6]] %s3704_s11  ;;  %s3292_s3 = sshll.u32 %s107_s24, 26 }
  0x73   :  { %133 = sst [smem:[#allocation20 + $0x7]] %s3702_s30  ;;  %s3864_s16 = sadd.s32 134217728, %s3292_s3 }
  0x74   :  { %135 = sst [smem:[#allocation20 + $0x8]] %s3701_s29  ;;  %s3705_s12 = smov 2  }
  0x75   :  { %129 = sst [smem:[#allocation20 + $0x5]] %s3705_s12  ;;  %s3706_s13 = smov [#allocation6]  }
  0x76   :  { %s3707_s2 = smov [#allocation19]   ;;  %s3708_s17 = smov 2048  }
  0x77   :  { %137 = dma.general %s4258_s6, 2048, %s116_s28, %s3706_s13, %s3707_s2, [#allocation20], %s3864_s16, 0  }
  0x78   :  { %154 = sst [smem:[#allocation22]] %s3708_s17  ;;  %s3709_s18 = smov 16  }
  0x79   :  { %156 = sst [smem:[#allocation22 + $0x1]] %s3708_s17  ;;  %s3710_s1 = smov [#allocation3]  }
  0x7a   :  { %158 = sst [smem:[#allocation22 + $0x2]] %s3709_s18  ;;  %s150_s14 = sshll.u32 %s3710_s1, 4  ;;  %s151_s14 = int_to_ptr.vmem [resolvable:$true] %s150_s14 }
  0x7b   :  { %160 = sst [smem:[#allocation22 + $0x3]] %s3702_s30  ;;  %s3711_s19 = smov 1024  }
  0x7c   :  { %162 = sst [smem:[#allocation22 + $0x4]] %s3694_s25  ;;  %s3712_s6 = smov [#allocation6 + $0x1]  }
  0x7d   :  { %164 = sst [smem:[#allocation22 + $0x5]] %s3705_s12  ;;  %s3713_s21 = smov [#allocation21]  }
  0x7e   :  { %166 = sst [smem:[#allocation22 + $0x6]] %s3711_s19  ;;  %s3714_s4 = smov [#allocation4]  }
  0x7f   :  { %168 = sst [smem:[#allocation22 + $0x7]] %s3702_s30  ;;  %s185_s23 = sshll.u32 %s3714_s4, 4  ;;  %s186_s23 = int_to_ptr.vmem [resolvable:$true] %s185_s23 }
  0x80   :  { %170 = sst [smem:[#allocation22 + $0x8]] %s3701_s29  ;;  %s3715_s24 = smov [#allocation6 + $0x2]  }
  0x81   :  { %172 = dma.general %s4259_s7, 16384, %s151_s14, %s3712_s6, %s3713_s21, [#allocation22], %s3864_s16, 0  }
  0x82   :  { %189 = sst [smem:[#allocation24]] %s3708_s17  ;;  %s3716_s5 = smov [#allocation23]  }
  0x83   :  { %191 = sst [smem:[#allocation24 + $0x1]] %s3708_s17  ;;  %s3717_s3 = smov [#allocation5]  }
  0x84   :  { %193 = sst [smem:[#allocation24 + $0x2]] %s3709_s18  ;;  %s220_s13 = sshll.u32 %s3717_s3, 4  ;;  %s221_s13 = int_to_ptr.vmem [resolvable:$true] %s220_s13 }
  0x85   :  { %195 = sst [smem:[#allocation24 + $0x3]] %s3702_s30  ;;  %s3719_s2 = smov [#allocation25]  }
  0x86   :  { %197 = sst [smem:[#allocation24 + $0x4]] %s3694_s25 }
  0x87   :  { %199 = sst [smem:[#allocation24 + $0x5]] %s3705_s12 }
  0x88   :  { %201 = sst [smem:[#allocation24 + $0x6]] %s3711_s19 }
  0x89   :  { %203 = sst [smem:[#allocation24 + $0x7]] %s3702_s30 }
  0x8a   :  { %205 = sst [smem:[#allocation24 + $0x8]] %s3701_s29 }
  0x8b   :  { %207 = dma.general %s4260_s8, 65536, %s186_s23, %s3715_s24, %s3716_s5, [#allocation24], %s3864_s16, 0  }
  0x8c   :  { %224 = sst [smem:[#allocation26]] %s3700_s27  ;;  %s3718_s8 = smov [#allocation6 + $0x3]  }
  0x8d   :  { %226 = sst [smem:[#allocation26 + $0x1]] %s3700_s27 }
  0x8e   :  { %228 = sst [smem:[#allocation26 + $0x2]] %s3701_s29 }
  0x8f   :  { %230 = sst [smem:[#allocation26 + $0x3]] %s3702_s30 }
  0x90   :  { %232 = sst [smem:[#allocation26 + $0x4]] %s3694_s25 }
  0x91   :  { %234 = sst [smem:[#allocation26 + $0x5]] %s3705_s12 }
  0x92   :  { %236 = sst [smem:[#allocation26 + $0x6]] %s3704_s11 }
  0x93   :  { %238 = sst [smem:[#allocation26 + $0x7]] %s3702_s30 }
  0x94   :  { %240 = sst [smem:[#allocation26 + $0x8]] %s3701_s29 }
  0x95   :  { %242 = dma.general %s4261_s9, 16384, %s221_s13, %s3718_s8, %s3719_s2, [#allocation26], %s3864_s16, 0  }
  0x96   :  { %v3903_v0 = vld [vmem:[#allocation10] sm:$0xff]  ;;  %v3905_v1 = vld [vmem:[#allocation10 + $0x8] sm:$0xff]  ;;  %v245_v2 = vld [vmem:[#allocation7] sm:$0xff] }
  0x97   :  { %v246_v3 = vld [vmem:[#allocation7 + $0x8] sm:$0xff] }
  0x98   :  { %v3907_v4 = vpack.c.bf16 %v246_v3, %v245_v2 }
  0x99   :  { %3682 = dma.done.wait [#allocation6], 2048 }
  0x9a   :  { %3683 = vsyncadd [#allocation6], 4294965248  ;;  %v3720_v5 = vmov 0   ;;  %v253_v6 = vld [vmem:[#allocation2 + $0x8] sm:$0xff]  ;;  %v252_v7 = vld [vmem:[#allocation2] sm:$0xff]  ;;  %vm290_vm0 = vcmask 523264   ;;  %v270_v15 = vlaneseq }
  0x9b   :  { %326 = vmatprep.mubr.bf16.mxu0 %v3720_v5  ;;  %369 = vmatprep.mubr.bf16.mxu1 %v3720_v5  ;;  %v257_v8 = vld [vmem:[#allocation2 + $0x28] sm:$0xff]  ;;  %v256_v9 = vld [vmem:[#allocation2 + $0x20] sm:$0xff]  ;;  %v3721_v14 = vmov 0.0   ;;  %vm3722_vm1 = vmmov 0   ;;  %v255_v32 = vld [vmem:[#allocation2 + $0x18] sm:$0xff]  ;;  %vm423_vm2 = vcmp.gt.f32.partialorder %v3903_v0, 0.0 }
  0x9c   :  { %294 = vmatprep.subr.bf16.mxu0 %v253_v6  ;;  %v261_v10 = vld [vmem:[#allocation2 + $0x48] sm:$0xff]  ;;  %v260_v11 = vld [vmem:[#allocation2 + $0x40] sm:$0xff]  ;;  %v3916_v16 = vshrl.u32 %v270_v15, 7  ;;  %v254_v33 = vld [vmem:[#allocation2 + $0x10] sm:$0xff]  ;;  %337 = vmatprep.subr.bf16.mxu1 %v255_v32  ;;  %vm427_vm3 = vcmask 130048   ;;  %vm424_vm4 = vcmp.gt.f32.partialorder %v3905_v1, 0.0 }
  0x9d   :  { %295 = vmatpush1.bf16.msra.mxu0 %v252_v7  ;;  %v265_v12 = vld [vmem:[#allocation2 + $0x68] sm:$0xff]  ;;  %v264_v13 = vld [vmem:[#allocation2 + $0x60] sm:$0xff]  ;;  %v259_v34 = vld [vmem:[#allocation2 + $0x38] sm:$0xff]  ;;  %338 = vmatpush1.bf16.msra.mxu1 %v254_v33 }
  0x9e   :  { %296 = vmatprep.subr.bf16.mxu0 %v257_v8  ;;  %v3919_v17 = vsub.s32 0, %v3916_v16  ;;  %v3921_v18 = vld [vmem:[#allocation12] sm:$0xf]  ;;  %v3924_v19 = vsub.s32 1, %v3916_v16  ;;  %339 = vmatprep.subr.bf16.mxu1 %v259_v34  ;;  %v258_v35 = vld [vmem:[#allocation2 + $0x30] sm:$0xff]  ;;  %v263_v36 = vld [vmem:[#allocation2 + $0x58] sm:$0xff] }
  0x9f   :  { %v262_v37 = vld [vmem:[#allocation2 + $0x50] sm:$0xff]  ;;  %v267_v38 = vld [vmem:[#allocation2 + $0x78] sm:$0xff]  ;;  %v3948_v60 = vsub.s32 2, %v3916_v16 }
  0xa0   :  { %v273_v20 = vrot.slane %v3921_v18, %v3919_v17  ;;  %v277_v22 = vrot.slane %v3921_v18, %v3924_v19  ;;  %v266_v39 = vld [vmem:[#allocation2 + $0x70] sm:$0xff] }
  0xa1   :  { %297 = vmatpush1.bf16.msra.mxu0 %v256_v9  ;;  %340 = vmatpush1.bf16.msra.mxu1 %v258_v35  ;;  %v281_v63 = vrot.slane %v3921_v18, %v3948_v60 }
  0xa2   :  { %298 = vmatprep.subr.bf16.mxu0 %v261_v10  ;;  %341 = vmatprep.subr.bf16.mxu1 %v263_v36 }
  0xa5   :  { %299 = vmatpush1.bf16.msra.mxu0 %v260_v11  ;;  %342 = vmatpush1.bf16.msra.mxu1 %v262_v37 }
  0xa6   :  { %300 = vmatprep.subr.bf16.mxu0 %v265_v12  ;;  %343 = vmatprep.subr.bf16.mxu1 %v267_v38 }
  0xa9   :  { %301 = vmatpush1.bf16.msra.mxu0 %v264_v13  ;;  %344 = vmatpush1.bf16.msra.mxu1 %v266_v39 }
  0xaa   :  { %3320 = vmatprep.subr.bf16.mxu0 %v3721_v14  ;;  %3326 = vmatprep.subr.bf16.mxu1 %v3721_v14 }
  0xac   :  { %3300 = vmatmul.mubr.msk.bf16.vlgmr.msra.gmra.mrb[0].mxu0 %vm290_vm0, %v3907_v4  ;;  %3301 = vmatmul.mubr.msk.bf16.vlgmr.msra.gmra.mrb[0].mxu1 %vm290_vm0, %v3907_v4 }
  0xad   :  { %3322 = vmatprep.mubr.msk.bf16.mxu0 %vm3722_vm1, %v3721_v14  ;;  %3328 = vmatprep.mubr.msk.bf16.mxu1 %vm3722_vm1, %v3721_v14 }
 0x17f   :  { %v328_v21 = vpop.f32.mrb[0].mxu0  ;;  %v371_v61 = vpop.f32.mrb[0].mxu1 }
 0x180   :  { %v330_v23 = vpop.f32.mrb[1].mxu0  ;;  %v329_v25 = vadd.f32 %v328_v21, %v273_v20  ;;  %v373_v62 = vpop.f32.mrb[1].mxu1  ;;  %v372_v4 = vadd.f32 %v371_v61, %v281_v63 }
 0x181   :  { %v332_v24 = vpop.f32.mrb[2].mxu0  ;;  %v331_v28 = vadd.f32 %v330_v23, %v277_v22  ;;  %v375_v2 = vpop.f32.mrb[2].mxu1 }
 0x182   :  { %v333_v26 = vadd.f32 %v332_v24, %v273_v20  ;;  %v334_v27 = vpop.f32.mrb[3].mxu0  ;;  %v377_v3 = vpop.f32.mrb[3].mxu1  ;;  %v376_v6 = vadd.f32 %v375_v2, %v281_v63 }
 0x183   :  { %v335_v29 = vadd.f32 %v334_v27, %v277_v22  ;;  %v3954_v22 = vsub.s32 3, %v3916_v16 }
 0x184   :  { %v380_v30 = vpack.c.bf16 %v333_v26, %v329_v25  ;;  %v455_v7 = vpack.c.bf16 %v376_v6, %v372_v4 }
 0x185   :  { %v381_v31 = vpack.c.bf16 %v335_v29, %v331_v28  ;;  %v285_v23 = vrot.slane %v3921_v18, %v3954_v22 }
 0x186   :  { %3327 = vmatpush3.bf16.msra.mxu1 %v455_v7 }
 0x187   :  { %3321 = vmatpush3.bf16.xpose.msra.mxu0 %v381_v31  ;;  %v374_v24 = vadd.f32 %v373_v62, %v285_v23  ;;  %v378_v26 = vadd.f32 %v377_v3, %v285_v23 }
 0x18e   :  { %3323 = vmatmul.mubr.bf16.vlgmr.msra.gmra.mrb[4].mxu0 %v380_v30 }
 0x261   :  { %v416_v40 = vpop.f32.mrb[4].mxu0 }
 0x262   :  { %v425_v41 = vsel %vm423_vm2, %v416_v40, -1e+30  ;;  %v3324_v42 = vpop.f32.mrb[5].mxu0 }
 0x263   :  { %v419_v43 = vpop.f32.mrb[6].mxu0  ;;  %v428_v44 = vsel %vm427_vm3, %v425_v41, -inf }
 0x264   :  { %v426_v45 = vsel %vm424_vm4, %v419_v43, -1e+30  ;;  %429 = vmax.xlane.f32.xlu0 %v428_v44  ;;  %v3325_v46 = vpop.f32.mrb[7].mxu0 }
 0x265   :  { %v431_v47 = vsel %vm427_vm3, %v426_v45, -inf }
 0x268   :  { %432 = vmax.xlane.f32.xlu0 %v431_v47 }
 0x2f1   :  { %v430_v48 = vpop.xlane.xlu0 %429 }
 0x2f2   :  { %v434_v49 = vsub.f32 %v425_v41, %v430_v48 }
 0x2f4   :  { %v436_v50 = vmul.f32 1.442695, %v434_v49 }
 0x2f5   :  { %v433_v51 = vpop.xlane.xlu0 %432 }
 0x2f6   :  { %3488 = vpow2.f32 %v436_v50  ;;  %v435_v52 = vsub.f32 %v426_v45, %v433_v51 }
 0x2f8   :  { %v438_v53 = vmul.f32 1.442695, %v435_v52 }
 0x2fa   :  { %3490 = vpow2.f32 %v438_v53 }
 0x300   :  { %v3489_v54 = vpop.eup %3488 }
 0x301   :  { %v440_v55 = vmul.f32 %v3489_v54, %v3903_v0 }
 0x303   :  { %v442_v56 = vsel %vm427_vm3, %v440_v55, 0.0 }
 0x304   :  { %v3491_v57 = vpop.eup %3490  ;;  %443 = vadd.xlane.f32.xlu1 %v442_v56 }
 0x305   :  { %v441_v58 = vmul.f32 %v3491_v57, %v3905_v1 }
 0x307   :  { %v445_v59 = vsel %vm427_vm3, %v441_v58, 0.0 }
 0x308   :  { %446 = vadd.xlane.f32.xlu1 %v445_v59 }
 0x391   :  { %v444_v8 = vpop.xlane.xlu1 %443 }
 0x392   :  { %v448_v9 = vmax.f32 %v444_v8, 1e-20 }
 0x394   :  { %3492 = vrcp.f32 %v448_v9 }
 0x395   :  { %v447_v10 = vpop.xlane.xlu1 %446 }
 0x396   :  { %v449_v11 = vmax.f32 %v447_v10, 1e-20 }
 0x398   :  { %3494 = vrcp.f32 %v449_v11 }
 0x39e   :  { %v3493_v12 = vpop.eup %3492 }
 0x39f   :  { %v452_v15 = vmul.f32 %v3493_v12, %v440_v55 }
 0x3a2   :  { %v3495_v13 = vpop.eup %3494 }
 0x3a3   :  { %v453_v20 = vmul.f32 %v3495_v13, %v441_v58 }
 0x3a5   :  { %v454_v21 = vpack.c.bf16 %v453_v20, %v452_v15 }
 0x3a7   :  { %3329 = vmatmul.mubr.msk.bf16.vlgmr.msra.gmra.mrb[4].mxu1 %vm427_vm3, %v454_v21 }
 0x47a   :  { %v493_v25 = vpop.f32.mrb[4].mxu1 }
 0x47b   :  { %v494_v27 = vadd.f32 %v493_v25, %v374_v24  ;;  %v3330_v28 = vpop.f32.mrb[5].mxu1 }
 0x47c   :  { %v496_v29 = vpop.f32.mrb[6].mxu1 }
 0x47d   :  { %v497_v30 = vadd.f32 %v496_v29, %v378_v26  ;;  %v3331_v31 = vpop.f32.mrb[7].mxu1  ;;  %v500_v32 = vmax.f32 %v494_v27, 0.0 }
 0x47f   :  { %v501_v33 = vmax.f32 %v497_v30, 0.0 }
 0x481   :  { %v3958_v34 = vpack.c.bf16 %v501_v33, %v500_v32 }
 0x482   :  { %3684 = dma.done.wait [#allocation6 + $0x1], 16384 }
 0x483   :  { %3685 = vsyncadd [#allocation6 + $0x1], 4294950912  ;;  %751 = vmatprep.mubr.bf16.mxu0 %v3720_v5  ;;  %794 = vmatprep.mubr.bf16.mxu1 %v3720_v5  ;;  %v508_v35 = vld [vmem:[#allocation3 + $0x8] sm:$0xff]  ;;  %v507_v18 = vld [vmem:[#allocation3] sm:$0xff] }
 0x484   :  { %v524_v36 = vld [vmem:[#allocation3 + $0x88] sm:$0xff]  ;;  %719 = vmatprep.subr.bf16.mxu0 %v508_v35  ;;  %v510_v37 = vld [vmem:[#allocation3 + $0x18] sm:$0xff]  ;;  %v509_v38 = vld [vmem:[#allocation3 + $0x10] sm:$0xff] }
 0x485   :  { %720 = vmatpush1.bf16.msra.mxu0 %v507_v18  ;;  %762 = vmatprep.subr.bf16.mxu1 %v510_v37  ;;  %v526_v39 = vld [vmem:[#allocation3 + $0x98] sm:$0xff]  ;;  %v523_v40 = vld [vmem:[#allocation3 + $0x80] sm:$0xff]  ;;  %v540_v41 = vld [vmem:[#allocation3 + $0x108] sm:$0xff] }
 0x486   :  { %721 = vmatprep.subr.bf16.mxu0 %v524_v36  ;;  %763 = vmatpush1.bf16.msra.mxu1 %v509_v38  ;;  %v525_v42 = vld [vmem:[#allocation3 + $0x90] sm:$0xff]  ;;  %v542_v43 = vld [vmem:[#allocation3 + $0x118] sm:$0xff]  ;;  %v539_v44 = vld [vmem:[#allocation3 + $0x100] sm:$0xff] }
 0x487   :  { %764 = vmatprep.subr.bf16.mxu1 %v526_v39  ;;  %v556_v45 = vld [vmem:[#allocation3 + $0x188] sm:$0xff]  ;;  %v541_v46 = vld [vmem:[#allocation3 + $0x110] sm:$0xff]  ;;  %v558_v47 = vld [vmem:[#allocation3 + $0x198] sm:$0xff] }
 0x488   :  { %v555_v48 = vld [vmem:[#allocation3 + $0x180] sm:$0xff]  ;;  %v572_v49 = vld [vmem:[#allocation3 + $0x208] sm:$0xff]  ;;  %v557_v50 = vld [vmem:[#allocation3 + $0x190] sm:$0xff] }
 0x489   :  { %722 = vmatpush1.bf16.msra.mxu0 %v523_v40  ;;  %v574_v51 = vld [vmem:[#allocation3 + $0x218] sm:$0xff]  ;;  %v571_v52 = vld [vmem:[#allocation3 + $0x200] sm:$0xff]  ;;  %v588_v53 = vld [vmem:[#allocation3 + $0x288] sm:$0xff] }
 0x48a   :  { %723 = vmatprep.subr.bf16.mxu0 %v540_v41  ;;  %765 = vmatpush1.bf16.msra.mxu1 %v525_v42  ;;  %v573_v54 = vld [vmem:[#allocation3 + $0x210] sm:$0xff]  ;;  %v590_v55 = vld [vmem:[#allocation3 + $0x298] sm:$0xff]  ;;  %v587_v56 = vld [vmem:[#allocation3 + $0x280] sm:$0xff] }
 0x48b   :  { %766 = vmatprep.subr.bf16.mxu1 %v542_v43  ;;  %v604_v57 = vld [vmem:[#allocation3 + $0x308] sm:$0xff]  ;;  %v589_v58 = vld [vmem:[#allocation3 + $0x290] sm:$0xff]  ;;  %v606_v59 = vld [vmem:[#allocation3 + $0x318] sm:$0xff] }
 0x48c   :  { %v603_v61 = vld [vmem:[#allocation3 + $0x300] sm:$0xff]  ;;  %v620_v62 = vld [vmem:[#allocation3 + $0x388] sm:$0xff]  ;;  %v605_v63 = vld [vmem:[#allocation3 + $0x310] sm:$0xff] }
 0x48d   :  { %724 = vmatpush1.bf16.msra.mxu0 %v539_v44  ;;  %v622_v2 = vld [vmem:[#allocation3 + $0x398] sm:$0xff]  ;;  %v619_v3 = vld [vmem:[#allocation3 + $0x380] sm:$0xff]  ;;  %v512_v4 = vld [vmem:[#allocation3 + $0x28] sm:$0xff] }
 0x48e   :  { %725 = vmatprep.subr.bf16.mxu0 %v556_v45  ;;  %767 = vmatpush1.bf16.msra.mxu1 %v541_v46  ;;  %v621_v6 = vld [vmem:[#allocation3 + $0x390] sm:$0xff]  ;;  %v514_v7 = vld [vmem:[#allocation3 + $0x38] sm:$0xff]  ;;  %v511_v8 = vld [vmem:[#allocation3 + $0x20] sm:$0xff] }
 0x48f   :  { %768 = vmatprep.subr.bf16.mxu1 %v558_v47  ;;  %v528_v9 = vld [vmem:[#allocation3 + $0xa8] sm:$0xff]  ;;  %v513_v10 = vld [vmem:[#allocation3 + $0x30] sm:$0xff]  ;;  %v530_v11 = vld [vmem:[#allocation3 + $0xb8] sm:$0xff] }
 0x490   :  { %v527_v12 = vld [vmem:[#allocation3 + $0xa0] sm:$0xff]  ;;  %v544_v13 = vld [vmem:[#allocation3 + $0x128] sm:$0xff]  ;;  %v529_v15 = vld [vmem:[#allocation3 + $0xb0] sm:$0xff] }
 0x491   :  { %726 = vmatpush1.bf16.msra.mxu0 %v555_v48  ;;  %v546_v20 = vld [vmem:[#allocation3 + $0x138] sm:$0xff]  ;;  %v543_v21 = vld [vmem:[#allocation3 + $0x120] sm:$0xff]  ;;  %v560_v23 = vld [vmem:[#allocation3 + $0x1a8] sm:$0xff] }
 0x492   :  { %727 = vmatprep.subr.bf16.mxu0 %v572_v49  ;;  %769 = vmatpush1.bf16.msra.mxu1 %v557_v50  ;;  %v545_v24 = vld [vmem:[#allocation3 + $0x130] sm:$0xff]  ;;  %v562_v25 = vld [vmem:[#allocation3 + $0x1b8] sm:$0xff]  ;;  %v559_v26 = vld [vmem:[#allocation3 + $0x1a0] sm:$0xff] }
 0x493   :  { %770 = vmatprep.subr.bf16.mxu1 %v574_v51  ;;  %v576_v27 = vld [vmem:[#allocation3 + $0x228] sm:$0xff]  ;;  %v561_v28 = vld [vmem:[#allocation3 + $0x1b0] sm:$0xff]  ;;  %v578_v29 = vld [vmem:[#allocation3 + $0x238] sm:$0xff] }
 0x494   :  { %v575_v30 = vld [vmem:[#allocation3 + $0x220] sm:$0xff]  ;;  %v592_v31 = vld [vmem:[#allocation3 + $0x2a8] sm:$0xff]  ;;  %v577_v32 = vld [vmem:[#allocation3 + $0x230] sm:$0xff] }
 0x495   :  { %728 = vmatpush1.bf16.msra.mxu0 %v571_v52  ;;  %v594_v33 = vld [vmem:[#allocation3 + $0x2b8] sm:$0xff]  ;;  %v591_v35 = vld [vmem:[#allocation3 + $0x2a0] sm:$0xff]  ;;  %v608_v18 = vld [vmem:[#allocation3 + $0x328] sm:$0xff] }
 0x496   :  { %729 = vmatprep.subr.bf16.mxu0 %v588_v53  ;;  %771 = vmatpush1.bf16.msra.mxu1 %v573_v54  ;;  %v593_v36 = vld [vmem:[#allocation3 + $0x2b0] sm:$0xff]  ;;  %v610_v37 = vld [vmem:[#allocation3 + $0x338] sm:$0xff]  ;;  %v607_v38 = vld [vmem:[#allocation3 + $0x320] sm:$0xff] }
 0x497   :  { %772 = vmatprep.subr.bf16.mxu1 %v590_v55  ;;  %v624_v39 = vld [vmem:[#allocation3 + $0x3a8] sm:$0xff]  ;;  %v609_v40 = vld [vmem:[#allocation3 + $0x330] sm:$0xff]  ;;  %v626_v41 = vld [vmem:[#allocation3 + $0x3b8] sm:$0xff] }
 0x498   :  { %v623_v42 = vld [vmem:[#allocation3 + $0x3a0] sm:$0xff]  ;;  %v625_v43 = vld [vmem:[#allocation3 + $0x3b0] sm:$0xff]  ;;  %v516_v44 = vld [vmem:[#allocation3 + $0x48] sm:$0xff] }
 0x499   :  { %730 = vmatpush1.bf16.msra.mxu0 %v587_v56  ;;  %v515_v45 = vld [vmem:[#allocation3 + $0x40] sm:$0xff]  ;;  %v532_v46 = vld [vmem:[#allocation3 + $0xc8] sm:$0xff] }
 0x49a   :  { %731 = vmatprep.subr.bf16.mxu0 %v604_v57  ;;  %773 = vmatpush1.bf16.msra.mxu1 %v589_v58  ;;  %v531_v47 = vld [vmem:[#allocation3 + $0xc0] sm:$0xff]  ;;  %v548_v48 = vld [vmem:[#allocation3 + $0x148] sm:$0xff] }
 0x49b   :  { %774 = vmatprep.subr.bf16.mxu1 %v606_v59  ;;  %v547_v49 = vld [vmem:[#allocation3 + $0x140] sm:$0xff]  ;;  %v564_v50 = vld [vmem:[#allocation3 + $0x1c8] sm:$0xff] }
 0x49c   :  { %v563_v51 = vld [vmem:[#allocation3 + $0x1c0] sm:$0xff]  ;;  %v580_v52 = vld [vmem:[#allocation3 + $0x248] sm:$0xff] }
 0x49d   :  { %732 = vmatpush1.bf16.msra.mxu0 %v603_v61  ;;  %v579_v53 = vld [vmem:[#allocation3 + $0x240] sm:$0xff]  ;;  %v596_v54 = vld [vmem:[#allocation3 + $0x2c8] sm:$0xff] }
 0x49e   :  { %733 = vmatprep.subr.bf16.mxu0 %v620_v62  ;;  %775 = vmatpush1.bf16.msra.mxu1 %v605_v63  ;;  %v595_v55 = vld [vmem:[#allocation3 + $0x2c0] sm:$0xff]  ;;  %v612_v56 = vld [vmem:[#allocation3 + $0x348] sm:$0xff] }
 0x49f   :  { %776 = vmatprep.subr.bf16.mxu1 %v622_v2  ;;  %v611_v57 = vld [vmem:[#allocation3 + $0x340] sm:$0xff]  ;;  %v628_v58 = vld [vmem:[#allocation3 + $0x3c8] sm:$0xff] }
 0x4a0   :  { %v627_v59 = vld [vmem:[#allocation3 + $0x3c0] sm:$0xff]  ;;  %v520_v61 = vld [vmem:[#allocation3 + $0x68] sm:$0xff] }
 0x4a1   :  { %734 = vmatpush1.bf16.msra.mxu0 %v619_v3  ;;  %v519_v62 = vld [vmem:[#allocation3 + $0x60] sm:$0xff]  ;;  %v536_v63 = vld [vmem:[#allocation3 + $0xe8] sm:$0xff] }
 0x4a2   :  { %805 = vmatprep.subr.bf16.mxu0 %v512_v4  ;;  %777 = vmatpush1.bf16.msra.mxu1 %v621_v6  ;;  %v535_v2 = vld [vmem:[#allocation3 + $0xe0] sm:$0xff]  ;;  %v552_v3 = vld [vmem:[#allocation3 + $0x168] sm:$0xff] }
 0x4a3   :  { %848 = vmatprep.subr.bf16.mxu1 %v514_v7  ;;  %v551_v4 = vld [vmem:[#allocation3 + $0x160] sm:$0xff]  ;;  %v568_v6 = vld [vmem:[#allocation3 + $0x1e8] sm:$0xff] }
 0x4a4   :  { %752 = vmatmul.mubr.bf16.vlgmr.msra.gmra.mrb[8].mxu0 %v3958_v34  ;;  %v567_v7 = vld [vmem:[#allocation3 + $0x1e0] sm:$0xff] }
 0x4a5   :  { %806 = vmatpush1.bf16.msra.mxu0 %v511_v8  ;;  %795 = vmatmul.mubr.bf16.vlgmr.msra.gmra.mrb[8].mxu1 %v3958_v34  ;;  %v584_v8 = vld [vmem:[#allocation3 + $0x268] sm:$0xff] }
 0x4a6   :  { %807 = vmatprep.subr.bf16.mxu0 %v528_v9  ;;  %849 = vmatpush1.bf16.msra.mxu1 %v513_v10  ;;  %v583_v9 = vld [vmem:[#allocation3 + $0x260] sm:$0xff]  ;;  %v600_v10 = vld [vmem:[#allocation3 + $0x2e8] sm:$0xff] }
 0x4a7   :  { %850 = vmatprep.subr.bf16.mxu1 %v530_v11  ;;  %837 = vmatprep.mubr.bf16.mxu0 %v3720_v5  ;;  %v599_v11 = vld [vmem:[#allocation3 + $0x2e0] sm:$0xff] }
 0x4a8   :  { %880 = vmatprep.mubr.bf16.mxu1 %v3720_v5 }
 0x4a9   :  { %808 = vmatpush1.bf16.msra.mxu0 %v527_v12  ;;  %v616_v12 = vld [vmem:[#allocation3 + $0x368] sm:$0xff] }
 0x4aa   :  { %809 = vmatprep.subr.bf16.mxu0 %v544_v13  ;;  %851 = vmatpush1.bf16.msra.mxu1 %v529_v15  ;;  %v615_v13 = vld [vmem:[#allocation3 + $0x360] sm:$0xff]  ;;  %v632_v15 = vld [vmem:[#allocation3 + $0x3e8] sm:$0xff] }
 0x4ab   :  { %852 = vmatprep.subr.bf16.mxu1 %v546_v20  ;;  %v631_v20 = vld [vmem:[#allocation3 + $0x3e0] sm:$0xff] }
 0x4ad   :  { %810 = vmatpush1.bf16.msra.mxu0 %v543_v21  ;;  %v635_v21 = vld [vmem:[#allocation13] sm:$0xff] }
 0x4ae   :  { %811 = vmatprep.subr.bf16.mxu0 %v560_v23  ;;  %853 = vmatpush1.bf16.msra.mxu1 %v545_v24  ;;  %v642_v23 = vrot.slane %v635_v21, %v3919_v17  ;;  %v650_v24 = vrot.slane %v635_v21, %v3948_v60 }
 0x4af   :  { %854 = vmatprep.subr.bf16.mxu1 %v562_v25  ;;  %v654_v25 = vrot.slane %v635_v21, %v3954_v22 }
 0x4b1   :  { %812 = vmatpush1.bf16.msra.mxu0 %v559_v26 }
 0x4b2   :  { %813 = vmatprep.subr.bf16.mxu0 %v576_v27  ;;  %855 = vmatpush1.bf16.msra.mxu1 %v561_v28  ;;  %v646_v27 = vrot.slane %v635_v21, %v3924_v19 }
 0x4b3   :  { %856 = vmatprep.subr.bf16.mxu1 %v578_v29 }
 0x4b5   :  { %814 = vmatpush1.bf16.msra.mxu0 %v575_v30 }
 0x4b6   :  { %815 = vmatprep.subr.bf16.mxu0 %v592_v31  ;;  %857 = vmatpush1.bf16.msra.mxu1 %v577_v32 }
 0x4b7   :  { %858 = vmatprep.subr.bf16.mxu1 %v594_v33 }
 0x4b9   :  { %816 = vmatpush1.bf16.msra.mxu0 %v591_v35 }
 0x4ba   :  { %817 = vmatprep.subr.bf16.mxu0 %v608_v18  ;;  %859 = vmatpush1.bf16.msra.mxu1 %v593_v36 }
 0x4bb   :  { %860 = vmatprep.subr.bf16.mxu1 %v610_v37 }
 0x4bd   :  { %818 = vmatpush1.bf16.msra.mxu0 %v607_v38 }
 0x4be   :  { %819 = vmatprep.subr.bf16.mxu0 %v624_v39  ;;  %861 = vmatpush1.bf16.msra.mxu1 %v609_v40 }
 0x4bf   :  { %862 = vmatprep.subr.bf16.mxu1 %v626_v41 }
 0x4c1   :  { %820 = vmatpush1.bf16.msra.mxu0 %v623_v42 }
 0x4c2   :  { %863 = vmatpush1.bf16.msra.mxu1 %v625_v43  ;;  %891 = vmatprep.subr.bf16.mxu0 %v516_v44 }
 0x4c4   :  { %838 = vmatmul.mubr.bf16.vlgmr.msra.gmra.mrb[12].mxu0 %v3958_v34 }
 0x4c5   :  { %881 = vmatmul.mubr.bf16.vlgmr.msra.gmra.mrb[12].mxu1 %v3958_v34  ;;  %892 = vmatpush1.bf16.msra.mxu0 %v515_v45 }
 0x4c6   :  { %893 = vmatprep.subr.bf16.mxu0 %v532_v46  ;;  %923 = vmatprep.mubr.bf16.mxu0 %v3720_v5 }
 0x4c7   :  { %966 = vmatprep.mubr.bf16.mxu1 %v3720_v5 }
 0x4c9   :  { %894 = vmatpush1.bf16.msra.mxu0 %v531_v47  ;;  %v3978_v47 = vsub.s32 6, %v3916_v16 }
 0x4ca   :  { %895 = vmatprep.subr.bf16.mxu0 %v548_v48  ;;  %v3981_v48 = vsub.s32 4, %v3916_v16 }
 0x4cd   :  { %896 = vmatpush1.bf16.msra.mxu0 %v547_v49  ;;  %v3984_v49 = vsub.s32 7, %v3916_v16 }
 0x4ce   :  { %897 = vmatprep.subr.bf16.mxu0 %v564_v50  ;;  %v3987_v50 = vsub.s32 5, %v3916_v16 }
 0x4d1   :  { %898 = vmatpush1.bf16.msra.mxu0 %v563_v51  ;;  %v666_v51 = vrot.slane %v635_v21, %v3978_v47 }
 0x4d2   :  { %899 = vmatprep.subr.bf16.mxu0 %v580_v52  ;;  %v658_v52 = vrot.slane %v635_v21, %v3981_v48 }
 0x4d5   :  { %900 = vmatpush1.bf16.msra.mxu0 %v579_v53  ;;  %v670_v53 = vrot.slane %v635_v21, %v3984_v49 }
 0x4d6   :  { %901 = vmatprep.subr.bf16.mxu0 %v596_v54 }
 0x4d9   :  { %902 = vmatpush1.bf16.msra.mxu0 %v595_v55  ;;  %v662_v55 = vrot.slane %v635_v21, %v3987_v50 }
 0x4da   :  { %903 = vmatprep.subr.bf16.mxu0 %v612_v56 }
 0x4dd   :  { %904 = vmatpush1.bf16.msra.mxu0 %v611_v57 }
 0x4de   :  { %905 = vmatprep.subr.bf16.mxu0 %v628_v58 }
 0x4e1   :  { %906 = vmatpush1.bf16.msra.mxu0 %v627_v59 }
 0x4e2   :  { %977 = vmatprep.subr.bf16.mxu0 %v520_v61 }
 0x4e4   :  { %924 = vmatmul.mubr.bf16.vlgmr.msra.gmra.mrb[16].mxu0 %v3958_v34 }
 0x4e5   :  { %978 = vmatpush1.bf16.msra.mxu0 %v519_v62  ;;  %1009 = vmatprep.mubr.bf16.mxu0 %v3720_v5 }
 0x4e6   :  { %979 = vmatprep.subr.bf16.mxu0 %v536_v63 }
 0x4e9   :  { %980 = vmatpush1.bf16.msra.mxu0 %v535_v2 }
 0x4ea   :  { %981 = vmatprep.subr.bf16.mxu0 %v552_v3 }
 0x4ed   :  { %982 = vmatpush1.bf16.msra.mxu0 %v551_v4 }
 0x4ee   :  { %983 = vmatprep.subr.bf16.mxu0 %v568_v6 }
 0x4f1   :  { %984 = vmatpush1.bf16.msra.mxu0 %v567_v7 }
 0x4f2   :  { %985 = vmatprep.subr.bf16.mxu0 %v584_v8 }
 0x4f5   :  { %986 = vmatpush1.bf16.msra.mxu0 %v583_v9 }
 0x4f6   :  { %987 = vmatprep.subr.bf16.mxu0 %v600_v10 }
 0x4f9   :  { %988 = vmatpush1.bf16.msra.mxu0 %v599_v11 }
 0x4fa   :  { %989 = vmatprep.subr.bf16.mxu0 %v616_v12 }
 0x4fd   :  { %990 = vmatpush1.bf16.msra.mxu0 %v615_v13 }
 0x4fe   :  { %991 = vmatprep.subr.bf16.mxu0 %v632_v15  ;;  %v3993_v15 = vld [vmem:[#allocation13 + $0x8] sm:$0xff] }
 0x4ff   :  { %v678_v21 = vrot.slane %v3993_v15, %v3924_v19 }
 0x501   :  { %992 = vmatpush1.bf16.msra.mxu0 %v631_v20  ;;  %v674_v20 = vrot.slane %v3993_v15, %v3919_v17 }
 0x504   :  { %1010 = vmatmul.mubr.bf16.vlgmr.msra.gmra.mrb[20].mxu0 %v3958_v34 }
 0x577   :  { %v753_v26 = vpop.f32.mrb[8].mxu0 }
 0x578   :  { %v754_v28 = vadd.f32 %v753_v26, %v642_v23  ;;  %v755_v29 = vpop.f32.mrb[9].mxu0  ;;  %v796_v30 = vpop.f32.mrb[8].mxu1 }
 0x579   :  { %v757_v31 = vpop.f32.mrb[10].mxu0  ;;  %v797_v32 = vadd.f32 %v796_v30, %v650_v24  ;;  %v798_v33 = vpop.f32.mrb[9].mxu1  ;;  %v756_v38 = vadd.f32 %v755_v29, %v646_v27 }
 0x57a   :  { %v758_v35 = vadd.f32 %v757_v31, %v642_v23  ;;  %v759_v18 = vpop.f32.mrb[11].mxu0  ;;  %v799_v36 = vadd.f32 %v798_v33, %v654_v25  ;;  %v800_v37 = vpop.f32.mrb[10].mxu1  ;;  %v518_v33 = vld [vmem:[#allocation3 + $0x58] sm:$0xff] }
 0x57b   :  { %v760_v39 = vadd.f32 %v759_v18, %v646_v27  ;;  %v801_v40 = vadd.f32 %v800_v37, %v650_v24  ;;  %v802_v41 = vpop.f32.mrb[11].mxu1  ;;  %v534_v18 = vld [vmem:[#allocation3 + $0xd8] sm:$0xff]  ;;  %934 = vmatprep.subr.bf16.mxu1 %v518_v33 }
 0x57c   :  { %v1063_v42 = vpack.c.bf16 %v758_v35, %v754_v28  ;;  %v803_v43 = vadd.f32 %v802_v41, %v654_v25  ;;  %v517_v35 = vld [vmem:[#allocation3 + $0x50] sm:$0xff]  ;;  %v550_v37 = vld [vmem:[#allocation3 + $0x158] sm:$0xff] }
 0x57d   :  { %v1064_v44 = vpack.c.bf16 %v760_v39, %v756_v38  ;;  %v1065_v45 = vpack.c.bf16 %v801_v40, %v797_v32  ;;  %935 = vmatpush1.bf16.msra.mxu1 %v517_v35  ;;  %v549_v38 = vld [vmem:[#allocation3 + $0x150] sm:$0xff]  ;;  %v566_v39 = vld [vmem:[#allocation3 + $0x1d8] sm:$0xff] }
 0x57e   :  { %v1066_v46 = vpack.c.bf16 %v803_v43, %v799_v36  ;;  %936 = vmatprep.subr.bf16.mxu1 %v534_v18  ;;  %v533_v36 = vld [vmem:[#allocation3 + $0xd0] sm:$0xff]  ;;  %v582_v41 = vld [vmem:[#allocation3 + $0x258] sm:$0xff] }
 0x57f   :  { %1103 = vmatprep.mubr.bf16.mxu0 %v1064_v44  ;;  %v565_v40 = vld [vmem:[#allocation3 + $0x1d0] sm:$0xff]  ;;  %v598_v43 = vld [vmem:[#allocation3 + $0x2d8] sm:$0xff] }
 0x580   :  { %v597_v44 = vld [vmem:[#allocation3 + $0x2d0] sm:$0xff] }
 0x581   :  { %937 = vmatpush1.bf16.msra.mxu1 %v533_v36 }
 0x582   :  { %938 = vmatprep.subr.bf16.mxu1 %v550_v37 }
 0x585   :  { %939 = vmatpush1.bf16.msra.mxu1 %v549_v38 }
 0x586   :  { %940 = vmatprep.subr.bf16.mxu1 %v566_v39 }
 0x589   :  { %941 = vmatpush1.bf16.msra.mxu1 %v565_v40  ;;  %v686_v40 = vrot.slane %v3993_v15, %v3954_v22 }
 0x58a   :  { %942 = vmatprep.subr.bf16.mxu1 %v582_v41 }
 0x597   :  { %v839_v54 = vpop.f32.mrb[12].mxu0 }
 0x598   :  { %v841_v56 = vpop.f32.mrb[13].mxu0  ;;  %v882_v57 = vpop.f32.mrb[12].mxu1  ;;  %v840_v62 = vadd.f32 %v839_v54, %v658_v52 }
 0x599   :  { %v843_v58 = vpop.f32.mrb[14].mxu0  ;;  %v883_v59 = vadd.f32 %v882_v57, %v666_v51  ;;  %v884_v61 = vpop.f32.mrb[13].mxu1  ;;  %v842_v4 = vadd.f32 %v841_v56, %v662_v55 }
 0x59a   :  { %v844_v63 = vadd.f32 %v843_v58, %v658_v52  ;;  %v845_v2 = vpop.f32.mrb[15].mxu0  ;;  %v885_v3 = vadd.f32 %v884_v61, %v670_v53  ;;  %v886_v16 = vpop.f32.mrb[14].mxu1  ;;  %v629_v52 = vld [vmem:[#allocation3 + $0x3d0] sm:$0xff] }
 0x59b   :  { %v846_v6 = vadd.f32 %v845_v2, %v662_v55  ;;  %v887_v7 = vadd.f32 %v886_v16, %v666_v51  ;;  %v888_v8 = vpop.f32.mrb[15].mxu1  ;;  %v630_v51 = vld [vmem:[#allocation3 + $0x3d8] sm:$0xff] }
 0x59c   :  { %v1067_v9 = vpack.c.bf16 %v844_v63, %v840_v62  ;;  %v889_v10 = vadd.f32 %v888_v8, %v670_v53  ;;  %v522_v62 = vld [vmem:[#allocation3 + $0x78] sm:$0xff]  ;;  %v521_v63 = vld [vmem:[#allocation3 + $0x70] sm:$0xff] }
 0x59d   :  { %v1068_v11 = vpack.c.bf16 %v846_v6, %v842_v4  ;;  %v1069_v12 = vpack.c.bf16 %v887_v7, %v883_v59  ;;  %v538_v2 = vld [vmem:[#allocation3 + $0xf8] sm:$0xff]  ;;  %v553_v4 = vld [vmem:[#allocation3 + $0x170] sm:$0xff] }
 0x59e   :  { %v1070_v13 = vpack.c.bf16 %v889_v10, %v885_v3  ;;  %v537_v3 = vld [vmem:[#allocation3 + $0xf0] sm:$0xff]  ;;  %v554_v16 = vld [vmem:[#allocation3 + $0x178] sm:$0xff] }
 0x59f   :  { %1071 = vmatprep.subr.bf16.mxu0 %v1068_v11  ;;  %v570_v6 = vld [vmem:[#allocation3 + $0x1f8] sm:$0xff]  ;;  %v569_v7 = vld [vmem:[#allocation3 + $0x1f0] sm:$0xff] }
 0x5a0   :  { %1072 = vmatpush1.bf16.xpose.msra.mxu0 %v1067_v9  ;;  %v586_v8 = vld [vmem:[#allocation3 + $0x278] sm:$0xff]  ;;  %v585_v9 = vld [vmem:[#allocation3 + $0x270] sm:$0xff] }
 0x5a1   :  { %1112 = vmatprep.subr.bf16.mxu0 %v1070_v13  ;;  %v602_v10 = vld [vmem:[#allocation3 + $0x2f8] sm:$0xff]  ;;  %v601_v11 = vld [vmem:[#allocation3 + $0x2f0] sm:$0xff] }
 0x5a2   :  { %v617_v13 = vld [vmem:[#allocation3 + $0x370] sm:$0xff] }
 0x5a7   :  { %1104 = vmatmul.mubr.bf16.vlgmr.msra.gmra.mrb[24].mxu0 %v1063_v42  ;;  %v581_v42 = vld [vmem:[#allocation3 + $0x250] sm:$0xff] }
 0x5a8   :  { %1113 = vmatpush1.bf16.xpose.msra.mxu0 %v1069_v12  ;;  %1144 = vmatprep.mubr.bf16.mxu0 %v1066_v46  ;;  %v613_v46 = vld [vmem:[#allocation3 + $0x350] sm:$0xff]  ;;  %v618_v12 = vld [vmem:[#allocation3 + $0x378] sm:$0xff] }
 0x5a9   :  { %943 = vmatpush1.bf16.msra.mxu1 %v581_v42 }
 0x5aa   :  { %944 = vmatprep.subr.bf16.mxu1 %v598_v43  ;;  %v634_v43 = vld [vmem:[#allocation3 + $0x3f8] sm:$0xff] }
 0x5ad   :  { %945 = vmatpush1.bf16.msra.mxu1 %v597_v44  ;;  %v633_v44 = vld [vmem:[#allocation3 + $0x3f0] sm:$0xff] }
 0x5b3   :  { %1145 = vmatmul.mubr.bf16.vlgmr.msra.gmra.mrb[24].mxu0 %v1065_v45  ;;  %v614_v45 = vld [vmem:[#allocation3 + $0x358] sm:$0xff] }
 0x5b4   :  { %1221 = vmatprep.mubr.bf16.mxu0 %v3720_v5  ;;  %946 = vmatprep.subr.bf16.mxu1 %v614_v45 }
 0x5b5   :  { %947 = vmatpush1.bf16.msra.mxu1 %v613_v46 }
 0x5b6   :  { %948 = vmatprep.subr.bf16.mxu1 %v630_v51 }
 0x5b7   :  { %v925_v23 = vpop.f32.mrb[16].mxu0 }
 0x5b8   :  { %v926_v24 = vadd.f32 %v925_v23, %v674_v20  ;;  %v927_v25 = vpop.f32.mrb[17].mxu0 }
 0x5b9   :  { %v928_v26 = vadd.f32 %v927_v25, %v678_v21  ;;  %v929_v27 = vpop.f32.mrb[18].mxu0  ;;  %949 = vmatpush1.bf16.msra.mxu1 %v629_v52 }
 0x5ba   :  { %v930_v28 = vadd.f32 %v929_v27, %v674_v20  ;;  %v931_v29 = vpop.f32.mrb[19].mxu0  ;;  %1020 = vmatprep.subr.bf16.mxu1 %v522_v62  ;;  %v682_v20 = vrot.slane %v3993_v15, %v3948_v60  ;;  %v694_v62 = vrot.slane %v3993_v15, %v3987_v50 }
 0x5bb   :  { %v932_v30 = vadd.f32 %v931_v29, %v678_v21 }
 0x5bc   :  { %v1182_v31 = vpack.c.bf16 %v930_v28, %v926_v24  ;;  %967 = vmatmul.mubr.bf16.vlgmr.msra.gmra.mrb[16].mxu1 %v3958_v34 }
 0x5bd   :  { %v1183_v32 = vpack.c.bf16 %v932_v30, %v928_v26  ;;  %1052 = vmatprep.mubr.bf16.mxu1 %v3720_v5  ;;  %1021 = vmatpush1.bf16.msra.mxu1 %v521_v63  ;;  %v702_v63 = vrot.slane %v3993_v15, %v3984_v49 }
 0x5be   :  { %1022 = vmatprep.subr.bf16.mxu1 %v538_v2 }
 0x5bf   :  { %1189 = vmatprep.subr.bf16.mxu0 %v1183_v32 }
 0x5c0   :  { %1190 = vmatpush1.bf16.msra.mxu0 %v1182_v31 }
 0x5c1   :  { %1023 = vmatpush1.bf16.msra.mxu1 %v537_v3 }
 0x5c2   :  { %1024 = vmatprep.subr.bf16.mxu1 %v554_v16 }
 0x5c5   :  { %1025 = vmatpush1.bf16.msra.mxu1 %v553_v4 }
 0x5c6   :  { %1026 = vmatprep.subr.bf16.mxu1 %v570_v6 }
 0x5c9   :  { %1027 = vmatpush1.bf16.msra.mxu1 %v569_v7 }
 0x5ca   :  { %1028 = vmatprep.subr.bf16.mxu1 %v586_v8 }
 0x5cd   :  { %1029 = vmatpush1.bf16.msra.mxu1 %v585_v9 }
 0x5ce   :  { %1030 = vmatprep.subr.bf16.mxu1 %v602_v10 }
 0x5d1   :  { %1031 = vmatpush1.bf16.msra.mxu1 %v601_v11 }
 0x5d2   :  { %1032 = vmatprep.subr.bf16.mxu1 %v618_v12 }
 0x5d5   :  { %1033 = vmatpush1.bf16.msra.mxu1 %v617_v13 }
 0x5d6   :  { %1034 = vmatprep.subr.bf16.mxu1 %v634_v43 }
 0x5d9   :  { %1035 = vmatpush1.bf16.msra.mxu1 %v633_v44 }
 0x5dc   :  { %1053 = vmatmul.mubr.bf16.vlgmr.msra.gmra.mrb[20].mxu1 %v3958_v34  ;;  %v690_v34 = vrot.slane %v3993_v15, %v3981_v48 }
 0x5dd   :  { %1264 = vmatprep.mubr.bf16.mxu1 %v3720_v5 }
 0x686   :  { %v1146_v53 = vpop.f32.mrb[24].mxu0 }
 0x687   :  { %v1153_v54 = vsel %vm423_vm2, %v1146_v53, -1e+30  ;;  %v1148_v55 = vpop.f32.mrb[25].mxu0 }
 0x688   :  { %v1149_v56 = vpop.f32.mrb[26].mxu0  ;;  %v1155_v57 = vsel %vm427_vm3, %v1153_v54, -inf }
 0x689   :  { %v1154_v58 = vsel %vm424_vm4, %v1149_v56, -1e+30  ;;  %1156 = vmax.xlane.f32.xlu0 %v1155_v57  ;;  %v1151_v59 = vpop.f32.mrb[27].mxu0 }
 0x68a   :  { %v1158_v61 = vsel %vm427_vm3, %v1154_v58, -inf }
 0x68d   :  { %1159 = vmax.xlane.f32.xlu0 %v1158_v61  ;;  %v698_v61 = vrot.slane %v3993_v15, %v3978_v47 }
 0x68f   :  { %v968_v21 = vpop.f32.mrb[16].mxu1 }
 0x690   :  { %v969_v23 = vadd.f32 %v968_v21, %v682_v20  ;;  %v970_v24 = vpop.f32.mrb[17].mxu1 }
 0x691   :  { %v972_v25 = vpop.f32.mrb[18].mxu1  ;;  %v971_v41 = vadd.f32 %v970_v24, %v686_v40 }
 0x692   :  { %v973_v26 = vadd.f32 %v972_v25, %v682_v20  ;;  %v974_v42 = vpop.f32.mrb[19].mxu1 }
 0x693   :  { %v975_v45 = vadd.f32 %v974_v42, %v686_v40 }
 0x694   :  { %v1184_v27 = vpack.c.bf16 %v973_v26, %v969_v23 }
 0x695   :  { %v1185_v46 = vpack.c.bf16 %v975_v45, %v971_v41 }
 0x697   :  { %1232 = vmatprep.subr.bf16.mxu1 %v1185_v46 }
 0x698   :  { %1233 = vmatpush1.bf16.msra.mxu1 %v1184_v27 }
 0x716   :  { %v1157_v28 = vpop.xlane.xlu0 %1156 }
 0x717   :  { %v1161_v29 = vsub.f32 %v1153_v54, %v1157_v28 }
 0x719   :  { %v1163_v30 = vmul.f32 1.442695, %v1161_v29 }
 0x71a   :  { %v1160_v31 = vpop.xlane.xlu0 %1159 }
 0x71b   :  { %3496 = vpow2.f32 %v1163_v30  ;;  %v1162_v32 = vsub.f32 %v1154_v58, %v1160_v31 }
 0x71d   :  { %v1165_v33 = vmul.f32 1.442695, %v1162_v32 }
 0x71f   :  { %3498 = vpow2.f32 %v1165_v33 }
 0x725   :  { %v3497_v35 = vpop.eup %3496 }
 0x726   :  { %v1167_v18 = vmul.f32 %v3497_v35, %v3903_v0 }
 0x728   :  { %v1169_v36 = vsel %vm427_vm3, %v1167_v18, 0.0 }
 0x729   :  { %v3499_v37 = vpop.eup %3498  ;;  %1170 = vadd.xlane.f32.xlu1 %v1169_v36 }
 0x72a   :  { %v1168_v38 = vmul.f32 %v3499_v37, %v3905_v1 }
 0x72c   :  { %v1172_v39 = vsel %vm427_vm3, %v1168_v38, 0.0 }
 0x72d   :  { %1173 = vadd.xlane.f32.xlu1 %v1172_v39 }
 0x7b6   :  { %v1171_v51 = vpop.xlane.xlu1 %1170 }
 0x7b7   :  { %v1175_v52 = vmax.f32 %v1171_v51, 1e-20 }
 0x7b9   :  { %3500 = vrcp.f32 %v1175_v52 }
 0x7ba   :  { %v1174_v53 = vpop.xlane.xlu1 %1173 }
 0x7bb   :  { %v1176_v54 = vmax.f32 %v1174_v53, 1e-20 }
 0x7bd   :  { %3502 = vrcp.f32 %v1176_v54 }
 0x7c3   :  { %v3501_v55 = vpop.eup %3500 }
 0x7c4   :  { %v1179_v57 = vmul.f32 %v3501_v55, %v1167_v18 }
 0x7c7   :  { %v3503_v56 = vpop.eup %3502 }
 0x7c8   :  { %v1180_v58 = vmul.f32 %v3503_v56, %v1168_v38 }
 0x7ca   :  { %v1181_v59 = vpack.c.bf16 %v1180_v58, %v1179_v57 }
 0x7cc   :  { %3303 = vmatmul.mubr.msk.bf16.vlgmr.msra.gmra.mrb[20].mxu0 %vm427_vm3, %v1181_v59  ;;  %3304 = vmatmul.mubr.msk.bf16.vlgmr.msra.gmra.mrb[20].mxu1 %vm427_vm3, %v1181_v59 }
 0x89f   :  { %v1223_v2 = vpop.f32.mrb[20].mxu0  ;;  %v1266_v3 = vpop.f32.mrb[20].mxu1 }
 0x8a0   :  { %v3344_v16 = vadd.f32 %v1223_v2, %v690_v34  ;;  %v3348_v4 = vadd.f32 %v1266_v3, %v698_v61  ;;  %v1225_v6 = vpop.f32.mrb[21].mxu0  ;;  %v1268_v7 = vpop.f32.mrb[21].mxu1 }
 0x8a1   :  { %v3345_v8 = vadd.f32 %v1225_v6, %v694_v62  ;;  %v3349_v9 = vadd.f32 %v1268_v7, %v702_v63  ;;  %v1227_v10 = vpop.f32.mrb[22].mxu0  ;;  %v1270_v11 = vpop.f32.mrb[22].mxu1 }
 0x8a2   :  { %v3346_v12 = vadd.f32 %v1227_v10, %v690_v34  ;;  %v3350_v13 = vadd.f32 %v1270_v11, %v698_v61  ;;  %v1229_v20 = vpop.f32.mrb[23].mxu0  ;;  %v1272_v21 = vpop.f32.mrb[23].mxu1  ;;  %v1275_v25 = vmax.f32 %v3344_v16, 0.0  ;;  %v1277_v26 = vmax.f32 %v3348_v4, 0.0 }
 0x8a3   :  { %v3347_v23 = vadd.f32 %v1229_v20, %v694_v62  ;;  %v3351_v24 = vadd.f32 %v1272_v21, %v702_v63  ;;  %v1276_v28 = vmax.f32 %v3345_v8, 0.0  ;;  %v1278_v29 = vmax.f32 %v3349_v9, 0.0 }
 0x8a4   :  { %v1279_v27 = vmax.f32 %v3346_v12, 0.0  ;;  %v1281_v15 = vmax.f32 %v3350_v13, 0.0 }
 0x8a5   :  { %v1280_v30 = vmax.f32 %v3347_v23, 0.0  ;;  %v1282_v31 = vmax.f32 %v3351_v24, 0.0 }
 0x8a6   :  { %v4028_v32 = vpack.c.bf16 %v1279_v27, %v1275_v25  ;;  %v4030_v33 = vpack.c.bf16 %v1281_v15, %v1277_v26 }
 0x8a7   :  { %v4032_v35 = vpack.c.bf16 %v1280_v30, %v1276_v28  ;;  %v4034_v18 = vpack.c.bf16 %v1282_v31, %v1278_v29 }
 0x8a8   :  { %3686 = dma.done.wait [#allocation6 + $0x2], 65536 }
 0x8a9   :  { %3687 = vsyncadd [#allocation6 + $0x2], 4294901760  ;;  %1919 = vmatprep.mubr.bf16.mxu1 %v4032_v35  ;;  %2005 = vmatprep.mubr.bf16.mxu0 %v4032_v35  ;;  %v1292_v36 = vld [vmem:[#allocation4 + $0x8] sm:$0xff]  ;;  %v1294_v37 = vld [vmem:[#allocation4 + $0x18] sm:$0xff] }
 0x8aa   :  { %v1291_v38 = vld [vmem:[#allocation4] sm:$0xff]  ;;  %1887 = vmatprep.subr.bf16.mxu1 %v1292_v36  ;;  %1973 = vmatprep.subr.bf16.mxu0 %v1294_v37  ;;  %v1293_v39 = vld [vmem:[#allocation4 + $0x10] sm:$0xff]  ;;  %v1308_v40 = vld [vmem:[#allocation4 + $0x88] sm:$0xff] }
 0x8ab   :  { %v1310_v41 = vld [vmem:[#allocation4 + $0x98] sm:$0xff]  ;;  %1888 = vmatpush1.bf16.msra.mxu1 %v1291_v38  ;;  %1974 = vmatpush1.bf16.msra.mxu0 %v1293_v39  ;;  %v1307_v42 = vld [vmem:[#allocation4 + $0x80] sm:$0xff]  ;;  %v1309_v43 = vld [vmem:[#allocation4 + $0x90] sm:$0xff] }
 0x8ac   :  { %1889 = vmatprep.subr.bf16.mxu1 %v1308_v40  ;;  %1975 = vmatprep.subr.bf16.mxu0 %v1310_v41  ;;  %v1324_v44 = vld [vmem:[#allocation4 + $0x108] sm:$0xff]  ;;  %v1326_v45 = vld [vmem:[#allocation4 + $0x118] sm:$0xff]  ;;  %v1323_v46 = vld [vmem:[#allocation4 + $0x100] sm:$0xff] }
 0x8ad   :  { %v1325_v51 = vld [vmem:[#allocation4 + $0x110] sm:$0xff]  ;;  %v1340_v52 = vld [vmem:[#allocation4 + $0x188] sm:$0xff]  ;;  %v1342_v53 = vld [vmem:[#allocation4 + $0x198] sm:$0xff] }
 0x8ae   :  { %v1339_v54 = vld [vmem:[#allocation4 + $0x180] sm:$0xff]  ;;  %v1341_v55 = vld [vmem:[#allocation4 + $0x190] sm:$0xff]  ;;  %v1356_v56 = vld [vmem:[#allocation4 + $0x208] sm:$0xff] }
 0x8af   :  { %1890 = vmatpush1.bf16.msra.mxu1 %v1307_v42  ;;  %1976 = vmatpush1.bf16.msra.mxu0 %v1309_v43  ;;  %v1358_v57 = vld [vmem:[#allocation4 + $0x218] sm:$0xff]  ;;  %v1355_v58 = vld [vmem:[#allocation4 + $0x200] sm:$0xff]  ;;  %v1357_v59 = vld [vmem:[#allocation4 + $0x210] sm:$0xff] }
 0x8b0   :  { %1891 = vmatprep.subr.bf16.mxu1 %v1324_v44  ;;  %1977 = vmatprep.subr.bf16.mxu0 %v1326_v45  ;;  %v1372_v34 = vld [vmem:[#allocation4 + $0x288] sm:$0xff]  ;;  %v1374_v61 = vld [vmem:[#allocation4 + $0x298] sm:$0xff]  ;;  %v1371_v62 = vld [vmem:[#allocation4 + $0x280] sm:$0xff] }
 0x8b1   :  { %v1373_v63 = vld [vmem:[#allocation4 + $0x290] sm:$0xff]  ;;  %v1388_v2 = vld [vmem:[#allocation4 + $0x308] sm:$0xff]  ;;  %v1390_v3 = vld [vmem:[#allocation4 + $0x318] sm:$0xff] }
 0x8b2   :  { %v1387_v16 = vld [vmem:[#allocation4 + $0x300] sm:$0xff]  ;;  %v1389_v4 = vld [vmem:[#allocation4 + $0x310] sm:$0xff]  ;;  %v1404_v6 = vld [vmem:[#allocation4 + $0x388] sm:$0xff] }
 0x8b3   :  { %1892 = vmatpush1.bf16.msra.mxu1 %v1323_v46  ;;  %1978 = vmatpush1.bf16.msra.mxu0 %v1325_v51  ;;  %v1406_v7 = vld [vmem:[#allocation4 + $0x398] sm:$0xff]  ;;  %v1403_v8 = vld [vmem:[#allocation4 + $0x380] sm:$0xff]  ;;  %v1405_v9 = vld [vmem:[#allocation4 + $0x390] sm:$0xff] }
 0x8b4   :  { %1893 = vmatprep.subr.bf16.mxu1 %v1340_v52  ;;  %1979 = vmatprep.subr.bf16.mxu0 %v1342_v53  ;;  %v1420_v10 = vld [vmem:[#allocation4 + $0x408] sm:$0xff]  ;;  %v1422_v11 = vld [vmem:[#allocation4 + $0x418] sm:$0xff]  ;;  %v1419_v12 = vld [vmem:[#allocation4 + $0x400] sm:$0xff] }
 0x8b5   :  { %v1421_v13 = vld [vmem:[#allocation4 + $0x410] sm:$0xff]  ;;  %v1436_v20 = vld [vmem:[#allocation4 + $0x488] sm:$0xff]  ;;  %v1438_v21 = vld [vmem:[#allocation4 + $0x498] sm:$0xff] }
 0x8b6   :  { %v1435_v23 = vld [vmem:[#allocation4 + $0x480] sm:$0xff]  ;;  %v1437_v24 = vld [vmem:[#allocation4 + $0x490] sm:$0xff]  ;;  %v1452_v25 = vld [vmem:[#allocation4 + $0x508] sm:$0xff] }
 0x8b7   :  { %1894 = vmatpush1.bf16.msra.mxu1 %v1339_v54  ;;  %1980 = vmatpush1.bf16.msra.mxu0 %v1341_v55  ;;  %v1454_v26 = vld [vmem:[#allocation4 + $0x518] sm:$0xff]  ;;  %v1451_v27 = vld [vmem:[#allocation4 + $0x500] sm:$0xff]  ;;  %v1453_v15 = vld [vmem:[#allocation4 + $0x510] sm:$0xff] }
 0x8b8   :  { %1895 = vmatprep.subr.bf16.mxu1 %v1356_v56  ;;  %1981 = vmatprep.subr.bf16.mxu0 %v1358_v57  ;;  %v1468_v28 = vld [vmem:[#allocation4 + $0x588] sm:$0xff]  ;;  %v1470_v29 = vld [vmem:[#allocation4 + $0x598] sm:$0xff]  ;;  %v1467_v30 = vld [vmem:[#allocation4 + $0x580] sm:$0xff] }
 0x8b9   :  { %v1469_v31 = vld [vmem:[#allocation4 + $0x590] sm:$0xff]  ;;  %v1484_v36 = vld [vmem:[#allocation4 + $0x608] sm:$0xff]  ;;  %v1486_v37 = vld [vmem:[#allocation4 + $0x618] sm:$0xff] }
 0x8ba   :  { %v1483_v38 = vld [vmem:[#allocation4 + $0x600] sm:$0xff]  ;;  %v1485_v39 = vld [vmem:[#allocation4 + $0x610] sm:$0xff]  ;;  %v1500_v40 = vld [vmem:[#allocation4 + $0x688] sm:$0xff] }
 0x8bb   :  { %1896 = vmatpush1.bf16.msra.mxu1 %v1355_v58  ;;  %1982 = vmatpush1.bf16.msra.mxu0 %v1357_v59  ;;  %v1502_v41 = vld [vmem:[#allocation4 + $0x698] sm:$0xff]  ;;  %v1499_v42 = vld [vmem:[#allocation4 + $0x680] sm:$0xff]  ;;  %v1501_v43 = vld [vmem:[#allocation4 + $0x690] sm:$0xff] }
 0x8bc   :  { %1897 = vmatprep.subr.bf16.mxu1 %v1372_v34  ;;  %1983 = vmatprep.subr.bf16.mxu0 %v1374_v61  ;;  %v1516_v44 = vld [vmem:[#allocation4 + $0x708] sm:$0xff]  ;;  %v1518_v45 = vld [vmem:[#allocation4 + $0x718] sm:$0xff]  ;;  %v1515_v46 = vld [vmem:[#allocation4 + $0x700] sm:$0xff] }
 0x8bd   :  { %v1517_v51 = vld [vmem:[#allocation4 + $0x710] sm:$0xff]  ;;  %v1532_v52 = vld [vmem:[#allocation4 + $0x788] sm:$0xff]  ;;  %v1534_v53 = vld [vmem:[#allocation4 + $0x798] sm:$0xff] }
 0x8be   :  { %v1531_v54 = vld [vmem:[#allocation4 + $0x780] sm:$0xff]  ;;  %v1533_v55 = vld [vmem:[#allocation4 + $0x790] sm:$0xff]  ;;  %v1548_v56 = vld [vmem:[#allocation4 + $0x808] sm:$0xff] }
 0x8bf   :  { %1898 = vmatpush1.bf16.msra.mxu1 %v1371_v62  ;;  %1984 = vmatpush1.bf16.msra.mxu0 %v1373_v63  ;;  %v1550_v57 = vld [vmem:[#allocation4 + $0x818] sm:$0xff]  ;;  %v1547_v58 = vld [vmem:[#allocation4 + $0x800] sm:$0xff]  ;;  %v1549_v59 = vld [vmem:[#allocation4 + $0x810] sm:$0xff] }
 0x8c0   :  { %1899 = vmatprep.subr.bf16.mxu1 %v1388_v2  ;;  %1985 = vmatprep.subr.bf16.mxu0 %v1390_v3  ;;  %v1564_v34 = vld [vmem:[#allocation4 + $0x888] sm:$0xff]  ;;  %v1566_v61 = vld [vmem:[#allocation4 + $0x898] sm:$0xff]  ;;  %v1563_v62 = vld [vmem:[#allocation4 + $0x880] sm:$0xff] }
 0x8c1   :  { %v1565_v63 = vld [vmem:[#allocation4 + $0x890] sm:$0xff]  ;;  %v1580_v2 = vld [vmem:[#allocation4 + $0x908] sm:$0xff]  ;;  %v1582_v3 = vld [vmem:[#allocation4 + $0x918] sm:$0xff] }
 0x8c3   :  { %1900 = vmatpush1.bf16.msra.mxu1 %v1387_v16  ;;  %1986 = vmatpush1.bf16.msra.mxu0 %v1389_v4  ;;  %v1579_v16 = vld [vmem:[#allocation4 + $0x900] sm:$0xff]  ;;  %v1581_v4 = vld [vmem:[#allocation4 + $0x910] sm:$0xff] }
 0x8c4   :  { %1901 = vmatprep.subr.bf16.mxu1 %v1404_v6  ;;  %1987 = vmatprep.subr.bf16.mxu0 %v1406_v7  ;;  %v1596_v6 = vld [vmem:[#allocation4 + $0x988] sm:$0xff]  ;;  %v1598_v7 = vld [vmem:[#allocation4 + $0x998] sm:$0xff] }
 0x8c7   :  { %1902 = vmatpush1.bf16.msra.mxu1 %v1403_v8  ;;  %1988 = vmatpush1.bf16.msra.mxu0 %v1405_v9  ;;  %v1595_v8 = vld [vmem:[#allocation4 + $0x980] sm:$0xff]  ;;  %v1597_v9 = vld [vmem:[#allocation4 + $0x990] sm:$0xff] }
 0x8c8   :  { %1903 = vmatprep.subr.bf16.mxu1 %v1420_v10  ;;  %1989 = vmatprep.subr.bf16.mxu0 %v1422_v11  ;;  %v1612_v10 = vld [vmem:[#allocation4 + $0xa08] sm:$0xff]  ;;  %v1614_v11 = vld [vmem:[#allocation4 + $0xa18] sm:$0xff] }
 0x8cb   :  { %1904 = vmatpush1.bf16.msra.mxu1 %v1419_v12  ;;  %1990 = vmatpush1.bf16.msra.mxu0 %v1421_v13  ;;  %v1611_v12 = vld [vmem:[#allocation4 + $0xa00] sm:$0xff]  ;;  %v1613_v13 = vld [vmem:[#allocation4 + $0xa10] sm:$0xff] }
 0x8cc   :  { %1905 = vmatprep.subr.bf16.mxu1 %v1436_v20  ;;  %1991 = vmatprep.subr.bf16.mxu0 %v1438_v21  ;;  %v1628_v20 = vld [vmem:[#allocation4 + $0xa88] sm:$0xff]  ;;  %v1630_v21 = vld [vmem:[#allocation4 + $0xa98] sm:$0xff] }
 0x8cf   :  { %1906 = vmatpush1.bf16.msra.mxu1 %v1435_v23  ;;  %1992 = vmatpush1.bf16.msra.mxu0 %v1437_v24  ;;  %v1627_v23 = vld [vmem:[#allocation4 + $0xa80] sm:$0xff]  ;;  %v1629_v24 = vld [vmem:[#allocation4 + $0xa90] sm:$0xff] }
 0x8d0   :  { %1907 = vmatprep.subr.bf16.mxu1 %v1452_v25  ;;  %1993 = vmatprep.subr.bf16.mxu0 %v1454_v26  ;;  %v1644_v25 = vld [vmem:[#allocation4 + $0xb08] sm:$0xff]  ;;  %v1646_v26 = vld [vmem:[#allocation4 + $0xb18] sm:$0xff] }
 0x8d3   :  { %1908 = vmatpush1.bf16.msra.mxu1 %v1451_v27  ;;  %1994 = vmatpush1.bf16.msra.mxu0 %v1453_v15  ;;  %v1643_v27 = vld [vmem:[#allocation4 + $0xb00] sm:$0xff]  ;;  %v1645_v15 = vld [vmem:[#allocation4 + $0xb10] sm:$0xff] }
 0x8d4   :  { %1909 = vmatprep.subr.bf16.mxu1 %v1468_v28  ;;  %1995 = vmatprep.subr.bf16.mxu0 %v1470_v29  ;;  %v1660_v28 = vld [vmem:[#allocation4 + $0xb88] sm:$0xff]  ;;  %v1662_v29 = vld [vmem:[#allocation4 + $0xb98] sm:$0xff] }
 0x8d7   :  { %1910 = vmatpush1.bf16.msra.mxu1 %v1467_v30  ;;  %1996 = vmatpush1.bf16.msra.mxu0 %v1469_v31  ;;  %v1659_v30 = vld [vmem:[#allocation4 + $0xb80] sm:$0xff]  ;;  %v1661_v31 = vld [vmem:[#allocation4 + $0xb90] sm:$0xff] }
 0x8d8   :  { %1911 = vmatprep.subr.bf16.mxu1 %v1484_v36  ;;  %1997 = vmatprep.subr.bf16.mxu0 %v1486_v37  ;;  %v1676_v36 = vld [vmem:[#allocation4 + $0xc08] sm:$0xff]  ;;  %v1678_v37 = vld [vmem:[#allocation4 + $0xc18] sm:$0xff] }
 0x8db   :  { %1912 = vmatpush1.bf16.msra.mxu1 %v1483_v38  ;;  %1998 = vmatpush1.bf16.msra.mxu0 %v1485_v39  ;;  %v1675_v38 = vld [vmem:[#allocation4 + $0xc00] sm:$0xff]  ;;  %v1677_v39 = vld [vmem:[#allocation4 + $0xc10] sm:$0xff] }
 0x8dc   :  { %1913 = vmatprep.subr.bf16.mxu1 %v1500_v40  ;;  %1999 = vmatprep.subr.bf16.mxu0 %v1502_v41  ;;  %v1692_v40 = vld [vmem:[#allocation4 + $0xc88] sm:$0xff]  ;;  %v1694_v41 = vld [vmem:[#allocation4 + $0xc98] sm:$0xff] }
 0x8df   :  { %1914 = vmatpush1.bf16.msra.mxu1 %v1499_v42  ;;  %2000 = vmatpush1.bf16.msra.mxu0 %v1501_v43  ;;  %v1691_v42 = vld [vmem:[#allocation4 + $0xc80] sm:$0xff]  ;;  %v1693_v43 = vld [vmem:[#allocation4 + $0xc90] sm:$0xff] }
 0x8e0   :  { %1915 = vmatprep.subr.bf16.mxu1 %v1516_v44  ;;  %2001 = vmatprep.subr.bf16.mxu0 %v1518_v45  ;;  %v1708_v44 = vld [vmem:[#allocation4 + $0xd08] sm:$0xff]  ;;  %v1710_v45 = vld [vmem:[#allocation4 + $0xd18] sm:$0xff] }
 0x8e3   :  { %1916 = vmatpush1.bf16.msra.mxu1 %v1515_v46  ;;  %2002 = vmatpush1.bf16.msra.mxu0 %v1517_v51  ;;  %v1707_v46 = vld [vmem:[#allocation4 + $0xd00] sm:$0xff]  ;;  %v1709_v51 = vld [vmem:[#allocation4 + $0xd10] sm:$0xff] }
 0x8e4   :  { %1917 = vmatprep.subr.bf16.mxu1 %v1532_v52  ;;  %2003 = vmatprep.subr.bf16.mxu0 %v1534_v53  ;;  %v1724_v52 = vld [vmem:[#allocation4 + $0xd88] sm:$0xff]  ;;  %v1726_v53 = vld [vmem:[#allocation4 + $0xd98] sm:$0xff] }
 0x8e7   :  { %1918 = vmatpush1.bf16.msra.mxu1 %v1531_v54  ;;  %2004 = vmatpush1.bf16.msra.mxu0 %v1533_v55  ;;  %v1723_v54 = vld [vmem:[#allocation4 + $0xd80] sm:$0xff]  ;;  %v1725_v55 = vld [vmem:[#allocation4 + $0xd90] sm:$0xff] }
 0x8e8   :  { %1930 = vmatprep.subr.bf16.mxu1 %v1548_v56  ;;  %2016 = vmatprep.subr.bf16.mxu0 %v1550_v57  ;;  %v1740_v56 = vld [vmem:[#allocation4 + $0xe08] sm:$0xff]  ;;  %v1742_v57 = vld [vmem:[#allocation4 + $0xe18] sm:$0xff] }
 0x8ea   :  { %1920 = vmatmul.mubr.bf16.vlgmr.msra.gmra.mrb[24].mxu1 %v4028_v32  ;;  %2006 = vmatmul.mubr.bf16.vlgmr.msra.gmra.mrb[28].mxu0 %v4028_v32 }
 0x8eb   :  { %1931 = vmatpush1.bf16.msra.mxu1 %v1547_v58  ;;  %2017 = vmatpush1.bf16.msra.mxu0 %v1549_v59  ;;  %v1739_v58 = vld [vmem:[#allocation4 + $0xe00] sm:$0xff]  ;;  %v1741_v59 = vld [vmem:[#allocation4 + $0xe10] sm:$0xff] }
 0x8ec   :  { %1932 = vmatprep.subr.bf16.mxu1 %v1564_v34  ;;  %2018 = vmatprep.subr.bf16.mxu0 %v1566_v61  ;;  %v1756_v34 = vld [vmem:[#allocation4 + $0xe88] sm:$0xff]  ;;  %v1758_v61 = vld [vmem:[#allocation4 + $0xe98] sm:$0xff] }
 0x8ed   :  { %1962 = vmatprep.mubr.bf16.mxu1 %v4034_v18  ;;  %2048 = vmatprep.mubr.bf16.mxu0 %v4034_v18 }
 0x8ef   :  { %1933 = vmatpush1.bf16.msra.mxu1 %v1563_v62  ;;  %2019 = vmatpush1.bf16.msra.mxu0 %v1565_v63  ;;  %v1755_v62 = vld [vmem:[#allocation4 + $0xe80] sm:$0xff]  ;;  %v1757_v63 = vld [vmem:[#allocation4 + $0xe90] sm:$0xff] }
 0x8f0   :  { %1934 = vmatprep.subr.bf16.mxu1 %v1580_v2  ;;  %2020 = vmatprep.subr.bf16.mxu0 %v1582_v3  ;;  %v1772_v2 = vld [vmem:[#allocation4 + $0xf08] sm:$0xff]  ;;  %v1774_v3 = vld [vmem:[#allocation4 + $0xf18] sm:$0xff] }
 0x8f3   :  { %1935 = vmatpush1.bf16.msra.mxu1 %v1579_v16  ;;  %2021 = vmatpush1.bf16.msra.mxu0 %v1581_v4  ;;  %v1771_v16 = vld [vmem:[#allocation4 + $0xf00] sm:$0xff]  ;;  %v1773_v4 = vld [vmem:[#allocation4 + $0xf10] sm:$0xff] }
 0x8f4   :  { %1936 = vmatprep.subr.bf16.mxu1 %v1596_v6  ;;  %2022 = vmatprep.subr.bf16.mxu0 %v1598_v7  ;;  %v1788_v6 = vld [vmem:[#allocation4 + $0xf88] sm:$0xff]  ;;  %v1790_v7 = vld [vmem:[#allocation4 + $0xf98] sm:$0xff] }
 0x8f7   :  { %1937 = vmatpush1.bf16.msra.mxu1 %v1595_v8  ;;  %2023 = vmatpush1.bf16.msra.mxu0 %v1597_v9  ;;  %v1787_v8 = vld [vmem:[#allocation4 + $0xf80] sm:$0xff]  ;;  %v1789_v9 = vld [vmem:[#allocation4 + $0xf90] sm:$0xff] }
 0x8f8   :  { %1938 = vmatprep.subr.bf16.mxu1 %v1612_v10  ;;  %2024 = vmatprep.subr.bf16.mxu0 %v1614_v11  ;;  %v1296_v10 = vld [vmem:[#allocation4 + $0x28] sm:$0xff]  ;;  %v1298_v11 = vld [vmem:[#allocation4 + $0x38] sm:$0xff] }
 0x8fb   :  { %1939 = vmatpush1.bf16.msra.mxu1 %v1611_v12  ;;  %2025 = vmatpush1.bf16.msra.mxu0 %v1613_v13  ;;  %v1295_v12 = vld [vmem:[#allocation4 + $0x20] sm:$0xff]  ;;  %v1297_v13 = vld [vmem:[#allocation4 + $0x30] sm:$0xff] }
 0x8fc   :  { %1940 = vmatprep.subr.bf16.mxu1 %v1628_v20  ;;  %2026 = vmatprep.subr.bf16.mxu0 %v1630_v21  ;;  %v1312_v20 = vld [vmem:[#allocation4 + $0xa8] sm:$0xff]  ;;  %v1314_v21 = vld [vmem:[#allocation4 + $0xb8] sm:$0xff] }
 0x8ff   :  { %1941 = vmatpush1.bf16.msra.mxu1 %v1627_v23  ;;  %2027 = vmatpush1.bf16.msra.mxu0 %v1629_v24  ;;  %v1311_v23 = vld [vmem:[#allocation4 + $0xa0] sm:$0xff]  ;;  %v1313_v24 = vld [vmem:[#allocation4 + $0xb0] sm:$0xff] }
 0x900   :  { %1942 = vmatprep.subr.bf16.mxu1 %v1644_v25  ;;  %2028 = vmatprep.subr.bf16.mxu0 %v1646_v26  ;;  %v1328_v25 = vld [vmem:[#allocation4 + $0x128] sm:$0xff]  ;;  %v1330_v26 = vld [vmem:[#allocation4 + $0x138] sm:$0xff] }
 0x903   :  { %1943 = vmatpush1.bf16.msra.mxu1 %v1643_v27  ;;  %2029 = vmatpush1.bf16.msra.mxu0 %v1645_v15  ;;  %v1327_v27 = vld [vmem:[#allocation4 + $0x120] sm:$0xff]  ;;  %v1329_v15 = vld [vmem:[#allocation4 + $0x130] sm:$0xff] }
 0x904   :  { %1944 = vmatprep.subr.bf16.mxu1 %v1660_v28  ;;  %2030 = vmatprep.subr.bf16.mxu0 %v1662_v29  ;;  %v1344_v28 = vld [vmem:[#allocation4 + $0x1a8] sm:$0xff]  ;;  %v1346_v29 = vld [vmem:[#allocation4 + $0x1b8] sm:$0xff] }
 0x907   :  { %1945 = vmatpush1.bf16.msra.mxu1 %v1659_v30  ;;  %2031 = vmatpush1.bf16.msra.mxu0 %v1661_v31  ;;  %v1343_v30 = vld [vmem:[#allocation4 + $0x1a0] sm:$0xff]  ;;  %v1345_v31 = vld [vmem:[#allocation4 + $0x1b0] sm:$0xff] }
 0x908   :  { %1946 = vmatprep.subr.bf16.mxu1 %v1676_v36  ;;  %2032 = vmatprep.subr.bf16.mxu0 %v1678_v37  ;;  %v1360_v36 = vld [vmem:[#allocation4 + $0x228] sm:$0xff]  ;;  %v1362_v37 = vld [vmem:[#allocation4 + $0x238] sm:$0xff] }
 0x90b   :  { %1947 = vmatpush1.bf16.msra.mxu1 %v1675_v38  ;;  %2033 = vmatpush1.bf16.msra.mxu0 %v1677_v39  ;;  %v1359_v38 = vld [vmem:[#allocation4 + $0x220] sm:$0xff]  ;;  %v1361_v39 = vld [vmem:[#allocation4 + $0x230] sm:$0xff] }
 0x90c   :  { %1948 = vmatprep.subr.bf16.mxu1 %v1692_v40  ;;  %2034 = vmatprep.subr.bf16.mxu0 %v1694_v41  ;;  %v1376_v40 = vld [vmem:[#allocation4 + $0x2a8] sm:$0xff]  ;;  %v1378_v41 = vld [vmem:[#allocation4 + $0x2b8] sm:$0xff] }
 0x90f   :  { %1949 = vmatpush1.bf16.msra.mxu1 %v1691_v42  ;;  %2035 = vmatpush1.bf16.msra.mxu0 %v1693_v43  ;;  %v1375_v42 = vld [vmem:[#allocation4 + $0x2a0] sm:$0xff]  ;;  %v1377_v43 = vld [vmem:[#allocation4 + $0x2b0] sm:$0xff] }
 0x910   :  { %1950 = vmatprep.subr.bf16.mxu1 %v1708_v44  ;;  %2036 = vmatprep.subr.bf16.mxu0 %v1710_v45  ;;  %v1392_v44 = vld [vmem:[#allocation4 + $0x328] sm:$0xff]  ;;  %v1394_v45 = vld [vmem:[#allocation4 + $0x338] sm:$0xff] }
 0x913   :  { %1951 = vmatpush1.bf16.msra.mxu1 %v1707_v46  ;;  %2037 = vmatpush1.bf16.msra.mxu0 %v1709_v51  ;;  %v1391_v46 = vld [vmem:[#allocation4 + $0x320] sm:$0xff]  ;;  %v1393_v51 = vld [vmem:[#allocation4 + $0x330] sm:$0xff] }
 0x914   :  { %1952 = vmatprep.subr.bf16.mxu1 %v1724_v52  ;;  %2038 = vmatprep.subr.bf16.mxu0 %v1726_v53  ;;  %v1408_v52 = vld [vmem:[#allocation4 + $0x3a8] sm:$0xff]  ;;  %v1410_v53 = vld [vmem:[#allocation4 + $0x3b8] sm:$0xff] }
 0x917   :  { %1953 = vmatpush1.bf16.msra.mxu1 %v1723_v54  ;;  %2039 = vmatpush1.bf16.msra.mxu0 %v1725_v55  ;;  %v1407_v54 = vld [vmem:[#allocation4 + $0x3a0] sm:$0xff]  ;;  %v1409_v55 = vld [vmem:[#allocation4 + $0x3b0] sm:$0xff] }
 0x918   :  { %1954 = vmatprep.subr.bf16.mxu1 %v1740_v56  ;;  %2040 = vmatprep.subr.bf16.mxu0 %v1742_v57  ;;  %v1424_v56 = vld [vmem:[#allocation4 + $0x428] sm:$0xff]  ;;  %v1426_v57 = vld [vmem:[#allocation4 + $0x438] sm:$0xff] }
 0x91b   :  { %1955 = vmatpush1.bf16.msra.mxu1 %v1739_v58  ;;  %2041 = vmatpush1.bf16.msra.mxu0 %v1741_v59  ;;  %v1423_v58 = vld [vmem:[#allocation4 + $0x420] sm:$0xff]  ;;  %v1425_v59 = vld [vmem:[#allocation4 + $0x430] sm:$0xff] }
 0x91c   :  { %1956 = vmatprep.subr.bf16.mxu1 %v1756_v34  ;;  %2042 = vmatprep.subr.bf16.mxu0 %v1758_v61  ;;  %v1440_v34 = vld [vmem:[#allocation4 + $0x4a8] sm:$0xff]  ;;  %v1442_v61 = vld [vmem:[#allocation4 + $0x4b8] sm:$0xff] }
 0x91f   :  { %1957 = vmatpush1.bf16.msra.mxu1 %v1755_v62  ;;  %2043 = vmatpush1.bf16.msra.mxu0 %v1757_v63  ;;  %v1439_v62 = vld [vmem:[#allocation4 + $0x4a0] sm:$0xff]  ;;  %v1441_v63 = vld [vmem:[#allocation4 + $0x4b0] sm:$0xff] }
 0x920   :  { %1958 = vmatprep.subr.bf16.mxu1 %v1772_v2  ;;  %2044 = vmatprep.subr.bf16.mxu0 %v1774_v3  ;;  %v1456_v2 = vld [vmem:[#allocation4 + $0x528] sm:$0xff]  ;;  %v1458_v3 = vld [vmem:[#allocation4 + $0x538] sm:$0xff] }
 0x923   :  { %1959 = vmatpush1.bf16.msra.mxu1 %v1771_v16  ;;  %2045 = vmatpush1.bf16.msra.mxu0 %v1773_v4  ;;  %v1455_v16 = vld [vmem:[#allocation4 + $0x520] sm:$0xff]  ;;  %v1457_v4 = vld [vmem:[#allocation4 + $0x530] sm:$0xff] }
 0x924   :  { %1960 = vmatprep.subr.bf16.mxu1 %v1788_v6  ;;  %2046 = vmatprep.subr.bf16.mxu0 %v1790_v7  ;;  %v1472_v6 = vld [vmem:[#allocation4 + $0x5a8] sm:$0xff]  ;;  %v1474_v7 = vld [vmem:[#allocation4 + $0x5b8] sm:$0xff] }
 0x927   :  { %1961 = vmatpush1.bf16.msra.mxu1 %v1787_v8  ;;  %2047 = vmatpush1.bf16.msra.mxu0 %v1789_v9  ;;  %v1471_v8 = vld [vmem:[#allocation4 + $0x5a0] sm:$0xff]  ;;  %v1473_v9 = vld [vmem:[#allocation4 + $0x5b0] sm:$0xff] }
 0x928   :  { %2059 = vmatprep.subr.bf16.mxu1 %v1296_v10  ;;  %2145 = vmatprep.subr.bf16.mxu0 %v1298_v11  ;;  %v1488_v10 = vld [vmem:[#allocation4 + $0x628] sm:$0xff]  ;;  %v1490_v11 = vld [vmem:[#allocation4 + $0x638] sm:$0xff] }
 0x92a   :  { %1963 = vmatmul.mubr.bf16.vlgmr.msra.gmra.mrb[24].mxu1 %v4030_v33  ;;  %2049 = vmatmul.mubr.bf16.vlgmr.msra.gmra.mrb[28].mxu0 %v4030_v33 }
 0x92b   :  { %2060 = vmatpush1.bf16.msra.mxu1 %v1295_v12  ;;  %2146 = vmatpush1.bf16.msra.mxu0 %v1297_v13  ;;  %v1487_v12 = vld [vmem:[#allocation4 + $0x620] sm:$0xff]  ;;  %v1489_v13 = vld [vmem:[#allocation4 + $0x630] sm:$0xff] }
 0x92c   :  { %2061 = vmatprep.subr.bf16.mxu1 %v1312_v20  ;;  %2147 = vmatprep.subr.bf16.mxu0 %v1314_v21  ;;  %v1504_v20 = vld [vmem:[#allocation4 + $0x6a8] sm:$0xff]  ;;  %v1506_v21 = vld [vmem:[#allocation4 + $0x6b8] sm:$0xff] }
 0x92d   :  { %2091 = vmatprep.mubr.bf16.mxu1 %v4032_v35  ;;  %2177 = vmatprep.mubr.bf16.mxu0 %v4032_v35 }
 0x92f   :  { %2062 = vmatpush1.bf16.msra.mxu1 %v1311_v23  ;;  %2148 = vmatpush1.bf16.msra.mxu0 %v1313_v24  ;;  %v1503_v23 = vld [vmem:[#allocation4 + $0x6a0] sm:$0xff]  ;;  %v1505_v24 = vld [vmem:[#allocation4 + $0x6b0] sm:$0xff] }
 0x930   :  { %2063 = vmatprep.subr.bf16.mxu1 %v1328_v25  ;;  %2149 = vmatprep.subr.bf16.mxu0 %v1330_v26  ;;  %v1520_v25 = vld [vmem:[#allocation4 + $0x728] sm:$0xff]  ;;  %v1522_v26 = vld [vmem:[#allocation4 + $0x738] sm:$0xff] }
 0x933   :  { %2064 = vmatpush1.bf16.msra.mxu1 %v1327_v27  ;;  %2150 = vmatpush1.bf16.msra.mxu0 %v1329_v15  ;;  %v1519_v27 = vld [vmem:[#allocation4 + $0x720] sm:$0xff]  ;;  %v1521_v15 = vld [vmem:[#allocation4 + $0x730] sm:$0xff] }
 0x934   :  { %2065 = vmatprep.subr.bf16.mxu1 %v1344_v28  ;;  %2151 = vmatprep.subr.bf16.mxu0 %v1346_v29  ;;  %v1536_v28 = vld [vmem:[#allocation4 + $0x7a8] sm:$0xff]  ;;  %v1538_v29 = vld [vmem:[#allocation4 + $0x7b8] sm:$0xff] }
 0x937   :  { %2066 = vmatpush1.bf16.msra.mxu1 %v1343_v30  ;;  %2152 = vmatpush1.bf16.msra.mxu0 %v1345_v31  ;;  %v1535_v30 = vld [vmem:[#allocation4 + $0x7a0] sm:$0xff]  ;;  %v1537_v31 = vld [vmem:[#allocation4 + $0x7b0] sm:$0xff] }
 0x938   :  { %2067 = vmatprep.subr.bf16.mxu1 %v1360_v36  ;;  %2153 = vmatprep.subr.bf16.mxu0 %v1362_v37  ;;  %v1552_v36 = vld [vmem:[#allocation4 + $0x828] sm:$0xff]  ;;  %v1554_v37 = vld [vmem:[#allocation4 + $0x838] sm:$0xff] }
 0x93b   :  { %2068 = vmatpush1.bf16.msra.mxu1 %v1359_v38  ;;  %2154 = vmatpush1.bf16.msra.mxu0 %v1361_v39  ;;  %v1551_v38 = vld [vmem:[#allocation4 + $0x820] sm:$0xff]  ;;  %v1553_v39 = vld [vmem:[#allocation4 + $0x830] sm:$0xff] }
 0x93c   :  { %2069 = vmatprep.subr.bf16.mxu1 %v1376_v40  ;;  %2155 = vmatprep.subr.bf16.mxu0 %v1378_v41  ;;  %v1568_v40 = vld [vmem:[#allocation4 + $0x8a8] sm:$0xff]  ;;  %v1570_v41 = vld [vmem:[#allocation4 + $0x8b8] sm:$0xff] }
 0x93f   :  { %2070 = vmatpush1.bf16.msra.mxu1 %v1375_v42  ;;  %2156 = vmatpush1.bf16.msra.mxu0 %v1377_v43  ;;  %v1567_v42 = vld [vmem:[#allocation4 + $0x8a0] sm:$0xff]  ;;  %v1569_v43 = vld [vmem:[#allocation4 + $0x8b0] sm:$0xff] }
 0x940   :  { %2071 = vmatprep.subr.bf16.mxu1 %v1392_v44  ;;  %2157 = vmatprep.subr.bf16.mxu0 %v1394_v45  ;;  %v1584_v44 = vld [vmem:[#allocation4 + $0x928] sm:$0xff]  ;;  %v1586_v45 = vld [vmem:[#allocation4 + $0x938] sm:$0xff] }
 0x943   :  { %2072 = vmatpush1.bf16.msra.mxu1 %v1391_v46  ;;  %2158 = vmatpush1.bf16.msra.mxu0 %v1393_v51  ;;  %v1583_v46 = vld [vmem:[#allocation4 + $0x920] sm:$0xff]  ;;  %v1585_v51 = vld [vmem:[#allocation4 + $0x930] sm:$0xff] }
 0x944   :  { %2073 = vmatprep.subr.bf16.mxu1 %v1408_v52  ;;  %2159 = vmatprep.subr.bf16.mxu0 %v1410_v53  ;;  %v1600_v52 = vld [vmem:[#allocation4 + $0x9a8] sm:$0xff]  ;;  %v1602_v53 = vld [vmem:[#allocation4 + $0x9b8] sm:$0xff] }
 0x947   :  { %2074 = vmatpush1.bf16.msra.mxu1 %v1407_v54  ;;  %2160 = vmatpush1.bf16.msra.mxu0 %v1409_v55  ;;  %v1599_v54 = vld [vmem:[#allocation4 + $0x9a0] sm:$0xff]  ;;  %v1601_v55 = vld [vmem:[#allocation4 + $0x9b0] sm:$0xff] }
 0x948   :  { %2075 = vmatprep.subr.bf16.mxu1 %v1424_v56  ;;  %2161 = vmatprep.subr.bf16.mxu0 %v1426_v57  ;;  %v1616_v56 = vld [vmem:[#allocation4 + $0xa28] sm:$0xff]  ;;  %v1618_v57 = vld [vmem:[#allocation4 + $0xa38] sm:$0xff] }
 0x94b   :  { %2076 = vmatpush1.bf16.msra.mxu1 %v1423_v58  ;;  %2162 = vmatpush1.bf16.msra.mxu0 %v1425_v59  ;;  %v1615_v58 = vld [vmem:[#allocation4 + $0xa20] sm:$0xff]  ;;  %v1617_v59 = vld [vmem:[#allocation4 + $0xa30] sm:$0xff] }
 0x94c   :  { %2077 = vmatprep.subr.bf16.mxu1 %v1440_v34  ;;  %2163 = vmatprep.subr.bf16.mxu0 %v1442_v61  ;;  %v1632_v34 = vld [vmem:[#allocation4 + $0xaa8] sm:$0xff]  ;;  %v1634_v61 = vld [vmem:[#allocation4 + $0xab8] sm:$0xff] }
 0x94f   :  { %2078 = vmatpush1.bf16.msra.mxu1 %v1439_v62  ;;  %2164 = vmatpush1.bf16.msra.mxu0 %v1441_v63  ;;  %v1631_v62 = vld [vmem:[#allocation4 + $0xaa0] sm:$0xff]  ;;  %v1633_v63 = vld [vmem:[#allocation4 + $0xab0] sm:$0xff] }
 0x950   :  { %2079 = vmatprep.subr.bf16.mxu1 %v1456_v2  ;;  %2165 = vmatprep.subr.bf16.mxu0 %v1458_v3  ;;  %v1648_v2 = vld [vmem:[#allocation4 + $0xb28] sm:$0xff]  ;;  %v1650_v3 = vld [vmem:[#allocation4 + $0xb38] sm:$0xff] }
 0x953   :  { %2080 = vmatpush1.bf16.msra.mxu1 %v1455_v16  ;;  %2166 = vmatpush1.bf16.msra.mxu0 %v1457_v4  ;;  %v1647_v16 = vld [vmem:[#allocation4 + $0xb20] sm:$0xff]  ;;  %v1649_v4 = vld [vmem:[#allocation4 + $0xb30] sm:$0xff] }
 0x954   :  { %2081 = vmatprep.subr.bf16.mxu1 %v1472_v6  ;;  %2167 = vmatprep.subr.bf16.mxu0 %v1474_v7  ;;  %v1664_v6 = vld [vmem:[#allocation4 + $0xba8] sm:$0xff]  ;;  %v1666_v7 = vld [vmem:[#allocation4 + $0xbb8] sm:$0xff] }
 0x957   :  { %2082 = vmatpush1.bf16.msra.mxu1 %v1471_v8  ;;  %2168 = vmatpush1.bf16.msra.mxu0 %v1473_v9  ;;  %v1663_v8 = vld [vmem:[#allocation4 + $0xba0] sm:$0xff]  ;;  %v1665_v9 = vld [vmem:[#allocation4 + $0xbb0] sm:$0xff] }
 0x958   :  { %2083 = vmatprep.subr.bf16.mxu1 %v1488_v10  ;;  %2169 = vmatprep.subr.bf16.mxu0 %v1490_v11  ;;  %v1680_v10 = vld [vmem:[#allocation4 + $0xc28] sm:$0xff]  ;;  %v1682_v11 = vld [vmem:[#allocation4 + $0xc38] sm:$0xff] }
 0x95b   :  { %2084 = vmatpush1.bf16.msra.mxu1 %v1487_v12  ;;  %2170 = vmatpush1.bf16.msra.mxu0 %v1489_v13  ;;  %v1679_v12 = vld [vmem:[#allocation4 + $0xc20] sm:$0xff]  ;;  %v1681_v13 = vld [vmem:[#allocation4 + $0xc30] sm:$0xff] }
 0x95c   :  { %2085 = vmatprep.subr.bf16.mxu1 %v1504_v20  ;;  %2171 = vmatprep.subr.bf16.mxu0 %v1506_v21  ;;  %v1696_v20 = vld [vmem:[#allocation4 + $0xca8] sm:$0xff]  ;;  %v1698_v21 = vld [vmem:[#allocation4 + $0xcb8] sm:$0xff] }
 0x95f   :  { %2086 = vmatpush1.bf16.msra.mxu1 %v1503_v23  ;;  %2172 = vmatpush1.bf16.msra.mxu0 %v1505_v24  ;;  %v1695_v23 = vld [vmem:[#allocation4 + $0xca0] sm:$0xff]  ;;  %v1697_v24 = vld [vmem:[#allocation4 + $0xcb0] sm:$0xff] }
 0x960   :  { %2087 = vmatprep.subr.bf16.mxu1 %v1520_v25  ;;  %2173 = vmatprep.subr.bf16.mxu0 %v1522_v26  ;;  %v1712_v25 = vld [vmem:[#allocation4 + $0xd28] sm:$0xff]  ;;  %v1714_v26 = vld [vmem:[#allocation4 + $0xd38] sm:$0xff] }
 0x963   :  { %2088 = vmatpush1.bf16.msra.mxu1 %v1519_v27  ;;  %2174 = vmatpush1.bf16.msra.mxu0 %v1521_v15  ;;  %v1711_v27 = vld [vmem:[#allocation4 + $0xd20] sm:$0xff]  ;;  %v1713_v15 = vld [vmem:[#allocation4 + $0xd30] sm:$0xff] }
 0x964   :  { %2089 = vmatprep.subr.bf16.mxu1 %v1536_v28  ;;  %2175 = vmatprep.subr.bf16.mxu0 %v1538_v29  ;;  %v1728_v28 = vld [vmem:[#allocation4 + $0xda8] sm:$0xff]  ;;  %v1730_v29 = vld [vmem:[#allocation4 + $0xdb8] sm:$0xff] }
 0x967   :  { %2090 = vmatpush1.bf16.msra.mxu1 %v1535_v30  ;;  %2176 = vmatpush1.bf16.msra.mxu0 %v1537_v31  ;;  %v1727_v30 = vld [vmem:[#allocation4 + $0xda0] sm:$0xff]  ;;  %v1729_v31 = vld [vmem:[#allocation4 + $0xdb0] sm:$0xff] }
 0x968   :  { %2102 = vmatprep.subr.bf16.mxu1 %v1552_v36  ;;  %2188 = vmatprep.subr.bf16.mxu0 %v1554_v37  ;;  %v1744_v36 = vld [vmem:[#allocation4 + $0xe28] sm:$0xff]  ;;  %v1746_v37 = vld [vmem:[#allocation4 + $0xe38] sm:$0xff] }
 0x96a   :  { %2092 = vmatmul.mubr.bf16.vlgmr.msra.gmra.mrb[28].mxu1 %v4028_v32  ;;  %2178 = vmatmul.mubr.bf16.vlgmr.msra.gmra.mrb[32].mxu0 %v4028_v32 }
 0x96b   :  { %2103 = vmatpush1.bf16.msra.mxu1 %v1551_v38  ;;  %2189 = vmatpush1.bf16.msra.mxu0 %v1553_v39  ;;  %v1743_v38 = vld [vmem:[#allocation4 + $0xe20] sm:$0xff]  ;;  %v1745_v39 = vld [vmem:[#allocation4 + $0xe30] sm:$0xff] }
 0x96c   :  { %2104 = vmatprep.subr.bf16.mxu1 %v1568_v40  ;;  %2190 = vmatprep.subr.bf16.mxu0 %v1570_v41  ;;  %v1760_v40 = vld [vmem:[#allocation4 + $0xea8] sm:$0xff]  ;;  %v1762_v41 = vld [vmem:[#allocation4 + $0xeb8] sm:$0xff] }
 0x96d   :  { %2134 = vmatprep.mubr.bf16.mxu1 %v4034_v18  ;;  %2220 = vmatprep.mubr.bf16.mxu0 %v4034_v18 }
 0x96f   :  { %2105 = vmatpush1.bf16.msra.mxu1 %v1567_v42  ;;  %2191 = vmatpush1.bf16.msra.mxu0 %v1569_v43  ;;  %v1759_v42 = vld [vmem:[#allocation4 + $0xea0] sm:$0xff]  ;;  %v1761_v43 = vld [vmem:[#allocation4 + $0xeb0] sm:$0xff] }
 0x970   :  { %2106 = vmatprep.subr.bf16.mxu1 %v1584_v44  ;;  %2192 = vmatprep.subr.bf16.mxu0 %v1586_v45  ;;  %v1776_v44 = vld [vmem:[#allocation4 + $0xf28] sm:$0xff]  ;;  %v1778_v45 = vld [vmem:[#allocation4 + $0xf38] sm:$0xff] }
 0x973   :  { %2107 = vmatpush1.bf16.msra.mxu1 %v1583_v46  ;;  %2193 = vmatpush1.bf16.msra.mxu0 %v1585_v51  ;;  %v1775_v46 = vld [vmem:[#allocation4 + $0xf20] sm:$0xff]  ;;  %v1777_v51 = vld [vmem:[#allocation4 + $0xf30] sm:$0xff] }
 0x974   :  { %2108 = vmatprep.subr.bf16.mxu1 %v1600_v52  ;;  %2194 = vmatprep.subr.bf16.mxu0 %v1602_v53  ;;  %v1792_v52 = vld [vmem:[#allocation4 + $0xfa8] sm:$0xff]  ;;  %v1794_v53 = vld [vmem:[#allocation4 + $0xfb8] sm:$0xff] }
 0x977   :  { %2109 = vmatpush1.bf16.msra.mxu1 %v1599_v54  ;;  %2195 = vmatpush1.bf16.msra.mxu0 %v1601_v55  ;;  %v1791_v54 = vld [vmem:[#allocation4 + $0xfa0] sm:$0xff]  ;;  %v1793_v55 = vld [vmem:[#allocation4 + $0xfb0] sm:$0xff] }
 0x978   :  { %2110 = vmatprep.subr.bf16.mxu1 %v1616_v56  ;;  %2196 = vmatprep.subr.bf16.mxu0 %v1618_v57  ;;  %v1300_v56 = vld [vmem:[#allocation4 + $0x48] sm:$0xff]  ;;  %v1299_v57 = vld [vmem:[#allocation4 + $0x40] sm:$0xff] }
 0x97b   :  { %2111 = vmatpush1.bf16.msra.mxu1 %v1615_v58  ;;  %2197 = vmatpush1.bf16.msra.mxu0 %v1617_v59  ;;  %v1316_v58 = vld [vmem:[#allocation4 + $0xc8] sm:$0xff]  ;;  %v1315_v59 = vld [vmem:[#allocation4 + $0xc0] sm:$0xff] }
 0x97c   :  { %2112 = vmatprep.subr.bf16.mxu1 %v1632_v34  ;;  %2198 = vmatprep.subr.bf16.mxu0 %v1634_v61  ;;  %v1332_v34 = vld [vmem:[#allocation4 + $0x148] sm:$0xff]  ;;  %v1331_v61 = vld [vmem:[#allocation4 + $0x140] sm:$0xff] }
 0x97f   :  { %2113 = vmatpush1.bf16.msra.mxu1 %v1631_v62  ;;  %2199 = vmatpush1.bf16.msra.mxu0 %v1633_v63  ;;  %v1348_v62 = vld [vmem:[#allocation4 + $0x1c8] sm:$0xff]  ;;  %v1347_v63 = vld [vmem:[#allocation4 + $0x1c0] sm:$0xff] }
 0x980   :  { %2114 = vmatprep.subr.bf16.mxu1 %v1648_v2  ;;  %2200 = vmatprep.subr.bf16.mxu0 %v1650_v3  ;;  %v1364_v2 = vld [vmem:[#allocation4 + $0x248] sm:$0xff]  ;;  %v1363_v3 = vld [vmem:[#allocation4 + $0x240] sm:$0xff] }
 0x983   :  { %2115 = vmatpush1.bf16.msra.mxu1 %v1647_v16  ;;  %2201 = vmatpush1.bf16.msra.mxu0 %v1649_v4  ;;  %v1380_v16 = vld [vmem:[#allocation4 + $0x2c8] sm:$0xff]  ;;  %v1379_v4 = vld [vmem:[#allocation4 + $0x2c0] sm:$0xff] }
 0x984   :  { %2116 = vmatprep.subr.bf16.mxu1 %v1664_v6  ;;  %2202 = vmatprep.subr.bf16.mxu0 %v1666_v7  ;;  %v1396_v6 = vld [vmem:[#allocation4 + $0x348] sm:$0xff]  ;;  %v1395_v7 = vld [vmem:[#allocation4 + $0x340] sm:$0xff] }
 0x987   :  { %2117 = vmatpush1.bf16.msra.mxu1 %v1663_v8  ;;  %2203 = vmatpush1.bf16.msra.mxu0 %v1665_v9  ;;  %v1412_v8 = vld [vmem:[#allocation4 + $0x3c8] sm:$0xff]  ;;  %v1411_v9 = vld [vmem:[#allocation4 + $0x3c0] sm:$0xff] }
 0x988   :  { %2118 = vmatprep.subr.bf16.mxu1 %v1680_v10  ;;  %2204 = vmatprep.subr.bf16.mxu0 %v1682_v11  ;;  %v1428_v10 = vld [vmem:[#allocation4 + $0x448] sm:$0xff]  ;;  %v1427_v11 = vld [vmem:[#allocation4 + $0x440] sm:$0xff] }
 0x98b   :  { %2119 = vmatpush1.bf16.msra.mxu1 %v1679_v12  ;;  %2205 = vmatpush1.bf16.msra.mxu0 %v1681_v13  ;;  %v1444_v12 = vld [vmem:[#allocation4 + $0x4c8] sm:$0xff]  ;;  %v1443_v13 = vld [vmem:[#allocation4 + $0x4c0] sm:$0xff] }
 0x98c   :  { %2120 = vmatprep.subr.bf16.mxu1 %v1696_v20  ;;  %2206 = vmatprep.subr.bf16.mxu0 %v1698_v21  ;;  %v1460_v20 = vld [vmem:[#allocation4 + $0x548] sm:$0xff]  ;;  %v1459_v21 = vld [vmem:[#allocation4 + $0x540] sm:$0xff] }
 0x98f   :  { %2121 = vmatpush1.bf16.msra.mxu1 %v1695_v23  ;;  %2207 = vmatpush1.bf16.msra.mxu0 %v1697_v24  ;;  %v1476_v23 = vld [vmem:[#allocation4 + $0x5c8] sm:$0xff]  ;;  %v1475_v24 = vld [vmem:[#allocation4 + $0x5c0] sm:$0xff] }
 0x990   :  { %2122 = vmatprep.subr.bf16.mxu1 %v1712_v25  ;;  %2208 = vmatprep.subr.bf16.mxu0 %v1714_v26  ;;  %v1492_v25 = vld [vmem:[#allocation4 + $0x648] sm:$0xff]  ;;  %v1491_v26 = vld [vmem:[#allocation4 + $0x640] sm:$0xff] }
 0x993   :  { %2123 = vmatpush1.bf16.msra.mxu1 %v1711_v27  ;;  %2209 = vmatpush1.bf16.msra.mxu0 %v1713_v15  ;;  %v1508_v27 = vld [vmem:[#allocation4 + $0x6c8] sm:$0xff]  ;;  %v1507_v15 = vld [vmem:[#allocation4 + $0x6c0] sm:$0xff] }
 0x994   :  { %2124 = vmatprep.subr.bf16.mxu1 %v1728_v28  ;;  %2210 = vmatprep.subr.bf16.mxu0 %v1730_v29  ;;  %v1524_v28 = vld [vmem:[#allocation4 + $0x748] sm:$0xff]  ;;  %v1523_v29 = vld [vmem:[#allocation4 + $0x740] sm:$0xff] }
 0x997   :  { %2125 = vmatpush1.bf16.msra.mxu1 %v1727_v30  ;;  %2211 = vmatpush1.bf16.msra.mxu0 %v1729_v31  ;;  %v1540_v30 = vld [vmem:[#allocation4 + $0x7c8] sm:$0xff]  ;;  %v1539_v31 = vld [vmem:[#allocation4 + $0x7c0] sm:$0xff] }
 0x998   :  { %2126 = vmatprep.subr.bf16.mxu1 %v1744_v36  ;;  %2212 = vmatprep.subr.bf16.mxu0 %v1746_v37  ;;  %v1556_v36 = vld [vmem:[#allocation4 + $0x848] sm:$0xff]  ;;  %v1555_v37 = vld [vmem:[#allocation4 + $0x840] sm:$0xff] }
 0x99b   :  { %2127 = vmatpush1.bf16.msra.mxu1 %v1743_v38  ;;  %2213 = vmatpush1.bf16.msra.mxu0 %v1745_v39  ;;  %v1572_v38 = vld [vmem:[#allocation4 + $0x8c8] sm:$0xff]  ;;  %v1571_v39 = vld [vmem:[#allocation4 + $0x8c0] sm:$0xff] }
 0x99c   :  { %2128 = vmatprep.subr.bf16.mxu1 %v1760_v40  ;;  %2214 = vmatprep.subr.bf16.mxu0 %v1762_v41  ;;  %v1588_v40 = vld [vmem:[#allocation4 + $0x948] sm:$0xff]  ;;  %v1587_v41 = vld [vmem:[#allocation4 + $0x940] sm:$0xff] }
 0x99f   :  { %2129 = vmatpush1.bf16.msra.mxu1 %v1759_v42  ;;  %2215 = vmatpush1.bf16.msra.mxu0 %v1761_v43  ;;  %v1604_v42 = vld [vmem:[#allocation4 + $0x9c8] sm:$0xff]  ;;  %v1603_v43 = vld [vmem:[#allocation4 + $0x9c0] sm:$0xff] }
 0x9a0   :  { %2130 = vmatprep.subr.bf16.mxu1 %v1776_v44  ;;  %2216 = vmatprep.subr.bf16.mxu0 %v1778_v45  ;;  %v1620_v44 = vld [vmem:[#allocation4 + $0xa48] sm:$0xff]  ;;  %v1619_v45 = vld [vmem:[#allocation4 + $0xa40] sm:$0xff] }
 0x9a3   :  { %2131 = vmatpush1.bf16.msra.mxu1 %v1775_v46  ;;  %2217 = vmatpush1.bf16.msra.mxu0 %v1777_v51  ;;  %v4056_v46 = vld [vmem:[#allocation15] sm:$0xff]  ;;  %v1636_v51 = vld [vmem:[#allocation4 + $0xac8] sm:$0xff] }
 0x9a4   :  { %2132 = vmatprep.subr.bf16.mxu1 %v1792_v52  ;;  %2218 = vmatprep.subr.bf16.mxu0 %v1794_v53  ;;  %v1810_v52 = vrot.slane %v4056_v46, %v3919_v17  ;;  %v1818_v53 = vrot.slane %v4056_v46, %v3948_v60 }
 0x9a7   :  { %2133 = vmatpush1.bf16.msra.mxu1 %v1791_v54  ;;  %2219 = vmatpush1.bf16.msra.mxu0 %v1793_v55  ;;  %v1635_v54 = vld [vmem:[#allocation4 + $0xac0] sm:$0xff] }
 0x9a8   :  { %2231 = vmatprep.subr.bf16.mxu1 %v1300_v56 }
 0x9aa   :  { %2135 = vmatmul.mubr.bf16.vlgmr.msra.gmra.mrb[28].mxu1 %v4030_v33  ;;  %2221 = vmatmul.mubr.bf16.vlgmr.msra.gmra.mrb[32].mxu0 %v4030_v33 }
 0x9ab   :  { %2232 = vmatpush1.bf16.msra.mxu1 %v1299_v57  ;;  %2263 = vmatprep.mubr.bf16.mxu1 %v4032_v35  ;;  %v1814_v57 = vrot.slane %v4056_v46, %v3924_v19 }
 0x9ac   :  { %2233 = vmatprep.subr.bf16.mxu1 %v1316_v58  ;;  %2349 = vmatprep.mubr.bf16.mxu0 %v4032_v35  ;;  %v1822_v58 = vrot.slane %v4056_v46, %v3954_v22 }
 0x9af   :  { %2234 = vmatpush1.bf16.msra.mxu1 %v1315_v59  ;;  %v1652_v59 = vld [vmem:[#allocation4 + $0xb48] sm:$0xff] }
 0x9b0   :  { %2235 = vmatprep.subr.bf16.mxu1 %v1332_v34 }
 0x9b3   :  { %2236 = vmatpush1.bf16.msra.mxu1 %v1331_v61 }
 0x9b4   :  { %2237 = vmatprep.subr.bf16.mxu1 %v1348_v62 }
 0x9b7   :  { %2238 = vmatpush1.bf16.msra.mxu1 %v1347_v63 }
 0x9b8   :  { %2239 = vmatprep.subr.bf16.mxu1 %v1364_v2 }
 0x9bb   :  { %2240 = vmatpush1.bf16.msra.mxu1 %v1363_v3 }
 0x9bc   :  { %2241 = vmatprep.subr.bf16.mxu1 %v1380_v16 }
 0x9bf   :  { %2242 = vmatpush1.bf16.msra.mxu1 %v1379_v4 }
 0x9c0   :  { %2243 = vmatprep.subr.bf16.mxu1 %v1396_v6 }
 0x9c3   :  { %2244 = vmatpush1.bf16.msra.mxu1 %v1395_v7 }
 0x9c4   :  { %2245 = vmatprep.subr.bf16.mxu1 %v1412_v8  ;;  %v1651_v8 = vld [vmem:[#allocation4 + $0xb40] sm:$0xff] }
 0x9c7   :  { %2246 = vmatpush1.bf16.msra.mxu1 %v1411_v9 }
 0x9c8   :  { %2247 = vmatprep.subr.bf16.mxu1 %v1428_v10 }
 0x9cb   :  { %2248 = vmatpush1.bf16.msra.mxu1 %v1427_v11 }
 0x9cc   :  { %2249 = vmatprep.subr.bf16.mxu1 %v1444_v12 }
 0x9cf   :  { %2250 = vmatpush1.bf16.msra.mxu1 %v1443_v13  ;;  %v1668_v13 = vld [vmem:[#allocation4 + $0xbc8] sm:$0xff] }
 0x9d0   :  { %2251 = vmatprep.subr.bf16.mxu1 %v1460_v20 }
 0x9d3   :  { %2252 = vmatpush1.bf16.msra.mxu1 %v1459_v21 }
 0x9d4   :  { %2253 = vmatprep.subr.bf16.mxu1 %v1476_v23 }
 0x9d7   :  { %2254 = vmatpush1.bf16.msra.mxu1 %v1475_v24 }
 0x9d8   :  { %2255 = vmatprep.subr.bf16.mxu1 %v1492_v25  ;;  %v1667_v25 = vld [vmem:[#allocation4 + $0xbc0] sm:$0xff] }
 0x9db   :  { %2256 = vmatpush1.bf16.msra.mxu1 %v1491_v26  ;;  %v1684_v26 = vld [vmem:[#allocation4 + $0xc48] sm:$0xff] }
 0x9dc   :  { %2257 = vmatprep.subr.bf16.mxu1 %v1508_v27  ;;  %v1683_v27 = vld [vmem:[#allocation4 + $0xc40] sm:$0xff] }
 0x9df   :  { %2258 = vmatpush1.bf16.msra.mxu1 %v1507_v15  ;;  %v1700_v15 = vld [vmem:[#allocation4 + $0xcc8] sm:$0xff] }
 0x9e0   :  { %2259 = vmatprep.subr.bf16.mxu1 %v1524_v28  ;;  %v1699_v28 = vld [vmem:[#allocation4 + $0xcc0] sm:$0xff] }
 0x9e3   :  { %2260 = vmatpush1.bf16.msra.mxu1 %v1523_v29  ;;  %v1716_v29 = vld [vmem:[#allocation4 + $0xd48] sm:$0xff] }
 0x9e4   :  { %2261 = vmatprep.subr.bf16.mxu1 %v1540_v30  ;;  %v1715_v30 = vld [vmem:[#allocation4 + $0xd40] sm:$0xff] }
 0x9e7   :  { %2262 = vmatpush1.bf16.msra.mxu1 %v1539_v31  ;;  %v1732_v31 = vld [vmem:[#allocation4 + $0xdc8] sm:$0xff] }
 0x9e8   :  { %2274 = vmatprep.subr.bf16.mxu1 %v1556_v36  ;;  %v1731_v36 = vld [vmem:[#allocation4 + $0xdc0] sm:$0xff] }
 0x9ea   :  { %2264 = vmatmul.mubr.bf16.vlgmr.msra.gmra.mrb[32].mxu1 %v4028_v32 }
 0x9eb   :  { %2275 = vmatpush1.bf16.msra.mxu1 %v1555_v37  ;;  %2306 = vmatprep.mubr.bf16.mxu1 %v4034_v18  ;;  %v1748_v37 = vld [vmem:[#allocation4 + $0xe48] sm:$0xff] }
 0x9ec   :  { %2276 = vmatprep.subr.bf16.mxu1 %v1572_v38  ;;  %v1747_v38 = vld [vmem:[#allocation4 + $0xe40] sm:$0xff] }
 0x9ef   :  { %2277 = vmatpush1.bf16.msra.mxu1 %v1571_v39  ;;  %v1764_v39 = vld [vmem:[#allocation4 + $0xec8] sm:$0xff] }
 0x9f0   :  { %2278 = vmatprep.subr.bf16.mxu1 %v1588_v40  ;;  %v1763_v40 = vld [vmem:[#allocation4 + $0xec0] sm:$0xff] }
 0x9f3   :  { %2279 = vmatpush1.bf16.msra.mxu1 %v1587_v41  ;;  %v1780_v41 = vld [vmem:[#allocation4 + $0xf48] sm:$0xff] }
 0x9f4   :  { %2280 = vmatprep.subr.bf16.mxu1 %v1604_v42  ;;  %v1779_v42 = vld [vmem:[#allocation4 + $0xf40] sm:$0xff] }
 0x9f7   :  { %2281 = vmatpush1.bf16.msra.mxu1 %v1603_v43  ;;  %v1796_v43 = vld [vmem:[#allocation4 + $0xfc8] sm:$0xff] }
 0x9f8   :  { %2282 = vmatprep.subr.bf16.mxu1 %v1620_v44  ;;  %v1795_v44 = vld [vmem:[#allocation4 + $0xfc0] sm:$0xff] }
 0x9fb   :  { %2283 = vmatpush1.bf16.msra.mxu1 %v1619_v45  ;;  %v1304_v45 = vld [vmem:[#allocation4 + $0x68] sm:$0xff] }
 0x9fc   :  { %2284 = vmatprep.subr.bf16.mxu1 %v1636_v51  ;;  %v1303_v51 = vld [vmem:[#allocation4 + $0x60] sm:$0xff] }
 0x9fd   :  { %v1964_v55 = vpop.f32.mrb[24].mxu1  ;;  %v2050_v56 = vpop.f32.mrb[28].mxu0 }
 0x9fe   :  { %v1966_v34 = vpop.f32.mrb[25].mxu1  ;;  %v2052_v61 = vpop.f32.mrb[29].mxu0  ;;  %v4066_v2 = vadd.f32 %v1964_v55, %v1810_v52  ;;  %v4068_v3 = vadd.f32 %v2050_v56, %v1818_v53  ;;  %v1335_v55 = vld [vmem:[#allocation4 + $0x160] sm:$0xff]  ;;  %v1352_v56 = vld [vmem:[#allocation4 + $0x1e8] sm:$0xff] }
 0x9ff   :  { %v1968_v62 = vpop.f32.mrb[26].mxu1  ;;  %v2054_v63 = vpop.f32.mrb[30].mxu0  ;;  %2285 = vmatpush1.bf16.msra.mxu1 %v1635_v54  ;;  %v4074_v9 = vadd.f32 %v1966_v34, %v1814_v57  ;;  %v4076_v10 = vadd.f32 %v2052_v61, %v1822_v58  ;;  %v1336_v54 = vld [vmem:[#allocation4 + $0x168] sm:$0xff]  ;;  %v1383_v61 = vld [vmem:[#allocation4 + $0x2e0] sm:$0xff] }
 0xa00   :  { %v4070_v16 = vadd.f32 %v1968_v62, %v1810_v52  ;;  %v4072_v4 = vadd.f32 %v2054_v63, %v1818_v53  ;;  %v1970_v6 = vpop.f32.mrb[27].mxu1  ;;  %v2056_v7 = vpop.f32.mrb[31].mxu0  ;;  %2286 = vmatprep.subr.bf16.mxu1 %v1652_v59  ;;  %v1320_v52 = vld [vmem:[#allocation4 + $0xe8] sm:$0xff]  ;;  %v1319_v53 = vld [vmem:[#allocation4 + $0xe0] sm:$0xff] }
 0xa01   :  { %v4078_v11 = vadd.f32 %v1970_v6, %v1814_v57  ;;  %v4080_v12 = vadd.f32 %v2056_v7, %v1822_v58  ;;  %v1351_v57 = vld [vmem:[#allocation4 + $0x1e0] sm:$0xff]  ;;  %v1368_v58 = vld [vmem:[#allocation4 + $0x268] sm:$0xff] }
 0xa02   :  { %v2575_v20 = vpack.c.bf16 %v4070_v16, %v4066_v2  ;;  %v2577_v21 = vpack.c.bf16 %v4072_v4, %v4068_v3  ;;  %v1367_v59 = vld [vmem:[#allocation4 + $0x260] sm:$0xff]  ;;  %v1384_v34 = vld [vmem:[#allocation4 + $0x2e8] sm:$0xff]  ;;  %v1541_v2 = vld [vmem:[#allocation4 + $0x7d0] sm:$0xff] }
 0xa03   :  { %v2576_v23 = vpack.c.bf16 %v4078_v11, %v4074_v9  ;;  %v2578_v24 = vpack.c.bf16 %v4080_v12, %v4076_v10  ;;  %2287 = vmatpush1.bf16.msra.mxu1 %v1651_v8  ;;  %v1400_v62 = vld [vmem:[#allocation4 + $0x368] sm:$0xff]  ;;  %v1399_v63 = vld [vmem:[#allocation4 + $0x360] sm:$0xff]  ;;  %v1493_v9 = vld [vmem:[#allocation4 + $0x650] sm:$0xff] }
 0xa04   :  { %2288 = vmatprep.subr.bf16.mxu1 %v1668_v13  ;;  %v1416_v6 = vld [vmem:[#allocation4 + $0x3e8] sm:$0xff]  ;;  %v1415_v7 = vld [vmem:[#allocation4 + $0x3e0] sm:$0xff]  ;;  %v1510_v11 = vld [vmem:[#allocation4 + $0x6d8] sm:$0xff] }
 0xa05   :  { %v1432_v8 = vld [vmem:[#allocation4 + $0x468] sm:$0xff]  ;;  %v1431_v13 = vld [vmem:[#allocation4 + $0x460] sm:$0xff]  ;;  %v1558_v16 = vld [vmem:[#allocation4 + $0x858] sm:$0xff] }
 0xa06   :  { %v1557_v10 = vld [vmem:[#allocation4 + $0x850] sm:$0xff]  ;;  %v1574_v12 = vld [vmem:[#allocation4 + $0x8d8] sm:$0xff] }
 0xa07   :  { %2289 = vmatpush1.bf16.msra.mxu1 %v1667_v25  ;;  %v1448_v25 = vld [vmem:[#allocation4 + $0x4e8] sm:$0xff]  ;;  %v1606_v3 = vld [vmem:[#allocation4 + $0x9d8] sm:$0xff]  ;;  %v1605_v4 = vld [vmem:[#allocation4 + $0x9d0] sm:$0xff] }
 0xa08   :  { %2290 = vmatprep.subr.bf16.mxu1 %v1684_v26  ;;  %v1447_v26 = vld [vmem:[#allocation4 + $0x4e0] sm:$0xff] }
 0xa0b   :  { %2291 = vmatpush1.bf16.msra.mxu1 %v1683_v27  ;;  %v1464_v27 = vld [vmem:[#allocation4 + $0x568] sm:$0xff] }
 0xa0c   :  { %2292 = vmatprep.subr.bf16.mxu1 %v1700_v15  ;;  %v1463_v15 = vld [vmem:[#allocation4 + $0x560] sm:$0xff] }
 0xa0f   :  { %2293 = vmatpush1.bf16.msra.mxu1 %v1699_v28  ;;  %v1480_v28 = vld [vmem:[#allocation4 + $0x5e8] sm:$0xff] }
 0xa10   :  { %2294 = vmatprep.subr.bf16.mxu1 %v1716_v29  ;;  %v1479_v29 = vld [vmem:[#allocation4 + $0x5e0] sm:$0xff] }
 0xa13   :  { %2295 = vmatpush1.bf16.msra.mxu1 %v1715_v30  ;;  %v1496_v30 = vld [vmem:[#allocation4 + $0x668] sm:$0xff] }
 0xa14   :  { %2296 = vmatprep.subr.bf16.mxu1 %v1732_v31  ;;  %v1495_v31 = vld [vmem:[#allocation4 + $0x660] sm:$0xff] }
 0xa17   :  { %2297 = vmatpush1.bf16.msra.mxu1 %v1731_v36  ;;  %v1512_v36 = vld [vmem:[#allocation4 + $0x6e8] sm:$0xff] }
 0xa18   :  { %2298 = vmatprep.subr.bf16.mxu1 %v1748_v37  ;;  %v1511_v37 = vld [vmem:[#allocation4 + $0x6e0] sm:$0xff] }
 0xa1b   :  { %2299 = vmatpush1.bf16.msra.mxu1 %v1747_v38  ;;  %v1528_v38 = vld [vmem:[#allocation4 + $0x768] sm:$0xff] }
 0xa1c   :  { %2300 = vmatprep.subr.bf16.mxu1 %v1764_v39  ;;  %v1527_v39 = vld [vmem:[#allocation4 + $0x760] sm:$0xff] }
 0xa1f   :  { %2301 = vmatpush1.bf16.msra.mxu1 %v1763_v40  ;;  %v1544_v40 = vld [vmem:[#allocation4 + $0x7e8] sm:$0xff] }
 0xa20   :  { %2302 = vmatprep.subr.bf16.mxu1 %v1780_v41  ;;  %v1543_v41 = vld [vmem:[#allocation4 + $0x7e0] sm:$0xff] }
 0xa23   :  { %2303 = vmatpush1.bf16.msra.mxu1 %v1779_v42  ;;  %v1560_v42 = vld [vmem:[#allocation4 + $0x868] sm:$0xff] }
 0xa24   :  { %2304 = vmatprep.subr.bf16.mxu1 %v1796_v43  ;;  %v1559_v43 = vld [vmem:[#allocation4 + $0x860] sm:$0xff] }
 0xa27   :  { %2305 = vmatpush1.bf16.msra.mxu1 %v1795_v44  ;;  %v1576_v44 = vld [vmem:[#allocation4 + $0x8e8] sm:$0xff] }
 0xa28   :  { %2403 = vmatprep.subr.bf16.mxu1 %v1304_v45  ;;  %v1575_v45 = vld [vmem:[#allocation4 + $0x8e0] sm:$0xff] }
 0xa2a   :  { %2307 = vmatmul.mubr.bf16.vlgmr.msra.gmra.mrb[32].mxu1 %v4030_v33 }
 0xa2b   :  { %2404 = vmatpush1.bf16.msra.mxu1 %v1303_v51  ;;  %2435 = vmatprep.mubr.bf16.mxu1 %v4032_v35  ;;  %v1592_v51 = vld [vmem:[#allocation4 + $0x968] sm:$0xff] }
 0xa2c   :  { %2405 = vmatprep.subr.bf16.mxu1 %v1320_v52  ;;  %v1591_v52 = vld [vmem:[#allocation4 + $0x960] sm:$0xff] }
 0xa2f   :  { %2406 = vmatpush1.bf16.msra.mxu1 %v1319_v53  ;;  %v1608_v53 = vld [vmem:[#allocation4 + $0x9e8] sm:$0xff] }
 0xa30   :  { %2407 = vmatprep.subr.bf16.mxu1 %v1336_v54  ;;  %v1607_v54 = vld [vmem:[#allocation4 + $0x9e0] sm:$0xff] }
 0xa33   :  { %2408 = vmatpush1.bf16.msra.mxu1 %v1335_v55  ;;  %v1624_v55 = vld [vmem:[#allocation4 + $0xa68] sm:$0xff] }
 0xa34   :  { %2409 = vmatprep.subr.bf16.mxu1 %v1352_v56  ;;  %v1623_v56 = vld [vmem:[#allocation4 + $0xa60] sm:$0xff] }
 0xa37   :  { %2410 = vmatpush1.bf16.msra.mxu1 %v1351_v57  ;;  %v1640_v57 = vld [vmem:[#allocation4 + $0xae8] sm:$0xff] }
 0xa38   :  { %2411 = vmatprep.subr.bf16.mxu1 %v1368_v58  ;;  %v1826_v58 = vrot.slane %v4056_v46, %v3981_v48 }
 0xa3b   :  { %2412 = vmatpush1.bf16.msra.mxu1 %v1367_v59  ;;  %v1834_v59 = vrot.slane %v4056_v46, %v3978_v47 }
 0xa3c   :  { %2413 = vmatprep.subr.bf16.mxu1 %v1384_v34  ;;  %v1639_v34 = vld [vmem:[#allocation4 + $0xae0] sm:$0xff] }
 0xa3f   :  { %2414 = vmatpush1.bf16.msra.mxu1 %v1383_v61 }
 0xa40   :  { %2415 = vmatprep.subr.bf16.mxu1 %v1400_v62 }
 0xa43   :  { %2416 = vmatpush1.bf16.msra.mxu1 %v1399_v63  ;;  %v1830_v63 = vrot.slane %v4056_v46, %v3987_v50 }
 0xa44   :  { %2417 = vmatprep.subr.bf16.mxu1 %v1416_v6  ;;  %v1838_v6 = vrot.slane %v4056_v46, %v3984_v49 }
 0xa47   :  { %2418 = vmatpush1.bf16.msra.mxu1 %v1415_v7  ;;  %v1656_v7 = vld [vmem:[#allocation4 + $0xb68] sm:$0xff] }
 0xa48   :  { %2419 = vmatprep.subr.bf16.mxu1 %v1432_v8 }
 0xa4b   :  { %2420 = vmatpush1.bf16.msra.mxu1 %v1431_v13 }
 0xa4c   :  { %2421 = vmatprep.subr.bf16.mxu1 %v1448_v25 }
 0xa4f   :  { %2422 = vmatpush1.bf16.msra.mxu1 %v1447_v26 }
 0xa50   :  { %2423 = vmatprep.subr.bf16.mxu1 %v1464_v27 }
 0xa53   :  { %2424 = vmatpush1.bf16.msra.mxu1 %v1463_v15 }
 0xa54   :  { %2425 = vmatprep.subr.bf16.mxu1 %v1480_v28 }
 0xa57   :  { %2426 = vmatpush1.bf16.msra.mxu1 %v1479_v29 }
 0xa58   :  { %2427 = vmatprep.subr.bf16.mxu1 %v1496_v30 }
 0xa5b   :  { %2428 = vmatpush1.bf16.msra.mxu1 %v1495_v31 }
 0xa5c   :  { %2429 = vmatprep.subr.bf16.mxu1 %v1512_v36  ;;  %v1655_v36 = vld [vmem:[#allocation4 + $0xb60] sm:$0xff] }
 0xa5f   :  { %2430 = vmatpush1.bf16.msra.mxu1 %v1511_v37 }
 0xa60   :  { %2431 = vmatprep.subr.bf16.mxu1 %v1528_v38 }
 0xa63   :  { %2432 = vmatpush1.bf16.msra.mxu1 %v1527_v39 }
 0xa64   :  { %2433 = vmatprep.subr.bf16.mxu1 %v1544_v40  ;;  %v1672_v40 = vld [vmem:[#allocation4 + $0xbe8] sm:$0xff] }
 0xa67   :  { %2434 = vmatpush1.bf16.msra.mxu1 %v1543_v41 }
 0xa68   :  { %2446 = vmatprep.subr.bf16.mxu1 %v1560_v42 }
 0xa6a   :  { %2436 = vmatmul.mubr.bf16.vlgmr.msra.gmra.mrb[36].mxu1 %v4028_v32 }
 0xa6b   :  { %2447 = vmatpush1.bf16.msra.mxu1 %v1559_v43  ;;  %2478 = vmatprep.mubr.bf16.mxu1 %v4034_v18 }
 0xa6c   :  { %2448 = vmatprep.subr.bf16.mxu1 %v1576_v44 }
 0xa6f   :  { %2449 = vmatpush1.bf16.msra.mxu1 %v1575_v45  ;;  %v1671_v45 = vld [vmem:[#allocation4 + $0xbe0] sm:$0xff] }
 0xa70   :  { %2450 = vmatprep.subr.bf16.mxu1 %v1592_v51  ;;  %v1688_v51 = vld [vmem:[#allocation4 + $0xc68] sm:$0xff] }
 0xa73   :  { %2451 = vmatpush1.bf16.msra.mxu1 %v1591_v52  ;;  %v1302_v52 = vld [vmem:[#allocation4 + $0x58] sm:$0xff] }
 0xa74   :  { %2452 = vmatprep.subr.bf16.mxu1 %v1608_v53  ;;  %v1301_v53 = vld [vmem:[#allocation4 + $0x50] sm:$0xff]  ;;  %2317 = vmatprep.subr.bf16.mxu0 %v1302_v52  ;;  %v1784_v52 = vld [vmem:[#allocation4 + $0xf68] sm:$0xff] }
 0xa75   :  { %2318 = vmatpush1.bf16.msra.mxu0 %v1301_v53  ;;  %v1397_v53 = vld [vmem:[#allocation4 + $0x350] sm:$0xff] }
 0xa77   :  { %2453 = vmatpush1.bf16.msra.mxu1 %v1607_v54  ;;  %v1318_v54 = vld [vmem:[#allocation4 + $0xd8] sm:$0xff] }
 0xa78   :  { %2454 = vmatprep.subr.bf16.mxu1 %v1624_v55  ;;  %v1687_v55 = vld [vmem:[#allocation4 + $0xc60] sm:$0xff]  ;;  %2319 = vmatprep.subr.bf16.mxu0 %v1318_v54  ;;  %v1414_v54 = vld [vmem:[#allocation4 + $0x3d8] sm:$0xff] }
 0xa7b   :  { %2455 = vmatpush1.bf16.msra.mxu1 %v1623_v56  ;;  %v1704_v56 = vld [vmem:[#allocation4 + $0xce8] sm:$0xff] }
 0xa7c   :  { %2456 = vmatprep.subr.bf16.mxu1 %v1640_v57  ;;  %v1317_v57 = vld [vmem:[#allocation4 + $0xd0] sm:$0xff] }
 0xa7d   :  { %v2136_v61 = vpop.f32.mrb[28].mxu1  ;;  %v2222_v62 = vpop.f32.mrb[32].mxu0  ;;  %2320 = vmatpush1.bf16.msra.mxu0 %v1317_v57  ;;  %v1413_v57 = vld [vmem:[#allocation4 + $0x3d0] sm:$0xff] }
 0xa7e   :  { %v2138_v8 = vpop.f32.mrb[29].mxu1  ;;  %v2224_v13 = vpop.f32.mrb[33].mxu0  ;;  %v4102_v27 = vadd.f32 %v2136_v61, %v1826_v58  ;;  %v4104_v15 = vadd.f32 %v2222_v62, %v1834_v59  ;;  %v1333_v61 = vld [vmem:[#allocation4 + $0x150] sm:$0xff]  ;;  %v1350_v62 = vld [vmem:[#allocation4 + $0x1d8] sm:$0xff] }
 0xa7f   :  { %v2140_v25 = vpop.f32.mrb[30].mxu1  ;;  %v2226_v26 = vpop.f32.mrb[34].mxu0  ;;  %2457 = vmatpush1.bf16.msra.mxu1 %v1639_v34  ;;  %v4110_v37 = vadd.f32 %v2138_v8, %v1830_v63  ;;  %v4112_v46 = vadd.f32 %v2224_v13, %v1838_v6  ;;  %v1720_v34 = vld [vmem:[#allocation4 + $0xd68] sm:$0xff]  ;;  %v1366_v8 = vld [vmem:[#allocation4 + $0x258] sm:$0xff]  ;;  %v1735_v13 = vld [vmem:[#allocation4 + $0xde0] sm:$0xff] }
 0xa80   :  { %v4106_v28 = vadd.f32 %v2140_v25, %v1826_v58  ;;  %v4108_v29 = vadd.f32 %v2226_v26, %v1834_v59  ;;  %v2142_v30 = vpop.f32.mrb[31].mxu1  ;;  %v2228_v31 = vpop.f32.mrb[35].mxu0  ;;  %2458 = vmatprep.subr.bf16.mxu1 %v1656_v7  ;;  %v1334_v58 = vld [vmem:[#allocation4 + $0x158] sm:$0xff]  ;;  %v1703_v59 = vld [vmem:[#allocation4 + $0xce0] sm:$0xff]  ;;  %v1349_v7 = vld [vmem:[#allocation4 + $0x1d0] sm:$0xff] }
 0xa81   :  { %v4114_v38 = vadd.f32 %v2142_v30, %v1830_v63  ;;  %v4116_v39 = vadd.f32 %v2228_v31, %v1838_v6  ;;  %2321 = vmatprep.subr.bf16.mxu0 %v1334_v58  ;;  %v1719_v63 = vld [vmem:[#allocation4 + $0xd60] sm:$0xff]  ;;  %v1736_v6 = vld [vmem:[#allocation4 + $0xde8] sm:$0xff]  ;;  %v1365_v26 = vld [vmem:[#allocation4 + $0x250] sm:$0xff] }
 0xa82   :  { %v2579_v41 = vpack.c.bf16 %v4106_v28, %v4102_v27  ;;  %v2581_v42 = vpack.c.bf16 %v4108_v29, %v4104_v15  ;;  %2322 = vmatpush1.bf16.msra.mxu0 %v1333_v61  ;;  %v1752_v25 = vld [vmem:[#allocation4 + $0xe68] sm:$0xff]  ;;  %v1382_v30 = vld [vmem:[#allocation4 + $0x2d8] sm:$0xff]  ;;  %v1751_v31 = vld [vmem:[#allocation4 + $0xe60] sm:$0xff] }
 0xa83   :  { %v2580_v43 = vpack.c.bf16 %v4114_v38, %v4110_v37  ;;  %v2582_v44 = vpack.c.bf16 %v4116_v39, %v4112_v46  ;;  %2459 = vmatpush1.bf16.msra.mxu1 %v1655_v36  ;;  %2323 = vmatprep.subr.bf16.mxu0 %v1350_v62  ;;  %v1768_v36 = vld [vmem:[#allocation4 + $0xee8] sm:$0xff]  ;;  %v1430_v58 = vld [vmem:[#allocation4 + $0x458] sm:$0xff]  ;;  %v1445_v62 = vld [vmem:[#allocation4 + $0x4d0] sm:$0xff] }
 0xa84   :  { %2460 = vmatprep.subr.bf16.mxu1 %v1672_v40  ;;  %v1381_v40 = vld [vmem:[#allocation4 + $0x2d0] sm:$0xff]  ;;  %v1446_v61 = vld [vmem:[#allocation4 + $0x4d8] sm:$0xff] }
 0xa85   :  { %v1477_v37 = vld [vmem:[#allocation4 + $0x5d0] sm:$0xff]  ;;  %v1494_v38 = vld [vmem:[#allocation4 + $0x658] sm:$0xff] }
 0xa86   :  { %2324 = vmatpush1.bf16.msra.mxu0 %v1349_v7  ;;  %v1478_v7 = vld [vmem:[#allocation4 + $0x5d8] sm:$0xff]  ;;  %v1525_v28 = vld [vmem:[#allocation4 + $0x750] sm:$0xff] }
 0xa87   :  { %2461 = vmatpush1.bf16.msra.mxu1 %v1671_v45  ;;  %2325 = vmatprep.subr.bf16.mxu0 %v1366_v8  ;;  %v1398_v45 = vld [vmem:[#allocation4 + $0x358] sm:$0xff]  ;;  %v1589_v15 = vld [vmem:[#allocation4 + $0x950] sm:$0xff] }
 0xa88   :  { %2462 = vmatprep.subr.bf16.mxu1 %v1688_v51  ;;  %v1767_v51 = vld [vmem:[#allocation4 + $0xee0] sm:$0xff]  ;;  %v1526_v27 = vld [vmem:[#allocation4 + $0x758] sm:$0xff]  ;;  %v1621_v29 = vld [vmem:[#allocation4 + $0xa50] sm:$0xff] }
 0xa89   :  { %v1542_v46 = vld [vmem:[#allocation4 + $0x7d8] sm:$0xff]  ;;  %v1669_v8 = vld [vmem:[#allocation4 + $0xbd0] sm:$0xff] }
 0xa8a   :  { %2326 = vmatpush1.bf16.msra.mxu0 %v1365_v26  ;;  %v1638_v39 = vld [vmem:[#allocation4 + $0xad8] sm:$0xff] }
 0xa8b   :  { %2463 = vmatpush1.bf16.msra.mxu1 %v1687_v55  ;;  %2327 = vmatprep.subr.bf16.mxu0 %v1382_v30  ;;  %v1783_v55 = vld [vmem:[#allocation4 + $0xf60] sm:$0xff]  ;;  %v1702_v26 = vld [vmem:[#allocation4 + $0xcd8] sm:$0xff] }
 0xa8c   :  { %2464 = vmatprep.subr.bf16.mxu1 %v1704_v56  ;;  %v1800_v56 = vld [vmem:[#allocation4 + $0xfe8] sm:$0xff]  ;;  %v4154_v30 = vld [vmem:[#allocation15 + $0x8] sm:$0xff] }
 0xa8e   :  { %2328 = vmatpush1.bf16.msra.mxu0 %v1381_v40  ;;  %v1846_v40 = vrot.slane %v4154_v30, %v3924_v19 }
 0xa8f   :  { %2465 = vmatpush1.bf16.msra.mxu1 %v1703_v59  ;;  %2329 = vmatprep.subr.bf16.mxu0 %v1398_v45  ;;  %v1799_v59 = vld [vmem:[#allocation4 + $0xfe0] sm:$0xff] }
 0xa90   :  { %2466 = vmatprep.subr.bf16.mxu1 %v1720_v34  ;;  %v1429_v34 = vld [vmem:[#allocation4 + $0x450] sm:$0xff] }
 0xa92   :  { %2330 = vmatpush1.bf16.msra.mxu0 %v1397_v53 }
 0xa93   :  { %2467 = vmatpush1.bf16.msra.mxu1 %v1719_v63  ;;  %2331 = vmatprep.subr.bf16.mxu0 %v1414_v54  ;;  %v1462_v63 = vld [vmem:[#allocation4 + $0x558] sm:$0xff] }
 0xa94   :  { %2468 = vmatprep.subr.bf16.mxu1 %v1736_v6  ;;  %v1461_v6 = vld [vmem:[#allocation4 + $0x550] sm:$0xff] }
 0xa96   :  { %2332 = vmatpush1.bf16.msra.mxu0 %v1413_v57 }
 0xa97   :  { %2469 = vmatpush1.bf16.msra.mxu1 %v1735_v13  ;;  %2333 = vmatprep.subr.bf16.mxu0 %v1430_v58  ;;  %v1686_v13 = vld [vmem:[#allocation4 + $0xc58] sm:$0xff] }
 0xa98   :  { %2470 = vmatprep.subr.bf16.mxu1 %v1752_v25  ;;  %v1685_v25 = vld [vmem:[#allocation4 + $0xc50] sm:$0xff] }
 0xa9a   :  { %2334 = vmatpush1.bf16.msra.mxu0 %v1429_v34  ;;  %v1718_v34 = vld [vmem:[#allocation4 + $0xd58] sm:$0xff] }
 0xa9b   :  { %2471 = vmatpush1.bf16.msra.mxu1 %v1751_v31  ;;  %2335 = vmatprep.subr.bf16.mxu0 %v1446_v61  ;;  %v1842_v31 = vrot.slane %v4154_v30, %v3919_v17  ;;  %v1717_v61 = vld [vmem:[#allocation4 + $0xd50] sm:$0xff] }
 0xa9c   :  { %2472 = vmatprep.subr.bf16.mxu1 %v1768_v36 }
 0xa9e   :  { %2336 = vmatpush1.bf16.msra.mxu0 %v1445_v62  ;;  %v1734_v62 = vld [vmem:[#allocation4 + $0xdd8] sm:$0xff] }
 0xa9f   :  { %2473 = vmatpush1.bf16.msra.mxu1 %v1767_v51  ;;  %2337 = vmatprep.subr.bf16.mxu0 %v1462_v63  ;;  %v1733_v63 = vld [vmem:[#allocation4 + $0xdd0] sm:$0xff] }
 0xaa0   :  { %2474 = vmatprep.subr.bf16.mxu1 %v1784_v52 }
 0xaa2   :  { %2338 = vmatpush1.bf16.msra.mxu0 %v1461_v6  ;;  %v1750_v6 = vld [vmem:[#allocation4 + $0xe58] sm:$0xff] }
 0xaa3   :  { %2475 = vmatpush1.bf16.msra.mxu1 %v1783_v55  ;;  %2339 = vmatprep.subr.bf16.mxu0 %v1478_v7  ;;  %v1749_v7 = vld [vmem:[#allocation4 + $0xe50] sm:$0xff] }
 0xaa4   :  { %2476 = vmatprep.subr.bf16.mxu1 %v1800_v56 }
 0xaa6   :  { %2340 = vmatpush1.bf16.msra.mxu0 %v1477_v37  ;;  %v1766_v37 = vld [vmem:[#allocation4 + $0xed8] sm:$0xff] }
 0xaa7   :  { %2477 = vmatpush1.bf16.msra.mxu1 %v1799_v59  ;;  %2341 = vmatprep.subr.bf16.mxu0 %v1494_v38  ;;  %v1701_v59 = vld [vmem:[#allocation4 + $0xcd0] sm:$0xff] }
 0xaa8   :  { %2583 = vmatprep.subr.bf16.mxu1 %v2580_v43  ;;  %v1653_v43 = vld [vmem:[#allocation4 + $0xb50] sm:$0xff] }
 0xaa9   :  { %v1765_v38 = vld [vmem:[#allocation4 + $0xed0] sm:$0xff] }
 0xaaa   :  { %2479 = vmatmul.mubr.bf16.vlgmr.msra.gmra.mrb[36].mxu1 %v4030_v33  ;;  %2342 = vmatpush1.bf16.msra.mxu0 %v1493_v9  ;;  %v1782_v9 = vld [vmem:[#allocation4 + $0xf58] sm:$0xff] }
 0xaab   :  { %2615 = vmatprep.mubr.bf16.mxu1 %v2576_v23  ;;  %2343 = vmatprep.subr.bf16.mxu0 %v1510_v11  ;;  %v1509_v23 = vld [vmem:[#allocation4 + $0x6d0] sm:$0xff] }
 0xaac   :  { %v1781_v11 = vld [vmem:[#allocation4 + $0xf50] sm:$0xff] }
 0xaae   :  { %2344 = vmatpush1.bf16.msra.mxu0 %v1509_v23  ;;  %v1798_v23 = vld [vmem:[#allocation4 + $0xfd8] sm:$0xff] }
 0xaaf   :  { %2345 = vmatprep.subr.bf16.mxu0 %v1526_v27  ;;  %v1797_v27 = vld [vmem:[#allocation4 + $0xfd0] sm:$0xff] }
 0xab0   :  { %2584 = vmatpush1.bf16.xpose.msra.mxu1 %v2579_v41  ;;  %v1637_v41 = vld [vmem:[#allocation4 + $0xad0] sm:$0xff] }
 0xab1   :  { %2624 = vmatprep.subr.bf16.mxu1 %v2582_v44  ;;  %v1670_v44 = vld [vmem:[#allocation4 + $0xbd8] sm:$0xff] }
 0xab2   :  { %2346 = vmatpush1.bf16.msra.mxu0 %v1525_v28  ;;  %v1306_v28 = vld [vmem:[#allocation4 + $0x78] sm:$0xff] }
 0xab3   :  { %2347 = vmatprep.subr.bf16.mxu0 %v1542_v46  ;;  %v1305_v46 = vld [vmem:[#allocation4 + $0x70] sm:$0xff] }
 0xab6   :  { %2348 = vmatpush1.bf16.msra.mxu0 %v1541_v2  ;;  %v1322_v2 = vld [vmem:[#allocation4 + $0xf8] sm:$0xff] }
 0xab7   :  { %2616 = vmatmul.mubr.bf16.vlgmr.msra.gmra.mrb[40].mxu1 %v2575_v20  ;;  %2360 = vmatprep.subr.bf16.mxu0 %v1558_v16  ;;  %v1573_v20 = vld [vmem:[#allocation4 + $0x8d0] sm:$0xff] }
 0xab8   :  { %2625 = vmatpush1.bf16.xpose.msra.mxu1 %v2581_v42  ;;  %2656 = vmatprep.mubr.bf16.mxu1 %v2578_v24  ;;  %v1590_v24 = vld [vmem:[#allocation4 + $0x958] sm:$0xff]  ;;  %v1321_v16 = vld [vmem:[#allocation4 + $0xf0] sm:$0xff] }
 0xab9   :  { %2350 = vmatmul.mubr.bf16.vlgmr.msra.gmra.mrb[36].mxu0 %v4028_v32  ;;  %v1654_v42 = vld [vmem:[#allocation4 + $0xb58] sm:$0xff] }
 0xaba   :  { %2361 = vmatpush1.bf16.msra.mxu0 %v1557_v10  ;;  %2392 = vmatprep.mubr.bf16.mxu0 %v4034_v18  ;;  %v1338_v10 = vld [vmem:[#allocation4 + $0x178] sm:$0xff] }
 0xabb   :  { %2362 = vmatprep.subr.bf16.mxu0 %v1574_v12  ;;  %v1337_v12 = vld [vmem:[#allocation4 + $0x170] sm:$0xff] }
 0xabe   :  { %2363 = vmatpush1.bf16.msra.mxu0 %v1573_v20  ;;  %v1354_v20 = vld [vmem:[#allocation4 + $0x1f8] sm:$0xff] }
 0xabf   :  { %2364 = vmatprep.subr.bf16.mxu0 %v1590_v24  ;;  %v1353_v24 = vld [vmem:[#allocation4 + $0x1f0] sm:$0xff] }
 0xac2   :  { %2365 = vmatpush1.bf16.msra.mxu0 %v1589_v15  ;;  %v1370_v15 = vld [vmem:[#allocation4 + $0x278] sm:$0xff] }
 0xac3   :  { %2657 = vmatmul.mubr.bf16.vlgmr.msra.gmra.mrb[40].mxu1 %v2577_v21  ;;  %2366 = vmatprep.subr.bf16.mxu0 %v1606_v3  ;;  %v1622_v21 = vld [vmem:[#allocation4 + $0xa58] sm:$0xff]  ;;  %v1369_v3 = vld [vmem:[#allocation4 + $0x270] sm:$0xff] }
 0xac4   :  { %2733 = vmatprep.mubr.bf16.mxu1 %v3720_v5 }
 0xac6   :  { %2367 = vmatpush1.bf16.msra.mxu0 %v1605_v4  ;;  %v1386_v4 = vld [vmem:[#allocation4 + $0x2f8] sm:$0xff] }
 0xac7   :  { %2368 = vmatprep.subr.bf16.mxu0 %v1622_v21  ;;  %v1385_v21 = vld [vmem:[#allocation4 + $0x2f0] sm:$0xff] }
 0xaca   :  { %2369 = vmatpush1.bf16.msra.mxu0 %v1621_v29  ;;  %v1402_v29 = vld [vmem:[#allocation4 + $0x378] sm:$0xff] }
 0xacb   :  { %2370 = vmatprep.subr.bf16.mxu0 %v1638_v39 }
 0xace   :  { %2371 = vmatpush1.bf16.msra.mxu0 %v1637_v41 }
 0xacf   :  { %2372 = vmatprep.subr.bf16.mxu0 %v1654_v42 }
 0xad2   :  { %2373 = vmatpush1.bf16.msra.mxu0 %v1653_v43 }
 0xad3   :  { %2374 = vmatprep.subr.bf16.mxu0 %v1670_v44 }
 0xad6   :  { %2375 = vmatpush1.bf16.msra.mxu0 %v1669_v8 }
 0xad7   :  { %2376 = vmatprep.subr.bf16.mxu0 %v1686_v13 }
 0xada   :  { %2377 = vmatpush1.bf16.msra.mxu0 %v1685_v25 }
 0xadb   :  { %2378 = vmatprep.subr.bf16.mxu0 %v1702_v26  ;;  %v1418_v26 = vld [vmem:[#allocation4 + $0x3f8] sm:$0xff] }
 0xade   :  { %2379 = vmatpush1.bf16.msra.mxu0 %v1701_v59  ;;  %v1513_v59 = vld [vmem:[#allocation4 + $0x6f0] sm:$0xff] }
 0xadf   :  { %2380 = vmatprep.subr.bf16.mxu0 %v1718_v34  ;;  %v1530_v34 = vld [vmem:[#allocation4 + $0x778] sm:$0xff] }
 0xae2   :  { %2381 = vmatpush1.bf16.msra.mxu0 %v1717_v61  ;;  %v1529_v61 = vld [vmem:[#allocation4 + $0x770] sm:$0xff] }
 0xae3   :  { %2382 = vmatprep.subr.bf16.mxu0 %v1734_v62  ;;  %v1546_v62 = vld [vmem:[#allocation4 + $0x7f8] sm:$0xff] }
 0xae6   :  { %2383 = vmatpush1.bf16.msra.mxu0 %v1733_v63  ;;  %v1545_v63 = vld [vmem:[#allocation4 + $0x7f0] sm:$0xff] }
 0xae7   :  { %2384 = vmatprep.subr.bf16.mxu0 %v1750_v6  ;;  %v1562_v6 = vld [vmem:[#allocation4 + $0x878] sm:$0xff] }
 0xaea   :  { %2385 = vmatpush1.bf16.msra.mxu0 %v1749_v7  ;;  %v1561_v7 = vld [vmem:[#allocation4 + $0x870] sm:$0xff] }
 0xaeb   :  { %2386 = vmatprep.subr.bf16.mxu0 %v1766_v37  ;;  %v1578_v37 = vld [vmem:[#allocation4 + $0x8f8] sm:$0xff] }
 0xaee   :  { %2387 = vmatpush1.bf16.msra.mxu0 %v1765_v38  ;;  %v1577_v38 = vld [vmem:[#allocation4 + $0x8f0] sm:$0xff] }
 0xaef   :  { %2388 = vmatprep.subr.bf16.mxu0 %v1782_v9  ;;  %v1594_v9 = vld [vmem:[#allocation4 + $0x978] sm:$0xff] }
 0xaf2   :  { %2389 = vmatpush1.bf16.msra.mxu0 %v1781_v11  ;;  %v1593_v11 = vld [vmem:[#allocation4 + $0x970] sm:$0xff] }
 0xaf3   :  { %2390 = vmatprep.subr.bf16.mxu0 %v1798_v23  ;;  %v1610_v23 = vld [vmem:[#allocation4 + $0x9f8] sm:$0xff] }
 0xaf6   :  { %2391 = vmatpush1.bf16.msra.mxu0 %v1797_v27  ;;  %v1609_v27 = vld [vmem:[#allocation4 + $0x9f0] sm:$0xff] }
 0xaf7   :  { %2489 = vmatprep.subr.bf16.mxu0 %v1306_v28  ;;  %v1626_v28 = vld [vmem:[#allocation4 + $0xa78] sm:$0xff] }
 0xaf9   :  { %2393 = vmatmul.mubr.bf16.vlgmr.msra.gmra.mrb[36].mxu0 %v4030_v33 }
 0xafa   :  { %2490 = vmatpush1.bf16.msra.mxu0 %v1305_v46  ;;  %2521 = vmatprep.mubr.bf16.mxu0 %v4032_v35  ;;  %v1401_v35 = vld [vmem:[#allocation4 + $0x370] sm:$0xff] }
 0xafb   :  { %2491 = vmatprep.subr.bf16.mxu0 %v1322_v2  ;;  %v1625_v46 = vld [vmem:[#allocation4 + $0xa70] sm:$0xff]  ;;  %v1642_v2 = vld [vmem:[#allocation4 + $0xaf8] sm:$0xff] }
 0xafd   :  { %v2308_v36 = vpop.f32.mrb[32].mxu1 }
 0xafe   :  { %v2310_v45 = vpop.f32.mrb[33].mxu1  ;;  %v3368_v52 = vadd.f32 %v2308_v36, %v1842_v31  ;;  %2492 = vmatpush1.bf16.msra.mxu0 %v1321_v16  ;;  %v1434_v36 = vld [vmem:[#allocation4 + $0x478] sm:$0xff] }
 0xaff   :  { %v2312_v51 = vpop.f32.mrb[34].mxu1  ;;  %v3369_v55 = vadd.f32 %v2310_v45, %v1846_v40  ;;  %2493 = vmatprep.subr.bf16.mxu0 %v1338_v10  ;;  %v1450_v45 = vld [vmem:[#allocation4 + $0x4f8] sm:$0xff] }
 0xb00   :  { %v3370_v53 = vadd.f32 %v2312_v51, %v1842_v31  ;;  %v2314_v54 = vpop.f32.mrb[35].mxu1  ;;  %v1417_v31 = vld [vmem:[#allocation4 + $0x3f0] sm:$0xff]  ;;  %v1658_v16 = vld [vmem:[#allocation4 + $0xb78] sm:$0xff] }
 0xb01   :  { %v3371_v56 = vadd.f32 %v2314_v54, %v1846_v40  ;;  %v1433_v40 = vld [vmem:[#allocation4 + $0x470] sm:$0xff]  ;;  %v1482_v54 = vld [vmem:[#allocation4 + $0x5f8] sm:$0xff] }
 0xb02   :  { %v2694_v57 = vpack.c.bf16 %v3370_v53, %v3368_v52  ;;  %2494 = vmatpush1.bf16.msra.mxu0 %v1337_v12  ;;  %v1449_v51 = vld [vmem:[#allocation4 + $0x4f0] sm:$0xff]  ;;  %v1466_v52 = vld [vmem:[#allocation4 + $0x578] sm:$0xff] }
 0xb03   :  { %v2695_v58 = vpack.c.bf16 %v3371_v56, %v3369_v55  ;;  %2495 = vmatprep.subr.bf16.mxu0 %v1354_v20  ;;  %v1465_v53 = vld [vmem:[#allocation4 + $0x570] sm:$0xff]  ;;  %v1498_v56 = vld [vmem:[#allocation4 + $0x678] sm:$0xff] }
 0xb04   :  { %v1481_v55 = vld [vmem:[#allocation4 + $0x5f0] sm:$0xff]  ;;  %v1674_v10 = vld [vmem:[#allocation4 + $0xbf8] sm:$0xff] }
 0xb05   :  { %2701 = vmatprep.subr.bf16.mxu1 %v2695_v58  ;;  %v1514_v58 = vld [vmem:[#allocation4 + $0x6f8] sm:$0xff]  ;;  %v1673_v12 = vld [vmem:[#allocation4 + $0xbf0] sm:$0xff] }
 0xb06   :  { %2702 = vmatpush1.bf16.msra.mxu1 %v2694_v57  ;;  %2496 = vmatpush1.bf16.msra.mxu0 %v1353_v24  ;;  %v1497_v57 = vld [vmem:[#allocation4 + $0x670] sm:$0xff]  ;;  %v1690_v20 = vld [vmem:[#allocation4 + $0xc78] sm:$0xff] }
 0xb07   :  { %2497 = vmatprep.subr.bf16.mxu0 %v1370_v15  ;;  %v1689_v24 = vld [vmem:[#allocation4 + $0xc70] sm:$0xff]  ;;  %v1706_v15 = vld [vmem:[#allocation4 + $0xcf8] sm:$0xff] }
 0xb0a   :  { %2498 = vmatpush1.bf16.msra.mxu0 %v1369_v3  ;;  %v1705_v3 = vld [vmem:[#allocation4 + $0xcf0] sm:$0xff] }
 0xb0b   :  { %2499 = vmatprep.subr.bf16.mxu0 %v1386_v4  ;;  %v1722_v4 = vld [vmem:[#allocation4 + $0xd78] sm:$0xff] }
 0xb0e   :  { %2500 = vmatpush1.bf16.msra.mxu0 %v1385_v21  ;;  %v1721_v21 = vld [vmem:[#allocation4 + $0xd70] sm:$0xff] }
 0xb0f   :  { %2501 = vmatprep.subr.bf16.mxu0 %v1402_v29  ;;  %v1738_v29 = vld [vmem:[#allocation4 + $0xdf8] sm:$0xff] }
 0xb12   :  { %2502 = vmatpush1.bf16.msra.mxu0 %v1401_v35  ;;  %v1737_v35 = vld [vmem:[#allocation4 + $0xdf0] sm:$0xff] }
 0xb13   :  { %2503 = vmatprep.subr.bf16.mxu0 %v1418_v26  ;;  %v1854_v26 = vrot.slane %v4154_v30, %v3954_v22 }
 0xb16   :  { %2504 = vmatpush1.bf16.msra.mxu0 %v1417_v31 }
 0xb17   :  { %2505 = vmatprep.subr.bf16.mxu0 %v1434_v36  ;;  %v1785_v36 = vld [vmem:[#allocation4 + $0xf70] sm:$0xff] }
 0xb1a   :  { %2506 = vmatpush1.bf16.msra.mxu0 %v1433_v40 }
 0xb1b   :  { %2507 = vmatprep.subr.bf16.mxu0 %v1450_v45 }
 0xb1e   :  { %2508 = vmatpush1.bf16.msra.mxu0 %v1449_v51  ;;  %v1802_v51 = vld [vmem:[#allocation4 + $0xff8] sm:$0xff] }
 0xb1f   :  { %2509 = vmatprep.subr.bf16.mxu0 %v1466_v52 }
 0xb22   :  { %2510 = vmatpush1.bf16.msra.mxu0 %v1465_v53 }
 0xb23   :  { %2511 = vmatprep.subr.bf16.mxu0 %v1482_v54 }
 0xb26   :  { %2512 = vmatpush1.bf16.msra.mxu0 %v1481_v55 }
 0xb27   :  { %2513 = vmatprep.subr.bf16.mxu0 %v1498_v56 }
 0xb2a   :  { %2514 = vmatpush1.bf16.msra.mxu0 %v1497_v57  ;;  %v1801_v57 = vld [vmem:[#allocation4 + $0xff0] sm:$0xff] }
 0xb2b   :  { %2515 = vmatprep.subr.bf16.mxu0 %v1514_v58 }
 0xb2e   :  { %2516 = vmatpush1.bf16.msra.mxu0 %v1513_v59 }
 0xb2f   :  { %2517 = vmatprep.subr.bf16.mxu0 %v1530_v34 }
 0xb32   :  { %2518 = vmatpush1.bf16.msra.mxu0 %v1529_v61 }
 0xb33   :  { %2519 = vmatprep.subr.bf16.mxu0 %v1546_v62 }
 0xb36   :  { %2520 = vmatpush1.bf16.msra.mxu0 %v1545_v63 }
 0xb37   :  { %2532 = vmatprep.subr.bf16.mxu0 %v1562_v6 }
 0xb39   :  { %2522 = vmatmul.mubr.bf16.vlgmr.msra.gmra.mrb[40].mxu0 %v4028_v32  ;;  %v1641_v32 = vld [vmem:[#allocation4 + $0xaf0] sm:$0xff] }
 0xb3a   :  { %2533 = vmatpush1.bf16.msra.mxu0 %v1561_v7  ;;  %2564 = vmatprep.mubr.bf16.mxu0 %v4034_v18  ;;  %v1657_v18 = vld [vmem:[#allocation4 + $0xb70] sm:$0xff] }
 0xb3b   :  { %2534 = vmatprep.subr.bf16.mxu0 %v1578_v37 }
 0xb3e   :  { %2535 = vmatpush1.bf16.msra.mxu0 %v1577_v38 }
 0xb3f   :  { %2536 = vmatprep.subr.bf16.mxu0 %v1594_v9 }
 0xb42   :  { %2537 = vmatpush1.bf16.msra.mxu0 %v1593_v11 }
 0xb43   :  { %2538 = vmatprep.subr.bf16.mxu0 %v1610_v23 }
 0xb46   :  { %2539 = vmatpush1.bf16.msra.mxu0 %v1609_v27 }
 0xb47   :  { %2540 = vmatprep.subr.bf16.mxu0 %v1626_v28 }
 0xb4a   :  { %2541 = vmatpush1.bf16.msra.mxu0 %v1625_v46 }
 0xb4b   :  { %2542 = vmatprep.subr.bf16.mxu0 %v1642_v2 }
 0xb4e   :  { %2543 = vmatpush1.bf16.msra.mxu0 %v1641_v32 }
 0xb4f   :  { %2544 = vmatprep.subr.bf16.mxu0 %v1658_v16 }
 0xb52   :  { %2545 = vmatpush1.bf16.msra.mxu0 %v1657_v18  ;;  %v1858_v18 = vrot.slane %v4154_v30, %v3981_v48 }
 0xb53   :  { %2546 = vmatprep.subr.bf16.mxu0 %v1674_v10  ;;  %v1866_v10 = vrot.slane %v4154_v30, %v3978_v47 }
 0xb56   :  { %2547 = vmatpush1.bf16.msra.mxu0 %v1673_v12  ;;  %v1862_v12 = vrot.slane %v4154_v30, %v3987_v50 }
 0xb57   :  { %2548 = vmatprep.subr.bf16.mxu0 %v1690_v20  ;;  %v1870_v20 = vrot.slane %v4154_v30, %v3984_v49 }
 0xb5a   :  { %2549 = vmatpush1.bf16.msra.mxu0 %v1689_v24 }
 0xb5b   :  { %2550 = vmatprep.subr.bf16.mxu0 %v1706_v15 }
 0xb5e   :  { %2551 = vmatpush1.bf16.msra.mxu0 %v1705_v3 }
 0xb5f   :  { %2552 = vmatprep.subr.bf16.mxu0 %v1722_v4 }
 0xb62   :  { %2553 = vmatpush1.bf16.msra.mxu0 %v1721_v21 }
 0xb63   :  { %2554 = vmatprep.subr.bf16.mxu0 %v1738_v29 }
 0xb66   :  { %2555 = vmatpush1.bf16.msra.mxu0 %v1737_v35 }
 0xb96   :  { %v2658_v39 = vpop.f32.mrb[40].mxu1 }
 0xb97   :  { %v4164_v41 = vsel %vm423_vm2, %v2658_v39, -1e+30  ;;  %v2660_v42 = vpop.f32.mrb[41].mxu1  ;;  %v1754_v39 = vld [vmem:[#allocation4 + $0xe78] sm:$0xff] }
 0xb98   :  { %v2661_v43 = vpop.f32.mrb[42].mxu1  ;;  %v2667_v44 = vsel %vm427_vm3, %v4164_v41, -inf  ;;  %2556 = vmatprep.subr.bf16.mxu0 %v1754_v39  ;;  %v1753_v42 = vld [vmem:[#allocation4 + $0xe70] sm:$0xff] }
 0xb99   :  { %v4170_v8 = vsel %vm424_vm4, %v2661_v43, -1e+30  ;;  %2668 = vmax.xlane.f32.xlu0 %v2667_v44  ;;  %v2663_v13 = vpop.f32.mrb[43].mxu1  ;;  %v1770_v43 = vld [vmem:[#allocation4 + $0xef8] sm:$0xff]  ;;  %2557 = vmatpush1.bf16.msra.mxu0 %v1753_v42  ;;  %v1769_v44 = vld [vmem:[#allocation4 + $0xef0] sm:$0xff] }
 0xb9a   :  { %v2670_v25 = vsel %vm427_vm3, %v4170_v8, -inf  ;;  %2558 = vmatprep.subr.bf16.mxu0 %v1770_v43  ;;  %v1850_v13 = vrot.slane %v4154_v30, %v3948_v60 }
 0xb9d   :  { %2671 = vmax.xlane.f32.xlu0 %v2670_v25  ;;  %v1786_v25 = vld [vmem:[#allocation4 + $0xf78] sm:$0xff]  ;;  %2559 = vmatpush1.bf16.msra.mxu0 %v1769_v44 }
 0xb9e   :  { %2560 = vmatprep.subr.bf16.mxu0 %v1786_v25 }
 0xba1   :  { %2561 = vmatpush1.bf16.msra.mxu0 %v1785_v36 }
 0xba2   :  { %2562 = vmatprep.subr.bf16.mxu0 %v1802_v51 }
 0xba5   :  { %2563 = vmatpush1.bf16.msra.mxu0 %v1801_v57 }
 0xba8   :  { %2565 = vmatmul.mubr.bf16.vlgmr.msra.gmra.mrb[40].mxu0 %v4030_v33 }
 0xba9   :  { %2776 = vmatprep.mubr.bf16.mxu0 %v3720_v5 }
 0xbcc   :  { %v2394_v31 = vpop.f32.mrb[36].mxu0 }
 0xbcd   :  { %v3372_v40 = vadd.f32 %v2394_v31, %v1850_v13  ;;  %v2396_v45 = vpop.f32.mrb[37].mxu0 }
 0xbce   :  { %v3373_v52 = vadd.f32 %v2396_v45, %v1854_v26  ;;  %v2398_v53 = vpop.f32.mrb[38].mxu0 }
 0xbcf   :  { %v3374_v54 = vadd.f32 %v2398_v53, %v1850_v13  ;;  %v2400_v55 = vpop.f32.mrb[39].mxu0 }
 0xbd0   :  { %v3375_v56 = vadd.f32 %v2400_v55, %v1854_v26 }
 0xbd1   :  { %v2696_v58 = vpack.c.bf16 %v3374_v54, %v3372_v40 }
 0xbd2   :  { %v2697_v59 = vpack.c.bf16 %v3375_v56, %v3373_v52 }
 0xbd4   :  { %2744 = vmatprep.subr.bf16.mxu0 %v2697_v59 }
 0xbd5   :  { %2745 = vmatpush1.bf16.msra.mxu0 %v2696_v58 }
 0xc26   :  { %v2669_v34 = vpop.xlane.xlu0 %2668 }
 0xc27   :  { %v2673_v61 = vsub.f32 %v4164_v41, %v2669_v34 }
 0xc29   :  { %v2675_v62 = vmul.f32 1.442695, %v2673_v61 }
 0xc2a   :  { %v2672_v63 = vpop.xlane.xlu0 %2671 }
 0xc2b   :  { %3504 = vpow2.f32 %v2675_v62  ;;  %v2674_v6 = vsub.f32 %v4170_v8, %v2672_v63 }
 0xc2d   :  { %v2677_v7 = vmul.f32 1.442695, %v2674_v6 }
 0xc2f   :  { %3506 = vpow2.f32 %v2677_v7 }
 0xc35   :  { %v3505_v37 = vpop.eup %3504 }
 0xc36   :  { %v2679_v38 = vmul.f32 %v3505_v37, %v3903_v0 }
 0xc38   :  { %v2681_v9 = vsel %vm427_vm3, %v2679_v38, 0.0 }
 0xc39   :  { %v3507_v11 = vpop.eup %3506  ;;  %2682 = vadd.xlane.f32.xlu1 %v2681_v9 }
 0xc3a   :  { %v2680_v33 = vmul.f32 %v3507_v11, %v3905_v1 }
 0xc3c   :  { %v2684_v5 = vsel %vm427_vm3, %v2680_v33, 0.0 }
 0xc3d   :  { %2685 = vadd.xlane.f32.xlu1 %v2684_v5 }
 0xcc6   :  { %v2683_v41 = vpop.xlane.xlu1 %2682 }
 0xcc7   :  { %v2687_v23 = vmax.f32 %v2683_v41, 1e-20 }
 0xcc9   :  { %3508 = vrcp.f32 %v2687_v23 }
 0xcca   :  { %v2686_v27 = vpop.xlane.xlu1 %2685 }
 0xccb   :  { %v2688_v28 = vmax.f32 %v2686_v27, 1e-20 }
 0xccd   :  { %3510 = vrcp.f32 %v2688_v28 }
 0xcd3   :  { %v3509_v8 = vpop.eup %3508 }
 0xcd4   :  { %v2691_v2 = vmul.f32 %v3509_v8, %v2679_v38 }
 0xcd7   :  { %v3511_v46 = vpop.eup %3510 }
 0xcd8   :  { %v2692_v32 = vmul.f32 %v3511_v46, %v2680_v33 }
 0xcda   :  { %v2693_v16 = vpack.c.bf16 %v2692_v32, %v2691_v2 }
 0xcdc   :  { %3305 = vmatmul.mubr.msk.bf16.vlgmr.msra.gmra.mrb[36].mxu1 %vm427_vm3, %v2693_v16  ;;  %3306 = vmatmul.mubr.msk.bf16.vlgmr.msra.gmra.mrb[40].mxu0 %vm427_vm3, %v2693_v16 }
 0xdaf   :  { %v2735_v24 = vpop.f32.mrb[36].mxu1  ;;  %v2778_v15 = vpop.f32.mrb[40].mxu0 }
 0xdb0   :  { %v3376_v3 = vadd.f32 %v2735_v24, %v1858_v18  ;;  %v3380_v4 = vadd.f32 %v2778_v15, %v1866_v10  ;;  %v2737_v21 = vpop.f32.mrb[37].mxu1  ;;  %v2780_v29 = vpop.f32.mrb[41].mxu0 }
 0xdb1   :  { %v3377_v35 = vadd.f32 %v2737_v21, %v1862_v12  ;;  %v3381_v39 = vadd.f32 %v2780_v29, %v1870_v20  ;;  %v2739_v42 = vpop.f32.mrb[38].mxu1  ;;  %v2782_v43 = vpop.f32.mrb[42].mxu0 }
 0xdb2   :  { %v3378_v48 = vadd.f32 %v2739_v42, %v1858_v18  ;;  %v3382_v44 = vadd.f32 %v2782_v43, %v1866_v10  ;;  %v2741_v13 = vpop.f32.mrb[39].mxu1  ;;  %v2784_v47 = vpop.f32.mrb[43].mxu0  ;;  %v2787_v50 = vmax.f32 %v3376_v3, 0.0  ;;  %v2789_v31 = vmax.f32 %v3380_v4, 0.0 }
 0xdb3   :  { %v3379_v25 = vadd.f32 %v2741_v13, %v1862_v12  ;;  %v3383_v26 = vadd.f32 %v2784_v47, %v1870_v20  ;;  %v2788_v30 = vmax.f32 %v3377_v35, 0.0  ;;  %v2790_v40 = vmax.f32 %v3381_v39, 0.0 }
 0xdb4   :  { %v2791_v36 = vmax.f32 %v3378_v48, 0.0  ;;  %v2793_v49 = vmax.f32 %v3382_v44, 0.0 }
 0xdb5   :  { %v2792_v45 = vmax.f32 %v3379_v25, 0.0  ;;  %v2794_v51 = vmax.f32 %v3383_v26, 0.0 }
 0xdb6   :  { %v4198_v52 = vpack.c.bf16 %v2791_v36, %v2787_v50  ;;  %v4200_v53 = vpack.c.bf16 %v2793_v49, %v2789_v31 }
 0xdb7   :  { %v2796_v54 = vpack.c.bf16 %v2792_v45, %v2788_v30  ;;  %v4202_v55 = vpack.c.bf16 %v2794_v51, %v2790_v40 }
 0xdb8   :  { %3688 = dma.done.wait [#allocation6 + $0x3], 16384 }
 0xdb9   :  { %3689 = vsyncadd [#allocation6 + $0x3], 4294950912  ;;  %2984 = vmatprep.mubr.bf16.mxu0 %v2796_v54  ;;  %3070 = vmatprep.mubr.bf16.mxu1 %v2796_v54  ;;  %v2803_v56 = vld [vmem:[#allocation5 + $0x8] sm:$0xff]  ;;  %v2802_v57 = vld [vmem:[#allocation5] sm:$0xff]  ;;  %s3723_s9 = smov [#allocation18]  }
 0xdba   :  { %v2807_v58 = vld [vmem:[#allocation5 + $0x28] sm:$0xff]  ;;  %2952 = vmatprep.subr.bf16.mxu0 %v2803_v56  ;;  %v2806_v59 = vld [vmem:[#allocation5 + $0x20] sm:$0xff]  ;;  %s3250_s29 = sshll.u32 %s3723_s9, 4  ;;  %s3251_s29 = int_to_ptr.vmem [resolvable:$true] %s3250_s29 }
 0xdbb   :  { %2953 = vmatpush1.bf16.msra.mxu0 %v2802_v57  ;;  %v2811_v34 = vld [vmem:[#allocation5 + $0x48] sm:$0xff]  ;;  %v2810_v61 = vld [vmem:[#allocation5 + $0x40] sm:$0xff]  ;;  %s3652_s30 = scalar_lea.vmem %s3251_s29, 256  ;;  %p3657_p7 = scmp.lt.s32.totalorder %s3251_s29, %s3251_s29 }
 0xdbc   :  { %2954 = vmatprep.subr.bf16.mxu0 %v2807_v58  ;;  %v2815_v62 = vld [vmem:[#allocation5 + $0x68] sm:$0xff]  ;;  %v2814_v63 = vld [vmem:[#allocation5 + $0x60] sm:$0xff]  ;;  %p3653_p6 = scmp.ne.s32.totalorder %s3251_s29, %s3652_s30  ;;  %p3658_p8 = scmp.lt.s32.totalorder %s3652_s30, %s3652_s30 }
 0xdbd   :  { %v2819_v6 = vld [vmem:[#allocation5 + $0x88] sm:$0xff]  ;;  %v2818_v7 = vld [vmem:[#allocation5 + $0x80] sm:$0xff] }
 0xdbe   :  { %v2823_v37 = vld [vmem:[#allocation5 + $0xa8] sm:$0xff]  ;;  %v2822_v38 = vld [vmem:[#allocation5 + $0xa0] sm:$0xff]  ;;  %p3659_p9 = por %p3658_p8, %p3657_p7 }
 0xdbf   :  { %2955 = vmatpush1.bf16.msra.mxu0 %v2806_v59  ;;  %v2827_v9 = vld [vmem:[#allocation5 + $0xc8] sm:$0xff]  ;;  %v2826_v11 = vld [vmem:[#allocation5 + $0xc0] sm:$0xff] }
 0xdc0   :  { %2956 = vmatprep.subr.bf16.mxu0 %v2811_v34  ;;  %v2831_v33 = vld [vmem:[#allocation5 + $0xe8] sm:$0xff]  ;;  %v2830_v5 = vld [vmem:[#allocation5 + $0xe0] sm:$0xff]  ;;  %p3660_p10 = pnand %p3659_p9, %p3653_p6 }
 0xdc1   :  { %v2835_v41 = vld [vmem:[#allocation5 + $0x108] sm:$0xff]  ;;  %v2834_v23 = vld [vmem:[#allocation5 + $0x100] sm:$0xff] }
 0xdc2   :  { %v2839_v27 = vld [vmem:[#allocation5 + $0x128] sm:$0xff]  ;;  %v2838_v28 = vld [vmem:[#allocation5 + $0x120] sm:$0xff] }
 0xdc3   :  { %2957 = vmatpush1.bf16.msra.mxu0 %v2810_v61  ;;  %v2843_v8 = vld [vmem:[#allocation5 + $0x148] sm:$0xff]  ;;  %v2842_v46 = vld [vmem:[#allocation5 + $0x140] sm:$0xff] }
 0xdc4   :  { %2958 = vmatprep.subr.bf16.mxu0 %v2815_v62  ;;  %v2847_v2 = vld [vmem:[#allocation5 + $0x168] sm:$0xff]  ;;  %v2846_v32 = vld [vmem:[#allocation5 + $0x160] sm:$0xff] }
 0xdc5   :  { %v2851_v16 = vld [vmem:[#allocation5 + $0x188] sm:$0xff]  ;;  %v2850_v18 = vld [vmem:[#allocation5 + $0x180] sm:$0xff] }
 0xdc6   :  { %v2855_v10 = vld [vmem:[#allocation5 + $0x1a8] sm:$0xff]  ;;  %v2854_v12 = vld [vmem:[#allocation5 + $0x1a0] sm:$0xff] }
 0xdc7   :  { %2959 = vmatpush1.bf16.msra.mxu0 %v2814_v63  ;;  %v2859_v20 = vld [vmem:[#allocation5 + $0x1c8] sm:$0xff]  ;;  %v2858_v24 = vld [vmem:[#allocation5 + $0x1c0] sm:$0xff] }
 0xdc8   :  { %2960 = vmatprep.subr.bf16.mxu0 %v2819_v6  ;;  %v2863_v15 = vld [vmem:[#allocation5 + $0x1e8] sm:$0xff]  ;;  %v2862_v3 = vld [vmem:[#allocation5 + $0x1e0] sm:$0xff] }
 0xdc9   :  { %v2867_v4 = vld [vmem:[#allocation5 + $0x208] sm:$0xff]  ;;  %v2866_v21 = vld [vmem:[#allocation5 + $0x200] sm:$0xff] }
 0xdca   :  { %v2871_v29 = vld [vmem:[#allocation5 + $0x228] sm:$0xff]  ;;  %v2870_v35 = vld [vmem:[#allocation5 + $0x220] sm:$0xff] }
 0xdcb   :  { %2961 = vmatpush1.bf16.msra.mxu0 %v2818_v7  ;;  %v2875_v39 = vld [vmem:[#allocation5 + $0x248] sm:$0xff]  ;;  %v2874_v42 = vld [vmem:[#allocation5 + $0x240] sm:$0xff] }
 0xdcc   :  { %2962 = vmatprep.subr.bf16.mxu0 %v2823_v37  ;;  %v2879_v43 = vld [vmem:[#allocation5 + $0x268] sm:$0xff]  ;;  %v2878_v48 = vld [vmem:[#allocation5 + $0x260] sm:$0xff]  ;;  %v2805_v37 = vld [vmem:[#allocation5 + $0x18] sm:$0xff] }
 0xdcd   :  { %v2883_v44 = vld [vmem:[#allocation5 + $0x288] sm:$0xff]  ;;  %v2882_v13 = vld [vmem:[#allocation5 + $0x280] sm:$0xff]  ;;  %3038 = vmatprep.subr.bf16.mxu1 %v2805_v37 }
 0xdce   :  { %v2887_v47 = vld [vmem:[#allocation5 + $0x2a8] sm:$0xff]  ;;  %v2886_v25 = vld [vmem:[#allocation5 + $0x2a0] sm:$0xff] }
 0xdcf   :  { %2963 = vmatpush1.bf16.msra.mxu0 %v2822_v38  ;;  %v2891_v26 = vld [vmem:[#allocation5 + $0x2c8] sm:$0xff]  ;;  %v2890_v50 = vld [vmem:[#allocation5 + $0x2c0] sm:$0xff]  ;;  %v2804_v38 = vld [vmem:[#allocation5 + $0x10] sm:$0xff] }
 0xdd0   :  { %2964 = vmatprep.subr.bf16.mxu0 %v2827_v9  ;;  %v2895_v31 = vld [vmem:[#allocation5 + $0x2e8] sm:$0xff]  ;;  %v2894_v36 = vld [vmem:[#allocation5 + $0x2e0] sm:$0xff]  ;;  %v2809_v9 = vld [vmem:[#allocation5 + $0x38] sm:$0xff]  ;;  %3039 = vmatpush1.bf16.msra.mxu1 %v2804_v38 }
 0xdd1   :  { %v2899_v49 = vld [vmem:[#allocation5 + $0x308] sm:$0xff]  ;;  %v2898_v30 = vld [vmem:[#allocation5 + $0x300] sm:$0xff]  ;;  %3040 = vmatprep.subr.bf16.mxu1 %v2809_v9 }
 0xdd2   :  { %v2903_v40 = vld [vmem:[#allocation5 + $0x328] sm:$0xff]  ;;  %v2902_v45 = vld [vmem:[#allocation5 + $0x320] sm:$0xff] }
 0xdd3   :  { %2965 = vmatpush1.bf16.msra.mxu0 %v2826_v11  ;;  %v2907_v51 = vld [vmem:[#allocation5 + $0x348] sm:$0xff]  ;;  %v2906_v54 = vld [vmem:[#allocation5 + $0x340] sm:$0xff]  ;;  %v2808_v11 = vld [vmem:[#allocation5 + $0x30] sm:$0xff] }
 0xdd4   :  { %2966 = vmatprep.subr.bf16.mxu0 %v2831_v33  ;;  %v2911_v56 = vld [vmem:[#allocation5 + $0x368] sm:$0xff]  ;;  %v2910_v57 = vld [vmem:[#allocation5 + $0x360] sm:$0xff]  ;;  %v2813_v33 = vld [vmem:[#allocation5 + $0x58] sm:$0xff]  ;;  %3041 = vmatpush1.bf16.msra.mxu1 %v2808_v11 }
 0xdd5   :  { %v2915_v58 = vld [vmem:[#allocation5 + $0x388] sm:$0xff]  ;;  %v2914_v59 = vld [vmem:[#allocation5 + $0x380] sm:$0xff]  ;;  %3042 = vmatprep.subr.bf16.mxu1 %v2813_v33 }
 0xdd6   :  { %v2919_v34 = vld [vmem:[#allocation5 + $0x3a8] sm:$0xff]  ;;  %v2918_v61 = vld [vmem:[#allocation5 + $0x3a0] sm:$0xff] }
 0xdd7   :  { %2967 = vmatpush1.bf16.msra.mxu0 %v2830_v5  ;;  %v2923_v62 = vld [vmem:[#allocation5 + $0x3c8] sm:$0xff]  ;;  %v2922_v63 = vld [vmem:[#allocation5 + $0x3c0] sm:$0xff]  ;;  %v2812_v5 = vld [vmem:[#allocation5 + $0x50] sm:$0xff] }
 0xdd8   :  { %2968 = vmatprep.subr.bf16.mxu0 %v2835_v41  ;;  %v2927_v6 = vld [vmem:[#allocation5 + $0x3e8] sm:$0xff]  ;;  %v2926_v7 = vld [vmem:[#allocation5 + $0x3e0] sm:$0xff]  ;;  %v2817_v41 = vld [vmem:[#allocation5 + $0x78] sm:$0xff]  ;;  %3043 = vmatpush1.bf16.msra.mxu1 %v2812_v5 }
 0xdd9   :  { %3044 = vmatprep.subr.bf16.mxu1 %v2817_v41  ;;  %v2901_v5 = vld [vmem:[#allocation5 + $0x318] sm:$0xff]  ;;  %v2900_v41 = vld [vmem:[#allocation5 + $0x310] sm:$0xff] }
 0xddb   :  { %2969 = vmatpush1.bf16.msra.mxu0 %v2834_v23  ;;  %v2816_v23 = vld [vmem:[#allocation5 + $0x70] sm:$0xff] }
 0xddc   :  { %2970 = vmatprep.subr.bf16.mxu0 %v2839_v27  ;;  %v2821_v27 = vld [vmem:[#allocation5 + $0x98] sm:$0xff]  ;;  %3045 = vmatpush1.bf16.msra.mxu1 %v2816_v23 }
 0xddd   :  { %3046 = vmatprep.subr.bf16.mxu1 %v2821_v27  ;;  %v2905_v23 = vld [vmem:[#allocation5 + $0x338] sm:$0xff] }
 0xdde   :  { %v2909_v27 = vld [vmem:[#allocation5 + $0x358] sm:$0xff] }
 0xddf   :  { %2971 = vmatpush1.bf16.msra.mxu0 %v2838_v28  ;;  %v2820_v28 = vld [vmem:[#allocation5 + $0x90] sm:$0xff] }
 0xde0   :  { %2972 = vmatprep.subr.bf16.mxu0 %v2843_v8  ;;  %v2825_v8 = vld [vmem:[#allocation5 + $0xb8] sm:$0xff]  ;;  %3047 = vmatpush1.bf16.msra.mxu1 %v2820_v28 }
 0xde1   :  { %3048 = vmatprep.subr.bf16.mxu1 %v2825_v8  ;;  %v2913_v28 = vld [vmem:[#allocation5 + $0x378] sm:$0xff]  ;;  %v2912_v8 = vld [vmem:[#allocation5 + $0x370] sm:$0xff] }
 0xde3   :  { %2973 = vmatpush1.bf16.msra.mxu0 %v2842_v46  ;;  %v2824_v46 = vld [vmem:[#allocation5 + $0xb0] sm:$0xff] }
 0xde4   :  { %2974 = vmatprep.subr.bf16.mxu0 %v2847_v2  ;;  %v2829_v2 = vld [vmem:[#allocation5 + $0xd8] sm:$0xff]  ;;  %3049 = vmatpush1.bf16.msra.mxu1 %v2824_v46 }
 0xde5   :  { %3050 = vmatprep.subr.bf16.mxu1 %v2829_v2  ;;  %v2917_v46 = vld [vmem:[#allocation5 + $0x398] sm:$0xff]  ;;  %v2916_v2 = vld [vmem:[#allocation5 + $0x390] sm:$0xff] }
 0xde7   :  { %2975 = vmatpush1.bf16.msra.mxu0 %v2846_v32  ;;  %v2828_v32 = vld [vmem:[#allocation5 + $0xd0] sm:$0xff] }
 0xde8   :  { %2976 = vmatprep.subr.bf16.mxu0 %v2851_v16  ;;  %v2833_v16 = vld [vmem:[#allocation5 + $0xf8] sm:$0xff]  ;;  %3051 = vmatpush1.bf16.msra.mxu1 %v2828_v32 }
 0xde9   :  { %3052 = vmatprep.subr.bf16.mxu1 %v2833_v16  ;;  %v2921_v32 = vld [vmem:[#allocation5 + $0x3b8] sm:$0xff]  ;;  %v2920_v16 = vld [vmem:[#allocation5 + $0x3b0] sm:$0xff] }
 0xdeb   :  { %2977 = vmatpush1.bf16.msra.mxu0 %v2850_v18  ;;  %v2832_v18 = vld [vmem:[#allocation5 + $0xf0] sm:$0xff] }
 0xdec   :  { %2978 = vmatprep.subr.bf16.mxu0 %v2855_v10  ;;  %v2837_v10 = vld [vmem:[#allocation5 + $0x118] sm:$0xff]  ;;  %3053 = vmatpush1.bf16.msra.mxu1 %v2832_v18 }
 0xded   :  { %3054 = vmatprep.subr.bf16.mxu1 %v2837_v10  ;;  %v2925_v18 = vld [vmem:[#allocation5 + $0x3d8] sm:$0xff]  ;;  %v2924_v10 = vld [vmem:[#allocation5 + $0x3d0] sm:$0xff] }
 0xdef   :  { %2979 = vmatpush1.bf16.msra.mxu0 %v2854_v12  ;;  %v2836_v12 = vld [vmem:[#allocation5 + $0x110] sm:$0xff] }
 0xdf0   :  { %2980 = vmatprep.subr.bf16.mxu0 %v2859_v20  ;;  %v2841_v20 = vld [vmem:[#allocation5 + $0x138] sm:$0xff]  ;;  %3055 = vmatpush1.bf16.msra.mxu1 %v2836_v12 }
 0xdf1   :  { %3056 = vmatprep.subr.bf16.mxu1 %v2841_v20  ;;  %v2929_v12 = vld [vmem:[#allocation5 + $0x3f8] sm:$0xff]  ;;  %v2928_v20 = vld [vmem:[#allocation5 + $0x3f0] sm:$0xff] }
 0xdf3   :  { %2981 = vmatpush1.bf16.msra.mxu0 %v2858_v24  ;;  %v2840_v24 = vld [vmem:[#allocation5 + $0x130] sm:$0xff] }
 0xdf4   :  { %2982 = vmatprep.subr.bf16.mxu0 %v2863_v15  ;;  %v2845_v15 = vld [vmem:[#allocation5 + $0x158] sm:$0xff]  ;;  %3057 = vmatpush1.bf16.msra.mxu1 %v2840_v24 }
 0xdf5   :  { %3058 = vmatprep.subr.bf16.mxu1 %v2845_v15 }
 0xdf7   :  { %2983 = vmatpush1.bf16.msra.mxu0 %v2862_v3  ;;  %v2844_v3 = vld [vmem:[#allocation5 + $0x150] sm:$0xff] }
 0xdf8   :  { %2995 = vmatprep.subr.bf16.mxu0 %v2867_v4  ;;  %v2849_v4 = vld [vmem:[#allocation5 + $0x178] sm:$0xff]  ;;  %3059 = vmatpush1.bf16.msra.mxu1 %v2844_v3 }
 0xdf9   :  { %3060 = vmatprep.subr.bf16.mxu1 %v2849_v4 }
 0xdfa   :  { %2985 = vmatmul.mubr.bf16.vlgmr.msra.gmra.mrb[44].mxu0 %v4198_v52 }
 0xdfb   :  { %2996 = vmatpush1.bf16.msra.mxu0 %v2866_v21  ;;  %3027 = vmatprep.mubr.bf16.mxu0 %v4202_v55  ;;  %v2848_v21 = vld [vmem:[#allocation5 + $0x170] sm:$0xff] }
 0xdfc   :  { %2997 = vmatprep.subr.bf16.mxu0 %v2871_v29  ;;  %v2853_v29 = vld [vmem:[#allocation5 + $0x198] sm:$0xff]  ;;  %3061 = vmatpush1.bf16.msra.mxu1 %v2848_v21 }
 0xdfd   :  { %3062 = vmatprep.subr.bf16.mxu1 %v2853_v29 }
 0xdff   :  { %2998 = vmatpush1.bf16.msra.mxu0 %v2870_v35  ;;  %v2852_v35 = vld [vmem:[#allocation5 + $0x190] sm:$0xff] }
 0xe00   :  { %2999 = vmatprep.subr.bf16.mxu0 %v2875_v39  ;;  %v2857_v39 = vld [vmem:[#allocation5 + $0x1b8] sm:$0xff]  ;;  %3063 = vmatpush1.bf16.msra.mxu1 %v2852_v35 }
 0xe01   :  { %3064 = vmatprep.subr.bf16.mxu1 %v2857_v39 }
 0xe03   :  { %3000 = vmatpush1.bf16.msra.mxu0 %v2874_v42  ;;  %v2856_v42 = vld [vmem:[#allocation5 + $0x1b0] sm:$0xff] }
 0xe04   :  { %3001 = vmatprep.subr.bf16.mxu0 %v2879_v43  ;;  %v2861_v43 = vld [vmem:[#allocation5 + $0x1d8] sm:$0xff]  ;;  %3065 = vmatpush1.bf16.msra.mxu1 %v2856_v42 }
 0xe05   :  { %3066 = vmatprep.subr.bf16.mxu1 %v2861_v43 }
 0xe07   :  { %3002 = vmatpush1.bf16.msra.mxu0 %v2878_v48  ;;  %v2860_v48 = vld [vmem:[#allocation5 + $0x1d0] sm:$0xff] }
 0xe08   :  { %3003 = vmatprep.subr.bf16.mxu0 %v2883_v44  ;;  %v2865_v44 = vld [vmem:[#allocation5 + $0x1f8] sm:$0xff]  ;;  %3067 = vmatpush1.bf16.msra.mxu1 %v2860_v48 }
 0xe09   :  { %3068 = vmatprep.subr.bf16.mxu1 %v2865_v44 }
 0xe0b   :  { %3004 = vmatpush1.bf16.msra.mxu0 %v2882_v13  ;;  %v2864_v13 = vld [vmem:[#allocation5 + $0x1f0] sm:$0xff] }
 0xe0c   :  { %3005 = vmatprep.subr.bf16.mxu0 %v2887_v47  ;;  %v2869_v47 = vld [vmem:[#allocation5 + $0x218] sm:$0xff]  ;;  %3069 = vmatpush1.bf16.msra.mxu1 %v2864_v13 }
 0xe0d   :  { %3081 = vmatprep.subr.bf16.mxu1 %v2869_v47 }
 0xe0f   :  { %3006 = vmatpush1.bf16.msra.mxu0 %v2886_v25  ;;  %v2868_v25 = vld [vmem:[#allocation5 + $0x210] sm:$0xff]  ;;  %3071 = vmatmul.mubr.bf16.vlgmr.msra.gmra.mrb[44].mxu1 %v4198_v52 }
 0xe10   :  { %3007 = vmatprep.subr.bf16.mxu0 %v2891_v26  ;;  %v2873_v26 = vld [vmem:[#allocation5 + $0x238] sm:$0xff]  ;;  %3082 = vmatpush1.bf16.msra.mxu1 %v2868_v25  ;;  %v2888_v52 = vld [vmem:[#allocation5 + $0x2b0] sm:$0xff] }
 0xe11   :  { %3113 = vmatprep.mubr.bf16.mxu1 %v4202_v55  ;;  %3083 = vmatprep.subr.bf16.mxu1 %v2873_v26  ;;  %v2892_v55 = vld [vmem:[#allocation5 + $0x2d0] sm:$0xff] }
 0xe13   :  { %3008 = vmatpush1.bf16.msra.mxu0 %v2890_v50  ;;  %v2872_v50 = vld [vmem:[#allocation5 + $0x230] sm:$0xff] }
 0xe14   :  { %3009 = vmatprep.subr.bf16.mxu0 %v2895_v31  ;;  %v2877_v31 = vld [vmem:[#allocation5 + $0x258] sm:$0xff]  ;;  %3084 = vmatpush1.bf16.msra.mxu1 %v2872_v50 }
 0xe15   :  { %3085 = vmatprep.subr.bf16.mxu1 %v2877_v31 }
 0xe17   :  { %3010 = vmatpush1.bf16.msra.mxu0 %v2894_v36  ;;  %v2876_v36 = vld [vmem:[#allocation5 + $0x250] sm:$0xff] }
 0xe18   :  { %3011 = vmatprep.subr.bf16.mxu0 %v2899_v49  ;;  %v2881_v49 = vld [vmem:[#allocation5 + $0x278] sm:$0xff]  ;;  %3086 = vmatpush1.bf16.msra.mxu1 %v2876_v36 }
 0xe19   :  { %3087 = vmatprep.subr.bf16.mxu1 %v2881_v49 }
 0xe1b   :  { %3012 = vmatpush1.bf16.msra.mxu0 %v2898_v30  ;;  %v2880_v30 = vld [vmem:[#allocation5 + $0x270] sm:$0xff] }
 0xe1c   :  { %3013 = vmatprep.subr.bf16.mxu0 %v2903_v40  ;;  %v2885_v40 = vld [vmem:[#allocation5 + $0x298] sm:$0xff]  ;;  %3088 = vmatpush1.bf16.msra.mxu1 %v2880_v30 }
 0xe1d   :  { %3089 = vmatprep.subr.bf16.mxu1 %v2885_v40 }
 0xe1f   :  { %3014 = vmatpush1.bf16.msra.mxu0 %v2902_v45  ;;  %v2884_v45 = vld [vmem:[#allocation5 + $0x290] sm:$0xff] }
 0xe20   :  { %3015 = vmatprep.subr.bf16.mxu0 %v2907_v51  ;;  %v2889_v51 = vld [vmem:[#allocation5 + $0x2b8] sm:$0xff]  ;;  %3090 = vmatpush1.bf16.msra.mxu1 %v2884_v45 }
 0xe21   :  { %3091 = vmatprep.subr.bf16.mxu1 %v2889_v51 }
 0xe23   :  { %3016 = vmatpush1.bf16.msra.mxu0 %v2906_v54  ;;  %v2893_v54 = vld [vmem:[#allocation5 + $0x2d8] sm:$0xff] }
 0xe24   :  { %3017 = vmatprep.subr.bf16.mxu0 %v2911_v56  ;;  %3092 = vmatpush1.bf16.msra.mxu1 %v2888_v52  ;;  %v2897_v56 = vld [vmem:[#allocation5 + $0x2f8] sm:$0xff] }
 0xe25   :  { %3093 = vmatprep.subr.bf16.mxu1 %v2893_v54 }
 0xe27   :  { %3018 = vmatpush1.bf16.msra.mxu0 %v2910_v57  ;;  %v2896_v57 = vld [vmem:[#allocation5 + $0x2f0] sm:$0xff] }
 0xe28   :  { %3019 = vmatprep.subr.bf16.mxu0 %v2915_v58  ;;  %3094 = vmatpush1.bf16.msra.mxu1 %v2892_v55  ;;  %v4212_v58 = vld [vmem:[#allocation16] sm:$0xf] }
 0xe29   :  { %3095 = vmatprep.subr.bf16.mxu1 %v2897_v56 }
 0xe2b   :  { %3020 = vmatpush1.bf16.msra.mxu0 %v2914_v59  ;;  %v2935_v59 = vrot.slane %v4212_v58, %v3919_v17  ;;  %v2904_v17 = vld [vmem:[#allocation5 + $0x330] sm:$0xff] }
 0xe2c   :  { %3021 = vmatprep.subr.bf16.mxu0 %v2919_v34  ;;  %3096 = vmatpush1.bf16.msra.mxu1 %v2896_v57 }
 0xe2d   :  { %3097 = vmatprep.subr.bf16.mxu1 %v2901_v5 }
 0xe2f   :  { %3022 = vmatpush1.bf16.msra.mxu0 %v2918_v61  ;;  %v2939_v61 = vrot.slane %v4212_v58, %v3924_v19  ;;  %v2908_v19 = vld [vmem:[#allocation5 + $0x350] sm:$0xff] }
 0xe30   :  { %3023 = vmatprep.subr.bf16.mxu0 %v2923_v62  ;;  %3098 = vmatpush1.bf16.msra.mxu1 %v2900_v41 }
 0xe31   :  { %3099 = vmatprep.subr.bf16.mxu1 %v2905_v23 }
 0xe33   :  { %3024 = vmatpush1.bf16.msra.mxu0 %v2922_v63 }
 0xe34   :  { %3025 = vmatprep.subr.bf16.mxu0 %v2927_v6  ;;  %3100 = vmatpush1.bf16.msra.mxu1 %v2904_v17 }
 0xe35   :  { %3101 = vmatprep.subr.bf16.mxu1 %v2909_v27 }
 0xe37   :  { %3026 = vmatpush1.bf16.msra.mxu0 %v2926_v7 }
 0xe38   :  { %3332 = vmatprep.subr.bf16.mxu0 %v3721_v14  ;;  %3102 = vmatpush1.bf16.msra.mxu1 %v2908_v19 }
 0xe39   :  { %3103 = vmatprep.subr.bf16.mxu1 %v2913_v28 }
 0xe3a   :  { %3028 = vmatmul.mubr.bf16.vlgmr.msra.gmra.mrb[44].mxu0 %v4200_v53 }
 0xe3b   :  { %3334 = vmatprep.mubr.msk.bf16.mxu0 %vm3722_vm1, %v3721_v14 }
 0xe3c   :  { %3104 = vmatpush1.bf16.msra.mxu1 %v2912_v8 }
 0xe3d   :  { %3105 = vmatprep.subr.bf16.mxu1 %v2917_v46 }
 0xe40   :  { %3106 = vmatpush1.bf16.msra.mxu1 %v2916_v2 }
 0xe41   :  { %3107 = vmatprep.subr.bf16.mxu1 %v2921_v32 }
 0xe44   :  { %3108 = vmatpush1.bf16.msra.mxu1 %v2920_v16 }
 0xe45   :  { %3109 = vmatprep.subr.bf16.mxu1 %v2925_v18 }
 0xe48   :  { %3110 = vmatpush1.bf16.msra.mxu1 %v2924_v10 }
 0xe49   :  { %3111 = vmatprep.subr.bf16.mxu1 %v2929_v12 }
 0xe4c   :  { %3112 = vmatpush1.bf16.msra.mxu1 %v2928_v20 }
 0xe4d   :  { %3338 = vmatprep.subr.bf16.mxu1 %v3721_v14 }
 0xe4f   :  { %3114 = vmatmul.mubr.bf16.vlgmr.msra.gmra.mrb[44].mxu1 %v4200_v53  ;;  %v2943_v53 = vrot.slane %v4212_v58, %v3948_v60 }
 0xe50   :  { %3340 = vmatprep.mubr.msk.bf16.mxu1 %vm3722_vm1, %v3721_v14 }
 0xf0d   :  { %v3029_v34 = vpop.f32.mrb[44].mxu0 }
 0xf0e   :  { %v3031_v62 = vpop.f32.mrb[45].mxu0  ;;  %v3384_v6 = vadd.f32 %v3029_v34, %v2935_v59 }
 0xf0f   :  { %v3033_v63 = vpop.f32.mrb[46].mxu0  ;;  %v3385_v38 = vadd.f32 %v3031_v62, %v2939_v61 }
 0xf10   :  { %v3386_v7 = vadd.f32 %v3033_v63, %v2935_v59  ;;  %v3035_v37 = vpop.f32.mrb[47].mxu0  ;;  %v2947_v63 = vrot.slane %v4212_v58, %v3954_v22 }
 0xf11   :  { %v3387_v9 = vadd.f32 %v3035_v37, %v2939_v61 }
 0xf12   :  { %v3124_v11 = vpack.c.bf16 %v3386_v7, %v3384_v6 }
 0xf13   :  { %v3125_v33 = vpack.c.bf16 %v3387_v9, %v3385_v38 }
 0xf15   :  { %3333 = vmatpush3.bf16.xpose.msra.mxu0 %v3125_v33 }
 0xf1c   :  { %3335 = vmatmul.mubr.bf16.vlgmr.msra.gmra.mrb[48].mxu0 %v3124_v11 }
 0xf22   :  { %v3115_v14 = vpop.f32.mrb[44].mxu1 }
 0xf23   :  { %v3388_v42 = vadd.f32 %v3115_v14, %v2943_v53  ;;  %v3117_v43 = vpop.f32.mrb[45].mxu1 }
 0xf24   :  { %v3119_v48 = vpop.f32.mrb[46].mxu1 }
 0xf25   :  { %v3390_v44 = vadd.f32 %v3119_v48, %v2943_v53  ;;  %v3121_v13 = vpop.f32.mrb[47].mxu1 }
 0xf26   :  { %v3391_v7 = vadd.f32 %v3121_v13, %v2947_v63 }
 0xf27   :  { %v3196_v47 = vpack.c.bf16 %v3390_v44, %v3388_v42 }
 0xf29   :  { %3339 = vmatpush3.bf16.msra.mxu1 %v3196_v47 }
 0xfef   :  { %v3160_v24 = vpop.f32.mrb[48].mxu0 }
 0xff0   :  { %v3167_v15 = vsel %vm423_vm2, %v3160_v24, -1e+30  ;;  %v3336_v3 = vpop.f32.mrb[49].mxu0 }
 0xff1   :  { %v3163_v4 = vpop.f32.mrb[50].mxu0  ;;  %v3169_v21 = vsel %vm427_vm3, %v3167_v15, -inf }
 0xff2   :  { %v3168_v29 = vsel %vm424_vm4, %v3163_v4, -1e+30  ;;  %3170 = vmax.xlane.f32.xlu0 %v3169_v21  ;;  %v3337_v35 = vpop.f32.mrb[51].mxu0 }
 0xff3   :  { %v3172_v39 = vsel %vm427_vm3, %v3168_v29, -inf }
 0xff6   :  { %3173 = vmax.xlane.f32.xlu0 %v3172_v39 }
0x107f   :  { %v3171_v25 = vpop.xlane.xlu0 %3170 }
0x1080   :  { %v3175_v26 = vsub.f32 %v3167_v15, %v3171_v25 }
0x1082   :  { %v3177_v50 = vmul.f32 1.442695, %v3175_v26 }
0x1083   :  { %v3174_v31 = vpop.xlane.xlu0 %3173 }
0x1084   :  { %3512 = vpow2.f32 %v3177_v50  ;;  %v3176_v36 = vsub.f32 %v3168_v29, %v3174_v31 }
0x1086   :  { %v3179_v49 = vmul.f32 1.442695, %v3176_v36 }
0x1088   :  { %3514 = vpow2.f32 %v3179_v49 }
0x108e   :  { %v3513_v30 = vpop.eup %3512 }
0x108f   :  { %v3181_v40 = vmul.f32 %v3513_v30, %v3903_v0 }
0x1091   :  { %v3183_v60 = vsel %vm427_vm3, %v3181_v40, 0.0 }
0x1092   :  { %v3515_v45 = vpop.eup %3514  ;;  %3184 = vadd.xlane.f32.xlu1 %v3183_v60 }
0x1093   :  { %v3182_v51 = vmul.f32 %v3515_v45, %v3905_v1  ;;  %v3389_v1 = vadd.f32 %v3117_v43, %v2947_v63 }
0x1095   :  { %v3186_v52 = vsel %vm427_vm3, %v3182_v51, 0.0 }
0x1096   :  { %3187 = vadd.xlane.f32.xlu1 %v3186_v52 }
0x111f   :  { %v3185_v54 = vpop.xlane.xlu1 %3184 }
0x1120   :  { %v3189_v55 = vmax.f32 %v3185_v54, 1e-20 }
0x1122   :  { %3516 = vrcp.f32 %v3189_v55 }
0x1123   :  { %v3188_v56 = vpop.xlane.xlu1 %3187 }
0x1124   :  { %v3190_v57 = vmax.f32 %v3188_v56, 1e-20 }
0x1126   :  { %3518 = vrcp.f32 %v3190_v57 }
0x112c   :  { %v3517_v59 = vpop.eup %3516 }
0x112d   :  { %v3193_v61 = vmul.f32 %v3517_v59, %v3181_v40 }
0x1130   :  { %v3519_v34 = vpop.eup %3518 }
0x1131   :  { %v3194_v62 = vmul.f32 %v3519_v34, %v3182_v51 }
0x1133   :  { %v3195_v0 = vpack.c.bf16 %v3194_v62, %v3193_v61 }
0x1135   :  { %3341 = vmatmul.mubr.msk.bf16.vlgmr.msra.gmra.mrb[48].mxu1 %vm427_vm3, %v3195_v0 }
0x1208   :  { %v3234_v6 = vpop.f32.mrb[48].mxu1 }
0x1209   :  { %v3235_v37 = vadd.f32 %v3389_v1, %v3234_v6  ;;  %v3342_v38 = vpop.f32.mrb[49].mxu1 }
0x120a   :  { %v3237_v9 = vpop.f32.mrb[50].mxu1 }
0x120b   :  { %v3241_v11 = vmax.f32 %v3235_v37, 0.0  ;;  %v3238_v33 = vadd.f32 %v3391_v7, %v3237_v9  ;;  %v3343_v5 = vpop.f32.mrb[51].mxu1 }
0x120d   :  { %3243 = vst [vmem:[#allocation18] sm:$0xff] %v3241_v11  ;;  %v3242_v41 = vmax.f32 %v3238_v33, 0.0 }
0x120f   :  { %3244 = vst [vmem:[#allocation18 + $0x8] sm:$0xff] %v3242_v41 }
0x1210   :  { %3663 = shalt.err (!%p3660_p10)
}
0x1211   :  { %s3664_s12 = scalar_lea.hbm %s4262_s10, 256 }
0x1212   :  { %p3665_p11 = scmp.ne.s32.totalorder %s4262_s10, %s3664_s12  ;;  %p3668_p12 = scmp.lt.u32.totalorder %s3664_s12, %s4262_s10 }
0x1214   :  { %p3670_p13 = pnand %p3668_p12, %p3665_p11 }
0x1216   :  { %3673 = shalt.err (!%p3670_p13)
}
0x1217   :  { %3256 = dma.vmem_to_hbm [thread:$0]  %s3251_s29, 256, %s4262_s10, [#allocation9], %s3694_s25, %s3694_s25, %s3695_s26  }
0x1218   :  { %3690 = dma.done.wait [#allocation9], 256  }
0x1219   :  { %3691 = vsyncadd [#allocation9], 4294967040 }
0x121a   :  { %3260 = vsyncpa [#allocation8], 1 }
0x121b   :  { %3261 = vsyncpa [#allocation11], 1 }
0x121c   :  { %3262 = vsyncpa [#allocation14], 1 }
0x121d   :  { %3263 = vsyncpa [#allocation17], 1 }
0x121e   :  { %3264 = vsyncpa [#allocation9], 1 }
0x121f   :  { %3265 = vsyncmov [#allocation6] }
0x1222   :  { %s3266_s6 = vpop.sfrf %3265 }
0x1223   :  { %p3308_p0 = scmp.ne.s32.totalorder %s3266_s6, 0 }
0x1225   :  { %3270 = shalt.err (%p3308_p0)  }
0x1226   :  { %3272 = vsyncmov [#allocation6 + $0x1] }
0x1229   :  { %s3273_s21 = vpop.sfrf %3272 }
0x122a   :  { %p3309_p1 = scmp.ne.s32.totalorder %s3273_s21, 0 }
0x122c   :  { %3277 = shalt.err (%p3309_p1)  }
0x122d   :  { %3279 = vsyncmov [#allocation6 + $0x2] }
0x1230   :  { %s3280_s0 = vpop.sfrf %3279 }
0x1231   :  { %p3310_p2 = scmp.ne.s32.totalorder %s3280_s0, 0 }
0x1233   :  { %3284 = shalt.err (%p3310_p2)  }
0x1234   :  { %3286 = vsyncmov [#allocation6 + $0x3] }
0x1237   :  { %s3287_s10 = vpop.sfrf %3286 }
0x1238   :  { %p3311_p3 = scmp.ne.s32.totalorder %s3287_s10, 0 }
0x123a   :  { %3291 = shalt.err (%p3311_p3)  }

</bundles_post_ra>
